<compile_context>
chip_gen: v5e
topology: v5e:2x2
jax: 0.10.0
libtpu: 0.0.40
codegen_flags: <defaults>
</compile_context>

<pallas_src>
import math

import numpy as np

import jax
import jax.numpy as jnp
from jax.experimental import pallas as pl
from jax.experimental.pallas import tpu as pltpu


# (H_in, H_out, W_in*C_in, W_out*C_out) for the four discriminator blocks.
_LAYER_DIMS = (
    (28, 14, 28 * 1, 14 * 16),
    (14, 7, 14 * 16, 7 * 32),
    (7, 4, 7 * 32, 4 * 64),
    (4, 2, 4 * 64, 2 * 128),
)


# ----------------------------- Pallas kernel ------------------------------- #

def disc_kernel(img_ref, *refs):
    """Full Discriminator forward for one sample (grid iterates over batch)."""
    out_ref = refs[-1]
    lw_ref, lb_ref = refs[-3], refs[-2]
    layer_refs = refs[:-3]

    # Feature map stored (H, W*C), channels minor in the lanes.
    y = img_ref[0]                                          # (28, 28) bf16
    acc = None
    for li, (h_in, h_out, _, n_out) in enumerate(_LAYER_DIMS):
        bw_ref, b_ref, s_ref, t_ref = layer_refs[4 * li: 4 * li + 4]
        ho = jax.lax.broadcasted_iota(jnp.int32, (h_out, h_in), 0)
        hp = jax.lax.broadcasted_iota(jnp.int32, (h_out, h_in), 1)
        acc = jnp.zeros((h_out, n_out), jnp.float32)
        for kh in range(3):
            # 0/1 row-selection matrix: picks input row 2*ho + kh - 1 and yields a zero
            # row when that index is out of range (the conv's H zero padding).
            sel = jnp.where(hp == 2 * ho + (kh - 1), 1.0, 0.0).astype(jnp.bfloat16)
            rows = jnp.dot(sel, y, preferred_element_type=jnp.float32)
            acc = acc + jnp.dot(rows.astype(jnp.bfloat16), bw_ref[kh],
                                preferred_element_type=jnp.float32)
        acc = acc + b_ref[...]                              # conv bias (tiled over W_out)
        acc = jnp.where(acc >= 0.0, acc, 0.2 * acc)         # LeakyReLU(0.2)
        # TODO(synk): Dropout2d(0.25) is identity here (eval mode).
        acc = acc * s_ref[...] + t_ref[...]                 # BatchNorm2d affine (eval)
        y = acc.astype(jnp.bfloat16)

    # adv head: Linear(512 -> 1) as VPU multiply + XLU reduce (no 1-lane MXU matmul).
    prod = acc * lw_ref[...]                                # (2, 256) * (2, 256)
    z = jnp.sum(prod, axis=1, keepdims=True)                # (2, 1) lane reduce
    z = jnp.sum(z, axis=0, keepdims=True) + lb_ref[...]     # (1, 1)
    # Numerically stable sigmoid.
    e = jnp.exp(-jnp.abs(z))
    sig = jnp.where(z >= 0.0, 1.0 / (1.0 + e), e / (1.0 + e))
    out_ref[...] = jnp.broadcast_to(sig, out_ref.shape).astype(out_ref.dtype)


# ------------------------------- parameters -------------------------------- #

def _make_banded(w, win, wout, cin, cout):
    """Banded GEMM weight folding kw taps, W stride 2 and W pad 1.

    w: PyTorch conv weight (cout, cin, 3, 3).
    Returns (3, win*cin, wout*cout) with
      BW[kh][(w_in*cin + ci), (wo*cout + co)] = w[co, ci, kh, kw]  iff  w_in == 2*wo + kw - 1.
    """
    w_np = np.asarray(w)
    bw = np.zeros((3, win * cin, wout * cout), np.float32)
    for kh in range(3):
        for wo in range(wout):
            for kw in range(3):
                wi = 2 * wo + kw - 1
                if 0 <= wi < win:
                    bw[kh, wi * cin:(wi + 1) * cin, wo * cout:(wo + 1) * cout] = \
                        w_np[:, :, kh, kw].T
    return jnp.asarray(bw)


def init_params(key):
    """Deterministic synthetic parameters with the module's shapes."""
    cfg = [(1, 16, False, 28, 14), (16, 32, True, 14, 7),
           (32, 64, True, 7, 4), (64, 128, True, 4, 2)]
    keys = jax.random.split(key, 2 * len(cfg) + 2)
    blocks = []
    for idx, (cin, cout, bn, win, wout) in enumerate(cfg):
        kw_key, kb_key = keys[2 * idx], keys[2 * idx + 1]
        fan_in = cin * 9
        bound = 1.0 / math.sqrt(fan_in)
        w = jax.random.uniform(kw_key, (cout, cin, 3, 3), jnp.float32, -bound, bound)
        b = jax.random.uniform(kb_key, (cout,), jnp.float32, -bound, bound)
        if bn:
            eps = 0.8  # nn.BatchNorm2d(out_filters, 0.8) -> eps=0.8 (intentional, per spec)
            gamma = jnp.ones((cout,), jnp.float32)
            beta = jnp.zeros((cout,), jnp.float32)
            running_mean = jnp.zeros((cout,), jnp.float32)
            running_var = jnp.ones((cout,), jnp.float32)
            scale = gamma / jnp.sqrt(running_var + eps)
            shift = beta - running_mean * scale
        else:
            scale = jnp.ones((cout,), jnp.float32)
            shift = jnp.zeros((cout,), jnp.float32)
        blocks.append(dict(
            bw=_make_banded(w, win, wout, cin, cout).astype(jnp.bfloat16),
            bias=jnp.tile(b, wout).reshape(1, wout * cout).astype(jnp.float32),
            scale=jnp.tile(scale, wout).reshape(1, wout * cout).astype(jnp.float32),
            shift=jnp.tile(shift, wout).reshape(1, wout * cout).astype(jnp.float32),
        ))
    # adv_layer: Linear(128*2*2 -> 1); permute rows at init to the kernel's (ho, wo, co)
    # flatten order (instead of transposing activations every forward).
    lw_key, lb_key = keys[-2], keys[-1]
    fan_in = 128 * 2 * 2
    bound = 1.0 / math.sqrt(fan_in)
    lin_w = jax.random.uniform(lw_key, (1, fan_in), jnp.float32, -bound, bound)  # (out, in)
    lin_b = jax.random.uniform(lb_key, (1,), jnp.float32, -bound, bound)
    lw2 = lin_w.reshape(128, 2, 2)             # (co, ho, wo)  -- PyTorch NCHW flatten order
    lw2 = jnp.transpose(lw2, (1, 2, 0))        # (ho, wo, co)
    lw2 = lw2.reshape(2, 2 * 128)              # (ho, wo*128 + co)
    return dict(blocks=blocks,
                lin_w2=lw2.astype(jnp.float32),
                lin_b=lin_b.reshape(1, 1).astype(jnp.float32))


# ------------------------------- JAX wrapper -------------------------------- #

def _zero_index_map(ndim):
    return lambda i: (0,) * ndim


def _cost_estimate(batch):
    flops = 0
    bytes_w = 0
    for h_in, h_out, k, n in _LAYER_DIMS:
        flops += 3 * (2 * h_out * h_in * k + 2 * h_out * k * n)   # select + banded matmuls
        bytes_w += 3 * k * n * 2 + 3 * n * 4                      # bf16 weights + f32 vecs
    flops += 2 * 512 + 16                                         # head
    flops *= batch
    bytes_w += 2 * 256 * 4 + 4
    bytes_io = batch * (28 * 28 * 2 + 128 * 4)
    return pl.CostEstimate(flops=int(flops), transcendentals=int(batch),
                           bytes_accessed=int(bytes_w + bytes_io))


def discriminator_forward(params, img_nchw):
    """img_nchw: (B, 1, 28, 28) float32 -> validity (B, 1) float32."""
    B = img_nchw.shape[0]
    x = img_nchw.reshape(B, 28, 28).astype(jnp.bfloat16)   # C=1: drop channel dim

    inputs = [x]
    in_specs = [pl.BlockSpec((1, 28, 28), lambda i: (i, 0, 0))]
    for layer in params["blocks"]:
        for name in ("bw", "bias", "scale", "shift"):
            arr = layer[name]
            inputs.append(arr)
            in_specs.append(pl.BlockSpec(arr.shape, _zero_index_map(arr.ndim)))
    for name in ("lin_w2", "lin_b"):
        arr = params[name]
        inputs.append(arr)
        in_specs.append(pl.BlockSpec(arr.shape, _zero_index_map(arr.ndim)))

    out = pl.pallas_call(
        disc_kernel,
        out_shape=jax.ShapeDtypeStruct((B, 1, 128), jnp.float32),
        grid=(B,),
        in_specs=in_specs,
        out_specs=pl.BlockSpec((1, 1, 128), lambda i: (i, 0, 0)),
        compiler_params=pltpu.CompilerParams(dimension_semantics=("parallel",)),
        cost_estimate=_cost_estimate(B),
    )(*inputs)
    return out[:, 0, 0:1]


if __name__ == "__main__":
    key = jax.random.PRNGKey(0)
    pkey, xkey = jax.random.split(key)
    params = init_params(pkey)
    # Module forces 28x28 mono images (adv_layer expects 128*2*2); batch = 2.
    img = jax.random.normal(xkey, (2, 1, 28, 28), dtype=jnp.float32)

    validity = jax.jit(discriminator_forward)(params, img)
    validity = jax.block_until_ready(validity)

    assert validity.shape == (2, 1), validity.shape
    assert bool(jnp.all((validity >= 0.0) & (validity <= 1.0)))
    print("KERNEL_OK")
</pallas_src>

<mosaic_0001>
module attributes {stable_mosaic.version = 11 : i64} {
  func.func @disc_kernel(%arg0: i32, %arg1: memref<1x28x28xbf16, #tpu.memory_space<vmem>>, %arg2: memref<3x28x224xbf16, #tpu.memory_space<vmem>>, %arg3: memref<1x224xf32, #tpu.memory_space<vmem>>, %arg4: memref<1x224xf32, #tpu.memory_space<vmem>>, %arg5: memref<1x224xf32, #tpu.memory_space<vmem>>, %arg6: memref<3x224x224xbf16, #tpu.memory_space<vmem>>, %arg7: memref<1x224xf32, #tpu.memory_space<vmem>>, %arg8: memref<1x224xf32, #tpu.memory_space<vmem>>, %arg9: memref<1x224xf32, #tpu.memory_space<vmem>>, %arg10: memref<3x224x256xbf16, #tpu.memory_space<vmem>>, %arg11: memref<1x256xf32, #tpu.memory_space<vmem>>, %arg12: memref<1x256xf32, #tpu.memory_space<vmem>>, %arg13: memref<1x256xf32, #tpu.memory_space<vmem>>, %arg14: memref<3x256x256xbf16, #tpu.memory_space<vmem>>, %arg15: memref<1x256xf32, #tpu.memory_space<vmem>>, %arg16: memref<1x256xf32, #tpu.memory_space<vmem>>, %arg17: memref<1x256xf32, #tpu.memory_space<vmem>>, %arg18: memref<2x256xf32, #tpu.memory_space<vmem>>, %arg19: memref<1x1xf32, #tpu.memory_space<vmem>>, %arg20: memref<1x1x128xf32, #tpu.memory_space<vmem>>) attributes {dimension_semantics = [#tpu.dimension_semantics<parallel>], iteration_bounds = array<i64: 2>, scalar_prefetch = 0 : i64, scratch_operands = 0 : i64, tpu.core_type = #tpu.core_type<tc>, window_params = [{transform_indices = @transform_0, window_bounds = array<i64: 1, 28, 28>}, {pipeline_mode = #tpu.pipeline_mode<synchronous>, transform_indices = @transform_1, window_bounds = array<i64: 3, 28, 224>}, {pipeline_mode = #tpu.pipeline_mode<synchronous>, transform_indices = @transform_2, window_bounds = array<i64: 1, 224>}, {pipeline_mode = #tpu.pipeline_mode<synchronous>, transform_indices = @transform_3, window_bounds = array<i64: 1, 224>}, {pipeline_mode = #tpu.pipeline_mode<synchronous>, transform_indices = @transform_4, window_bounds = array<i64: 1, 224>}, {pipeline_mode = #tpu.pipeline_mode<synchronous>, transform_indices = @transform_5, window_bounds = array<i64: 3, 224, 224>}, {pipeline_mode = #tpu.pipeline_mode<synchronous>, transform_indices = @transform_6, window_bounds = array<i64: 1, 224>}, {pipeline_mode = #tpu.pipeline_mode<synchronous>, transform_indices = @transform_7, window_bounds = array<i64: 1, 224>}, {pipeline_mode = #tpu.pipeline_mode<synchronous>, transform_indices = @transform_8, window_bounds = array<i64: 1, 224>}, {pipeline_mode = #tpu.pipeline_mode<synchronous>, transform_indices = @transform_9, window_bounds = array<i64: 3, 224, 256>}, {pipeline_mode = #tpu.pipeline_mode<synchronous>, transform_indices = @transform_10, window_bounds = array<i64: 1, 256>}, {pipeline_mode = #tpu.pipeline_mode<synchronous>, transform_indices = @transform_11, window_bounds = array<i64: 1, 256>}, {pipeline_mode = #tpu.pipeline_mode<synchronous>, transform_indices = @transform_12, window_bounds = array<i64: 1, 256>}, {pipeline_mode = #tpu.pipeline_mode<synchronous>, transform_indices = @transform_13, window_bounds = array<i64: 3, 256, 256>}, {pipeline_mode = #tpu.pipeline_mode<synchronous>, transform_indices = @transform_14, window_bounds = array<i64: 1, 256>}, {pipeline_mode = #tpu.pipeline_mode<synchronous>, transform_indices = @transform_15, window_bounds = array<i64: 1, 256>}, {pipeline_mode = #tpu.pipeline_mode<synchronous>, transform_indices = @transform_16, window_bounds = array<i64: 1, 256>}, {pipeline_mode = #tpu.pipeline_mode<synchronous>, transform_indices = @transform_17, window_bounds = array<i64: 2, 256>}, {pipeline_mode = #tpu.pipeline_mode<synchronous>, transform_indices = @transform_18, window_bounds = array<i64: 1, 1>}, {transform_indices = @transform_19, window_bounds = array<i64: 1, 1, 128>}]} {
    %c0 = arith.constant 0 : index
    %c0_0 = arith.constant 0 : index
    %c0_1 = arith.constant 0 : index
    %0 = vector.load %arg1[%c0, %c0_0, %c0_1] : memref<1x28x28xbf16, #tpu.memory_space<vmem>>, vector<1x28x28xbf16>
    %1 = vector.shape_cast %0 : vector<1x28x28xbf16> to vector<28x28xbf16>
    %2 = tpu.iota {dimensions = array<i32: 0>} : vector<14x28xi32>
    %3 = tpu.iota {dimensions = array<i32: 1>} : vector<14x28xi32>
    %cst = arith.constant 0.000000e+00 : f32
    %4 = vector.broadcast %cst : f32 to vector<14x224xf32>
    %c2_i32 = arith.constant 2 : i32
    %5 = vector.broadcast %c2_i32 : i32 to vector<14x28xi32>
    %6 = arith.muli %5, %2 : vector<14x28xi32>
    %c-1_i32 = arith.constant -1 : i32
    %7 = vector.broadcast %c-1_i32 : i32 to vector<14x28xi32>
    %8 = arith.addi %6, %7 : vector<14x28xi32>
    %9 = arith.cmpi eq, %3, %8 : vector<14x28xi32>
    %cst_2 = arith.constant 1.000000e+00 : f32
    %cst_3 = arith.constant 0.000000e+00 : f32
    %10 = vector.broadcast %cst_2 : f32 to vector<14x28xf32>
    %11 = vector.broadcast %cst_3 : f32 to vector<14x28xf32>
    %12 = arith.select %9, %10, %11 : vector<14x28xi1>, vector<14x28xf32>
    %13 = arith.truncf %12 : vector<14x28xf32> to vector<14x28xbf16>
    %cst_4 = arith.constant dense<0.000000e+00> : vector<14x28xf32>
    %14 = tpu.matmul %13, %1, %cst_4 {dimension_numbers = #tpu.dot_dimension_numbers<[1], [0], [0], [1], [0, 0, 1, 1], [], []>} : vector<14x28xbf16>, vector<28x28xbf16>, vector<14x28xf32> -> vector<14x28xf32>
    %15 = arith.truncf %14 : vector<14x28xf32> to vector<14x28xbf16>
    %c0_5 = arith.constant 0 : index
    %c0_6 = arith.constant 0 : index
    %c0_7 = arith.constant 0 : index
    %16 = vector.load %arg2[%c0_5, %c0_6, %c0_7] : memref<3x28x224xbf16, #tpu.memory_space<vmem>>, vector<1x28x224xbf16>
    %17 = vector.shape_cast %16 : vector<1x28x224xbf16> to vector<28x224xbf16>
    %cst_8 = arith.constant dense<0.000000e+00> : vector<14x224xf32>
    %18 = tpu.matmul %15, %17, %cst_8 {dimension_numbers = #tpu.dot_dimension_numbers<[1], [0], [0], [1], [0, 0, 1, 1], [], []>} : vector<14x28xbf16>, vector<28x224xbf16>, vector<14x224xf32> -> vector<14x224xf32>
    %19 = arith.addf %4, %18 : vector<14x224xf32>
    %c2_i32_9 = arith.constant 2 : i32
    %20 = vector.broadcast %c2_i32_9 : i32 to vector<14x28xi32>
    %21 = arith.muli %20, %2 : vector<14x28xi32>
    %c0_i32 = arith.constant 0 : i32
    %22 = vector.broadcast %c0_i32 : i32 to vector<14x28xi32>
    %23 = arith.addi %21, %22 : vector<14x28xi32>
    %24 = arith.cmpi eq, %3, %23 : vector<14x28xi32>
    %cst_10 = arith.constant 1.000000e+00 : f32
    %cst_11 = arith.constant 0.000000e+00 : f32
    %25 = vector.broadcast %cst_10 : f32 to vector<14x28xf32>
    %26 = vector.broadcast %cst_11 : f32 to vector<14x28xf32>
    %27 = arith.select %24, %25, %26 : vector<14x28xi1>, vector<14x28xf32>
    %28 = arith.truncf %27 : vector<14x28xf32> to vector<14x28xbf16>
    %cst_12 = arith.constant dense<0.000000e+00> : vector<14x28xf32>
    %29 = tpu.matmul %28, %1, %cst_12 {dimension_numbers = #tpu.dot_dimension_numbers<[1], [0], [0], [1], [0, 0, 1, 1], [], []>} : vector<14x28xbf16>, vector<28x28xbf16>, vector<14x28xf32> -> vector<14x28xf32>
    %30 = arith.truncf %29 : vector<14x28xf32> to vector<14x28xbf16>
    %c1 = arith.constant 1 : index
    %c0_13 = arith.constant 0 : index
    %c0_14 = arith.constant 0 : index
    %31 = vector.load %arg2[%c1, %c0_13, %c0_14] : memref<3x28x224xbf16, #tpu.memory_space<vmem>>, vector<1x28x224xbf16>
    %32 = vector.shape_cast %31 : vector<1x28x224xbf16> to vector<28x224xbf16>
    %cst_15 = arith.constant dense<0.000000e+00> : vector<14x224xf32>
    %33 = tpu.matmul %30, %32, %cst_15 {dimension_numbers = #tpu.dot_dimension_numbers<[1], [0], [0], [1], [0, 0, 1, 1], [], []>} : vector<14x28xbf16>, vector<28x224xbf16>, vector<14x224xf32> -> vector<14x224xf32>
    %34 = arith.addf %19, %33 : vector<14x224xf32>
    %c2_i32_16 = arith.constant 2 : i32
    %35 = vector.broadcast %c2_i32_16 : i32 to vector<14x28xi32>
    %36 = arith.muli %35, %2 : vector<14x28xi32>
    %c1_i32 = arith.constant 1 : i32
    %37 = vector.broadcast %c1_i32 : i32 to vector<14x28xi32>
    %38 = arith.addi %36, %37 : vector<14x28xi32>
    %39 = arith.cmpi eq, %3, %38 : vector<14x28xi32>
    %cst_17 = arith.constant 1.000000e+00 : f32
    %cst_18 = arith.constant 0.000000e+00 : f32
    %40 = vector.broadcast %cst_17 : f32 to vector<14x28xf32>
    %41 = vector.broadcast %cst_18 : f32 to vector<14x28xf32>
    %42 = arith.select %39, %40, %41 : vector<14x28xi1>, vector<14x28xf32>
    %43 = arith.truncf %42 : vector<14x28xf32> to vector<14x28xbf16>
    %cst_19 = arith.constant dense<0.000000e+00> : vector<14x28xf32>
    %44 = tpu.matmul %43, %1, %cst_19 {dimension_numbers = #tpu.dot_dimension_numbers<[1], [0], [0], [1], [0, 0, 1, 1], [], []>} : vector<14x28xbf16>, vector<28x28xbf16>, vector<14x28xf32> -> vector<14x28xf32>
    %45 = arith.truncf %44 : vector<14x28xf32> to vector<14x28xbf16>
    %c2 = arith.constant 2 : index
    %c0_20 = arith.constant 0 : index
    %c0_21 = arith.constant 0 : index
    %46 = vector.load %arg2[%c2, %c0_20, %c0_21] : memref<3x28x224xbf16, #tpu.memory_space<vmem>>, vector<1x28x224xbf16>
    %47 = vector.shape_cast %46 : vector<1x28x224xbf16> to vector<28x224xbf16>
    %cst_22 = arith.constant dense<0.000000e+00> : vector<14x224xf32>
    %48 = tpu.matmul %45, %47, %cst_22 {dimension_numbers = #tpu.dot_dimension_numbers<[1], [0], [0], [1], [0, 0, 1, 1], [], []>} : vector<14x28xbf16>, vector<28x224xbf16>, vector<14x224xf32> -> vector<14x224xf32>
    %49 = arith.addf %34, %48 : vector<14x224xf32>
    %c0_23 = arith.constant 0 : index
    %c0_24 = arith.constant 0 : index
    %50 = vector.load %arg3[%c0_23, %c0_24] : memref<1x224xf32, #tpu.memory_space<vmem>>, vector<1x224xf32>
    %51 = vector.broadcast %50 : vector<1x224xf32> to vector<14x224xf32>
    %52 = arith.addf %49, %51 : vector<14x224xf32>
    %cst_25 = arith.constant 0.000000e+00 : f32
    %53 = vector.broadcast %cst_25 : f32 to vector<14x224xf32>
    %54 = arith.cmpf oge, %52, %53 : vector<14x224xf32>
    %cst_26 = arith.constant 2.000000e-01 : f32
    %55 = vector.broadcast %cst_26 : f32 to vector<14x224xf32>
    %56 = arith.mulf %55, %52 : vector<14x224xf32>
    %57 = arith.select %54, %52, %56 : vector<14x224xi1>, vector<14x224xf32>
    %c0_27 = arith.constant 0 : index
    %c0_28 = arith.constant 0 : index
    %58 = vector.load %arg4[%c0_27, %c0_28] : memref<1x224xf32, #tpu.memory_space<vmem>>, vector<1x224xf32>
    %59 = vector.broadcast %58 : vector<1x224xf32> to vector<14x224xf32>
    %60 = arith.mulf %57, %59 : vector<14x224xf32>
    %c0_29 = arith.constant 0 : index
    %c0_30 = arith.constant 0 : index
    %61 = vector.load %arg5[%c0_29, %c0_30] : memref<1x224xf32, #tpu.memory_space<vmem>>, vector<1x224xf32>
    %62 = vector.broadcast %61 : vector<1x224xf32> to vector<14x224xf32>
    %63 = arith.addf %60, %62 : vector<14x224xf32>
    %64 = arith.truncf %63 : vector<14x224xf32> to vector<14x224xbf16>
    %65 = tpu.iota {dimensions = array<i32: 0>} : vector<7x14xi32>
    %66 = tpu.iota {dimensions = array<i32: 1>} : vector<7x14xi32>
    %cst_31 = arith.constant 0.000000e+00 : f32
    %67 = vector.broadcast %cst_31 : f32 to vector<7x224xf32>
    %c2_i32_32 = arith.constant 2 : i32
    %68 = vector.broadcast %c2_i32_32 : i32 to vector<7x14xi32>
    %69 = arith.muli %68, %65 : vector<7x14xi32>
    %c-1_i32_33 = arith.constant -1 : i32
    %70 = vector.broadcast %c-1_i32_33 : i32 to vector<7x14xi32>
    %71 = arith.addi %69, %70 : vector<7x14xi32>
    %72 = arith.cmpi eq, %66, %71 : vector<7x14xi32>
    %cst_34 = arith.constant 1.000000e+00 : f32
    %cst_35 = arith.constant 0.000000e+00 : f32
    %73 = vector.broadcast %cst_34 : f32 to vector<7x14xf32>
    %74 = vector.broadcast %cst_35 : f32 to vector<7x14xf32>
    %75 = arith.select %72, %73, %74 : vector<7x14xi1>, vector<7x14xf32>
    %76 = arith.truncf %75 : vector<7x14xf32> to vector<7x14xbf16>
    %cst_36 = arith.constant dense<0.000000e+00> : vector<7x224xf32>
    %77 = tpu.matmul %76, %64, %cst_36 {dimension_numbers = #tpu.dot_dimension_numbers<[1], [0], [0], [1], [0, 0, 1, 1], [], []>} : vector<7x14xbf16>, vector<14x224xbf16>, vector<7x224xf32> -> vector<7x224xf32>
    %78 = arith.truncf %77 : vector<7x224xf32> to vector<7x224xbf16>
    %c0_37 = arith.constant 0 : index
    %c0_38 = arith.constant 0 : index
    %c0_39 = arith.constant 0 : index
    %79 = vector.load %arg6[%c0_37, %c0_38, %c0_39] : memref<3x224x224xbf16, #tpu.memory_space<vmem>>, vector<1x224x224xbf16>
    %80 = vector.shape_cast %79 : vector<1x224x224xbf16> to vector<224x224xbf16>
    %cst_40 = arith.constant dense<0.000000e+00> : vector<7x224xf32>
    %81 = tpu.matmul %78, %80, %cst_40 {dimension_numbers = #tpu.dot_dimension_numbers<[1], [0], [0], [1], [0, 0, 1, 1], [], []>} : vector<7x224xbf16>, vector<224x224xbf16>, vector<7x224xf32> -> vector<7x224xf32>
    %82 = arith.addf %67, %81 : vector<7x224xf32>
    %c2_i32_41 = arith.constant 2 : i32
    %83 = vector.broadcast %c2_i32_41 : i32 to vector<7x14xi32>
    %84 = arith.muli %83, %65 : vector<7x14xi32>
    %c0_i32_42 = arith.constant 0 : i32
    %85 = vector.broadcast %c0_i32_42 : i32 to vector<7x14xi32>
    %86 = arith.addi %84, %85 : vector<7x14xi32>
    %87 = arith.cmpi eq, %66, %86 : vector<7x14xi32>
    %cst_43 = arith.constant 1.000000e+00 : f32
    %cst_44 = arith.constant 0.000000e+00 : f32
    %88 = vector.broadcast %cst_43 : f32 to vector<7x14xf32>
    %89 = vector.broadcast %cst_44 : f32 to vector<7x14xf32>
    %90 = arith.select %87, %88, %89 : vector<7x14xi1>, vector<7x14xf32>
    %91 = arith.truncf %90 : vector<7x14xf32> to vector<7x14xbf16>
    %cst_45 = arith.constant dense<0.000000e+00> : vector<7x224xf32>
    %92 = tpu.matmul %91, %64, %cst_45 {dimension_numbers = #tpu.dot_dimension_numbers<[1], [0], [0], [1], [0, 0, 1, 1], [], []>} : vector<7x14xbf16>, vector<14x224xbf16>, vector<7x224xf32> -> vector<7x224xf32>
    %93 = arith.truncf %92 : vector<7x224xf32> to vector<7x224xbf16>
    %c1_46 = arith.constant 1 : index
    %c0_47 = arith.constant 0 : index
    %c0_48 = arith.constant 0 : index
    %94 = vector.load %arg6[%c1_46, %c0_47, %c0_48] : memref<3x224x224xbf16, #tpu.memory_space<vmem>>, vector<1x224x224xbf16>
    %95 = vector.shape_cast %94 : vector<1x224x224xbf16> to vector<224x224xbf16>
    %cst_49 = arith.constant dense<0.000000e+00> : vector<7x224xf32>
    %96 = tpu.matmul %93, %95, %cst_49 {dimension_numbers = #tpu.dot_dimension_numbers<[1], [0], [0], [1], [0, 0, 1, 1], [], []>} : vector<7x224xbf16>, vector<224x224xbf16>, vector<7x224xf32> -> vector<7x224xf32>
    %97 = arith.addf %82, %96 : vector<7x224xf32>
    %c2_i32_50 = arith.constant 2 : i32
    %98 = vector.broadcast %c2_i32_50 : i32 to vector<7x14xi32>
    %99 = arith.muli %98, %65 : vector<7x14xi32>
    %c1_i32_51 = arith.constant 1 : i32
    %100 = vector.broadcast %c1_i32_51 : i32 to vector<7x14xi32>
    %101 = arith.addi %99, %100 : vector<7x14xi32>
    %102 = arith.cmpi eq, %66, %101 : vector<7x14xi32>
    %cst_52 = arith.constant 1.000000e+00 : f32
    %cst_53 = arith.constant 0.000000e+00 : f32
    %103 = vector.broadcast %cst_52 : f32 to vector<7x14xf32>
    %104 = vector.broadcast %cst_53 : f32 to vector<7x14xf32>
    %105 = arith.select %102, %103, %104 : vector<7x14xi1>, vector<7x14xf32>
    %106 = arith.truncf %105 : vector<7x14xf32> to vector<7x14xbf16>
    %cst_54 = arith.constant dense<0.000000e+00> : vector<7x224xf32>
    %107 = tpu.matmul %106, %64, %cst_54 {dimension_numbers = #tpu.dot_dimension_numbers<[1], [0], [0], [1], [0, 0, 1, 1], [], []>} : vector<7x14xbf16>, vector<14x224xbf16>, vector<7x224xf32> -> vector<7x224xf32>
    %108 = arith.truncf %107 : vector<7x224xf32> to vector<7x224xbf16>
    %c2_55 = arith.constant 2 : index
    %c0_56 = arith.constant 0 : index
    %c0_57 = arith.constant 0 : index
    %109 = vector.load %arg6[%c2_55, %c0_56, %c0_57] : memref<3x224x224xbf16, #tpu.memory_space<vmem>>, vector<1x224x224xbf16>
    %110 = vector.shape_cast %109 : vector<1x224x224xbf16> to vector<224x224xbf16>
    %cst_58 = arith.constant dense<0.000000e+00> : vector<7x224xf32>
    %111 = tpu.matmul %108, %110, %cst_58 {dimension_numbers = #tpu.dot_dimension_numbers<[1], [0], [0], [1], [0, 0, 1, 1], [], []>} : vector<7x224xbf16>, vector<224x224xbf16>, vector<7x224xf32> -> vector<7x224xf32>
    %112 = arith.addf %97, %111 : vector<7x224xf32>
    %c0_59 = arith.constant 0 : index
    %c0_60 = arith.constant 0 : index
    %113 = vector.load %arg7[%c0_59, %c0_60] : memref<1x224xf32, #tpu.memory_space<vmem>>, vector<1x224xf32>
    %114 = vector.broadcast %113 : vector<1x224xf32> to vector<7x224xf32>
    %115 = arith.addf %112, %114 : vector<7x224xf32>
    %cst_61 = arith.constant 0.000000e+00 : f32
    %116 = vector.broadcast %cst_61 : f32 to vector<7x224xf32>
    %117 = arith.cmpf oge, %115, %116 : vector<7x224xf32>
    %cst_62 = arith.constant 2.000000e-01 : f32
    %118 = vector.broadcast %cst_62 : f32 to vector<7x224xf32>
    %119 = arith.mulf %118, %115 : vector<7x224xf32>
    %120 = arith.select %117, %115, %119 : vector<7x224xi1>, vector<7x224xf32>
    %c0_63 = arith.constant 0 : index
    %c0_64 = arith.constant 0 : index
    %121 = vector.load %arg8[%c0_63, %c0_64] : memref<1x224xf32, #tpu.memory_space<vmem>>, vector<1x224xf32>
    %122 = vector.broadcast %121 : vector<1x224xf32> to vector<7x224xf32>
    %123 = arith.mulf %120, %122 : vector<7x224xf32>
    %c0_65 = arith.constant 0 : index
    %c0_66 = arith.constant 0 : index
    %124 = vector.load %arg9[%c0_65, %c0_66] : memref<1x224xf32, #tpu.memory_space<vmem>>, vector<1x224xf32>
    %125 = vector.broadcast %124 : vector<1x224xf32> to vector<7x224xf32>
    %126 = arith.addf %123, %125 : vector<7x224xf32>
    %127 = arith.truncf %126 : vector<7x224xf32> to vector<7x224xbf16>
    %128 = tpu.iota {dimensions = array<i32: 0>} : vector<4x7xi32>
    %129 = tpu.iota {dimensions = array<i32: 1>} : vector<4x7xi32>
    %cst_67 = arith.constant 0.000000e+00 : f32
    %130 = vector.broadcast %cst_67 : f32 to vector<4x256xf32>
    %c2_i32_68 = arith.constant 2 : i32
    %131 = vector.broadcast %c2_i32_68 : i32 to vector<4x7xi32>
    %132 = arith.muli %131, %128 : vector<4x7xi32>
    %c-1_i32_69 = arith.constant -1 : i32
    %133 = vector.broadcast %c-1_i32_69 : i32 to vector<4x7xi32>
    %134 = arith.addi %132, %133 : vector<4x7xi32>
    %135 = arith.cmpi eq, %129, %134 : vector<4x7xi32>
    %cst_70 = arith.constant 1.000000e+00 : f32
    %cst_71 = arith.constant 0.000000e+00 : f32
    %136 = vector.broadcast %cst_70 : f32 to vector<4x7xf32>
    %137 = vector.broadcast %cst_71 : f32 to vector<4x7xf32>
    %138 = arith.select %135, %136, %137 : vector<4x7xi1>, vector<4x7xf32>
    %139 = arith.truncf %138 : vector<4x7xf32> to vector<4x7xbf16>
    %cst_72 = arith.constant dense<0.000000e+00> : vector<4x224xf32>
    %140 = tpu.matmul %139, %127, %cst_72 {dimension_numbers = #tpu.dot_dimension_numbers<[1], [0], [0], [1], [0, 0, 1, 1], [], []>} : vector<4x7xbf16>, vector<7x224xbf16>, vector<4x224xf32> -> vector<4x224xf32>
    %141 = arith.truncf %140 : vector<4x224xf32> to vector<4x224xbf16>
    %c0_73 = arith.constant 0 : index
    %c0_74 = arith.constant 0 : index
    %c0_75 = arith.constant 0 : index
    %142 = vector.load %arg10[%c0_73, %c0_74, %c0_75] : memref<3x224x256xbf16, #tpu.memory_space<vmem>>, vector<1x224x256xbf16>
    %143 = vector.shape_cast %142 : vector<1x224x256xbf16> to vector<224x256xbf16>
    %cst_76 = arith.constant dense<0.000000e+00> : vector<4x256xf32>
    %144 = tpu.matmul %141, %143, %cst_76 {dimension_numbers = #tpu.dot_dimension_numbers<[1], [0], [0], [1], [0, 0, 1, 1], [], []>} : vector<4x224xbf16>, vector<224x256xbf16>, vector<4x256xf32> -> vector<4x256xf32>
    %145 = arith.addf %130, %144 : vector<4x256xf32>
    %c2_i32_77 = arith.constant 2 : i32
    %146 = vector.broadcast %c2_i32_77 : i32 to vector<4x7xi32>
    %147 = arith.muli %146, %128 : vector<4x7xi32>
    %c0_i32_78 = arith.constant 0 : i32
    %148 = vector.broadcast %c0_i32_78 : i32 to vector<4x7xi32>
    %149 = arith.addi %147, %148 : vector<4x7xi32>
    %150 = arith.cmpi eq, %129, %149 : vector<4x7xi32>
    %cst_79 = arith.constant 1.000000e+00 : f32
    %cst_80 = arith.constant 0.000000e+00 : f32
    %151 = vector.broadcast %cst_79 : f32 to vector<4x7xf32>
    %152 = vector.broadcast %cst_80 : f32 to vector<4x7xf32>
    %153 = arith.select %150, %151, %152 : vector<4x7xi1>, vector<4x7xf32>
    %154 = arith.truncf %153 : vector<4x7xf32> to vector<4x7xbf16>
    %cst_81 = arith.constant dense<0.000000e+00> : vector<4x224xf32>
    %155 = tpu.matmul %154, %127, %cst_81 {dimension_numbers = #tpu.dot_dimension_numbers<[1], [0], [0], [1], [0, 0, 1, 1], [], []>} : vector<4x7xbf16>, vector<7x224xbf16>, vector<4x224xf32> -> vector<4x224xf32>
    %156 = arith.truncf %155 : vector<4x224xf32> to vector<4x224xbf16>
    %c1_82 = arith.constant 1 : index
    %c0_83 = arith.constant 0 : index
    %c0_84 = arith.constant 0 : index
    %157 = vector.load %arg10[%c1_82, %c0_83, %c0_84] : memref<3x224x256xbf16, #tpu.memory_space<vmem>>, vector<1x224x256xbf16>
    %158 = vector.shape_cast %157 : vector<1x224x256xbf16> to vector<224x256xbf16>
    %cst_85 = arith.constant dense<0.000000e+00> : vector<4x256xf32>
    %159 = tpu.matmul %156, %158, %cst_85 {dimension_numbers = #tpu.dot_dimension_numbers<[1], [0], [0], [1], [0, 0, 1, 1], [], []>} : vector<4x224xbf16>, vector<224x256xbf16>, vector<4x256xf32> -> vector<4x256xf32>
    %160 = arith.addf %145, %159 : vector<4x256xf32>
    %c2_i32_86 = arith.constant 2 : i32
    %161 = vector.broadcast %c2_i32_86 : i32 to vector<4x7xi32>
    %162 = arith.muli %161, %128 : vector<4x7xi32>
    %c1_i32_87 = arith.constant 1 : i32
    %163 = vector.broadcast %c1_i32_87 : i32 to vector<4x7xi32>
    %164 = arith.addi %162, %163 : vector<4x7xi32>
    %165 = arith.cmpi eq, %129, %164 : vector<4x7xi32>
    %cst_88 = arith.constant 1.000000e+00 : f32
    %cst_89 = arith.constant 0.000000e+00 : f32
    %166 = vector.broadcast %cst_88 : f32 to vector<4x7xf32>
    %167 = vector.broadcast %cst_89 : f32 to vector<4x7xf32>
    %168 = arith.select %165, %166, %167 : vector<4x7xi1>, vector<4x7xf32>
    %169 = arith.truncf %168 : vector<4x7xf32> to vector<4x7xbf16>
    %cst_90 = arith.constant dense<0.000000e+00> : vector<4x224xf32>
    %170 = tpu.matmul %169, %127, %cst_90 {dimension_numbers = #tpu.dot_dimension_numbers<[1], [0], [0], [1], [0, 0, 1, 1], [], []>} : vector<4x7xbf16>, vector<7x224xbf16>, vector<4x224xf32> -> vector<4x224xf32>
    %171 = arith.truncf %170 : vector<4x224xf32> to vector<4x224xbf16>
    %c2_91 = arith.constant 2 : index
    %c0_92 = arith.constant 0 : index
    %c0_93 = arith.constant 0 : index
    %172 = vector.load %arg10[%c2_91, %c0_92, %c0_93] : memref<3x224x256xbf16, #tpu.memory_space<vmem>>, vector<1x224x256xbf16>
    %173 = vector.shape_cast %172 : vector<1x224x256xbf16> to vector<224x256xbf16>
    %cst_94 = arith.constant dense<0.000000e+00> : vector<4x256xf32>
    %174 = tpu.matmul %171, %173, %cst_94 {dimension_numbers = #tpu.dot_dimension_numbers<[1], [0], [0], [1], [0, 0, 1, 1], [], []>} : vector<4x224xbf16>, vector<224x256xbf16>, vector<4x256xf32> -> vector<4x256xf32>
    %175 = arith.addf %160, %174 : vector<4x256xf32>
    %c0_95 = arith.constant 0 : index
    %c0_96 = arith.constant 0 : index
    %176 = vector.load %arg11[%c0_95, %c0_96] : memref<1x256xf32, #tpu.memory_space<vmem>>, vector<1x256xf32>
    %177 = vector.broadcast %176 : vector<1x256xf32> to vector<4x256xf32>
    %178 = arith.addf %175, %177 : vector<4x256xf32>
    %cst_97 = arith.constant 0.000000e+00 : f32
    %179 = vector.broadcast %cst_97 : f32 to vector<4x256xf32>
    %180 = arith.cmpf oge, %178, %179 : vector<4x256xf32>
    %cst_98 = arith.constant 2.000000e-01 : f32
    %181 = vector.broadcast %cst_98 : f32 to vector<4x256xf32>
    %182 = arith.mulf %181, %178 : vector<4x256xf32>
    %183 = arith.select %180, %178, %182 : vector<4x256xi1>, vector<4x256xf32>
    %c0_99 = arith.constant 0 : index
    %c0_100 = arith.constant 0 : index
    %184 = vector.load %arg12[%c0_99, %c0_100] : memref<1x256xf32, #tpu.memory_space<vmem>>, vector<1x256xf32>
    %185 = vector.broadcast %184 : vector<1x256xf32> to vector<4x256xf32>
    %186 = arith.mulf %183, %185 : vector<4x256xf32>
    %c0_101 = arith.constant 0 : index
    %c0_102 = arith.constant 0 : index
    %187 = vector.load %arg13[%c0_101, %c0_102] : memref<1x256xf32, #tpu.memory_space<vmem>>, vector<1x256xf32>
    %188 = vector.broadcast %187 : vector<1x256xf32> to vector<4x256xf32>
    %189 = arith.addf %186, %188 : vector<4x256xf32>
    %190 = arith.truncf %189 : vector<4x256xf32> to vector<4x256xbf16>
    %191 = tpu.iota {dimensions = array<i32: 0>} : vector<2x4xi32>
    %192 = tpu.iota {dimensions = array<i32: 1>} : vector<2x4xi32>
    %cst_103 = arith.constant 0.000000e+00 : f32
    %193 = vector.broadcast %cst_103 : f32 to vector<2x256xf32>
    %c2_i32_104 = arith.constant 2 : i32
    %194 = vector.broadcast %c2_i32_104 : i32 to vector<2x4xi32>
    %195 = arith.muli %194, %191 : vector<2x4xi32>
    %c-1_i32_105 = arith.constant -1 : i32
    %196 = vector.broadcast %c-1_i32_105 : i32 to vector<2x4xi32>
    %197 = arith.addi %195, %196 : vector<2x4xi32>
    %198 = arith.cmpi eq, %192, %197 : vector<2x4xi32>
    %cst_106 = arith.constant 1.000000e+00 : f32
    %cst_107 = arith.constant 0.000000e+00 : f32
    %199 = vector.broadcast %cst_106 : f32 to vector<2x4xf32>
    %200 = vector.broadcast %cst_107 : f32 to vector<2x4xf32>
    %201 = arith.select %198, %199, %200 : vector<2x4xi1>, vector<2x4xf32>
    %202 = arith.truncf %201 : vector<2x4xf32> to vector<2x4xbf16>
    %cst_108 = arith.constant dense<0.000000e+00> : vector<2x256xf32>
    %203 = tpu.matmul %202, %190, %cst_108 {dimension_numbers = #tpu.dot_dimension_numbers<[1], [0], [0], [1], [0, 0, 1, 1], [], []>} : vector<2x4xbf16>, vector<4x256xbf16>, vector<2x256xf32> -> vector<2x256xf32>
    %204 = arith.truncf %203 : vector<2x256xf32> to vector<2x256xbf16>
    %c0_109 = arith.constant 0 : index
    %c0_110 = arith.constant 0 : index
    %c0_111 = arith.constant 0 : index
    %205 = vector.load %arg14[%c0_109, %c0_110, %c0_111] : memref<3x256x256xbf16, #tpu.memory_space<vmem>>, vector<1x256x256xbf16>
    %206 = vector.shape_cast %205 : vector<1x256x256xbf16> to vector<256x256xbf16>
    %cst_112 = arith.constant dense<0.000000e+00> : vector<2x256xf32>
    %207 = tpu.matmul %204, %206, %cst_112 {dimension_numbers = #tpu.dot_dimension_numbers<[1], [0], [0], [1], [0, 0, 1, 1], [], []>} : vector<2x256xbf16>, vector<256x256xbf16>, vector<2x256xf32> -> vector<2x256xf32>
    %208 = arith.addf %193, %207 : vector<2x256xf32>
    %c2_i32_113 = arith.constant 2 : i32
    %209 = vector.broadcast %c2_i32_113 : i32 to vector<2x4xi32>
    %210 = arith.muli %209, %191 : vector<2x4xi32>
    %c0_i32_114 = arith.constant 0 : i32
    %211 = vector.broadcast %c0_i32_114 : i32 to vector<2x4xi32>
    %212 = arith.addi %210, %211 : vector<2x4xi32>
    %213 = arith.cmpi eq, %192, %212 : vector<2x4xi32>
    %cst_115 = arith.constant 1.000000e+00 : f32
    %cst_116 = arith.constant 0.000000e+00 : f32
    %214 = vector.broadcast %cst_115 : f32 to vector<2x4xf32>
    %215 = vector.broadcast %cst_116 : f32 to vector<2x4xf32>
    %216 = arith.select %213, %214, %215 : vector<2x4xi1>, vector<2x4xf32>
    %217 = arith.truncf %216 : vector<2x4xf32> to vector<2x4xbf16>
    %cst_117 = arith.constant dense<0.000000e+00> : vector<2x256xf32>
    %218 = tpu.matmul %217, %190, %cst_117 {dimension_numbers = #tpu.dot_dimension_numbers<[1], [0], [0], [1], [0, 0, 1, 1], [], []>} : vector<2x4xbf16>, vector<4x256xbf16>, vector<2x256xf32> -> vector<2x256xf32>
    %219 = arith.truncf %218 : vector<2x256xf32> to vector<2x256xbf16>
    %c1_118 = arith.constant 1 : index
    %c0_119 = arith.constant 0 : index
    %c0_120 = arith.constant 0 : index
    %220 = vector.load %arg14[%c1_118, %c0_119, %c0_120] : memref<3x256x256xbf16, #tpu.memory_space<vmem>>, vector<1x256x256xbf16>
    %221 = vector.shape_cast %220 : vector<1x256x256xbf16> to vector<256x256xbf16>
    %cst_121 = arith.constant dense<0.000000e+00> : vector<2x256xf32>
    %222 = tpu.matmul %219, %221, %cst_121 {dimension_numbers = #tpu.dot_dimension_numbers<[1], [0], [0], [1], [0, 0, 1, 1], [], []>} : vector<2x256xbf16>, vector<256x256xbf16>, vector<2x256xf32> -> vector<2x256xf32>
    %223 = arith.addf %208, %222 : vector<2x256xf32>
    %c2_i32_122 = arith.constant 2 : i32
    %224 = vector.broadcast %c2_i32_122 : i32 to vector<2x4xi32>
    %225 = arith.muli %224, %191 : vector<2x4xi32>
    %c1_i32_123 = arith.constant 1 : i32
    %226 = vector.broadcast %c1_i32_123 : i32 to vector<2x4xi32>
    %227 = arith.addi %225, %226 : vector<2x4xi32>
    %228 = arith.cmpi eq, %192, %227 : vector<2x4xi32>
    %cst_124 = arith.constant 1.000000e+00 : f32
    %cst_125 = arith.constant 0.000000e+00 : f32
    %229 = vector.broadcast %cst_124 : f32 to vector<2x4xf32>
    %230 = vector.broadcast %cst_125 : f32 to vector<2x4xf32>
    %231 = arith.select %228, %229, %230 : vector<2x4xi1>, vector<2x4xf32>
    %232 = arith.truncf %231 : vector<2x4xf32> to vector<2x4xbf16>
    %cst_126 = arith.constant dense<0.000000e+00> : vector<2x256xf32>
    %233 = tpu.matmul %232, %190, %cst_126 {dimension_numbers = #tpu.dot_dimension_numbers<[1], [0], [0], [1], [0, 0, 1, 1], [], []>} : vector<2x4xbf16>, vector<4x256xbf16>, vector<2x256xf32> -> vector<2x256xf32>
    %234 = arith.truncf %233 : vector<2x256xf32> to vector<2x256xbf16>
    %c2_127 = arith.constant 2 : index
    %c0_128 = arith.constant 0 : index
    %c0_129 = arith.constant 0 : index
    %235 = vector.load %arg14[%c2_127, %c0_128, %c0_129] : memref<3x256x256xbf16, #tpu.memory_space<vmem>>, vector<1x256x256xbf16>
    %236 = vector.shape_cast %235 : vector<1x256x256xbf16> to vector<256x256xbf16>
    %cst_130 = arith.constant dense<0.000000e+00> : vector<2x256xf32>
    %237 = tpu.matmul %234, %236, %cst_130 {dimension_numbers = #tpu.dot_dimension_numbers<[1], [0], [0], [1], [0, 0, 1, 1], [], []>} : vector<2x256xbf16>, vector<256x256xbf16>, vector<2x256xf32> -> vector<2x256xf32>
    %238 = arith.addf %223, %237 : vector<2x256xf32>
    %c0_131 = arith.constant 0 : index
    %c0_132 = arith.constant 0 : index
    %239 = vector.load %arg15[%c0_131, %c0_132] : memref<1x256xf32, #tpu.memory_space<vmem>>, vector<1x256xf32>
    %240 = vector.broadcast %239 : vector<1x256xf32> to vector<2x256xf32>
    %241 = arith.addf %238, %240 : vector<2x256xf32>
    %cst_133 = arith.constant 0.000000e+00 : f32
    %242 = vector.broadcast %cst_133 : f32 to vector<2x256xf32>
    %243 = arith.cmpf oge, %241, %242 : vector<2x256xf32>
    %cst_134 = arith.constant 2.000000e-01 : f32
    %244 = vector.broadcast %cst_134 : f32 to vector<2x256xf32>
    %245 = arith.mulf %244, %241 : vector<2x256xf32>
    %246 = arith.select %243, %241, %245 : vector<2x256xi1>, vector<2x256xf32>
    %c0_135 = arith.constant 0 : index
    %c0_136 = arith.constant 0 : index
    %247 = vector.load %arg16[%c0_135, %c0_136] : memref<1x256xf32, #tpu.memory_space<vmem>>, vector<1x256xf32>
    %248 = vector.broadcast %247 : vector<1x256xf32> to vector<2x256xf32>
    %249 = arith.mulf %246, %248 : vector<2x256xf32>
    %c0_137 = arith.constant 0 : index
    %c0_138 = arith.constant 0 : index
    %250 = vector.load %arg17[%c0_137, %c0_138] : memref<1x256xf32, #tpu.memory_space<vmem>>, vector<1x256xf32>
    %251 = vector.broadcast %250 : vector<1x256xf32> to vector<2x256xf32>
    %252 = arith.addf %249, %251 : vector<2x256xf32>
    %c0_139 = arith.constant 0 : index
    %c0_140 = arith.constant 0 : index
    %253 = vector.load %arg18[%c0_139, %c0_140] : memref<2x256xf32, #tpu.memory_space<vmem>>, vector<2x256xf32>
    %254 = arith.mulf %252, %253 : vector<2x256xf32>
    %cst_141 = arith.constant dense<0.000000e+00> : vector<2xf32>
    %255 = vector.multi_reduction <add>, %254, %cst_141 [1] : vector<2x256xf32> to vector<2xf32>
    %256 = vector.shape_cast %255 : vector<2xf32> to vector<2x1xf32>
    %cst_142 = arith.constant dense<0.000000e+00> : vector<1xf32>
    %257 = vector.multi_reduction <add>, %256, %cst_142 [0] : vector<2x1xf32> to vector<1xf32>
    %258 = vector.shape_cast %257 : vector<1xf32> to vector<1x1xf32>
    %c0_143 = arith.constant 0 : index
    %c0_144 = arith.constant 0 : index
    %259 = vector.load %arg19[%c0_143, %c0_144] : memref<1x1xf32, #tpu.memory_space<vmem>>, vector<1x1xf32>
    %260 = arith.addf %258, %259 : vector<1x1xf32>
    %261 = math.absf %260 : vector<1x1xf32>
    %cst_145 = arith.constant 0.000000e+00 : f32
    %262 = vector.broadcast %cst_145 : f32 to vector<1x1xf32>
    %263 = arith.subf %262, %261 : vector<1x1xf32>
    %264 = math.exp %263 : vector<1x1xf32>
    %cst_146 = arith.constant 0.000000e+00 : f32
    %265 = vector.broadcast %cst_146 : f32 to vector<1x1xf32>
    %266 = arith.cmpf oge, %260, %265 : vector<1x1xf32>
    %cst_147 = arith.constant 1.000000e+00 : f32
    %267 = vector.broadcast %cst_147 : f32 to vector<1x1xf32>
    %268 = arith.addf %267, %264 : vector<1x1xf32>
    %cst_148 = arith.constant 1.000000e+00 : f32
    %269 = vector.broadcast %cst_148 : f32 to vector<1x1xf32>
    %270 = arith.divf %269, %268 : vector<1x1xf32>
    %cst_149 = arith.constant 1.000000e+00 : f32
    %271 = vector.broadcast %cst_149 : f32 to vector<1x1xf32>
    %272 = arith.addf %271, %264 : vector<1x1xf32>
    %273 = arith.divf %264, %272 : vector<1x1xf32>
    %274 = arith.select %266, %270, %273 : vector<1x1xi1>, vector<1x1xf32>
    %275 = vector.shape_cast %274 : vector<1x1xf32> to vector<1x1x1xf32>
    %276 = vector.broadcast %275 : vector<1x1x1xf32> to vector<1x1x128xf32>
    %c0_150 = arith.constant 0 : index
    %c0_151 = arith.constant 0 : index
    %c0_152 = arith.constant 0 : index
    %277 = vector.load %arg20[%c0_150, %c0_151, %c0_152] : memref<1x1x128xf32, #tpu.memory_space<vmem>>, vector<1x1x128xf32>
    tpu.vector_store %arg20[%c0_150, %c0_151, %c0_152], %276 {strides = array<i32>} : memref<1x1x128xf32, #tpu.memory_space<vmem>>, vector<1x1x128xf32>,
    return
  }
  func.func @transform_0(%arg0: i32) -> (i32, i32, i32) {
    %c0_i32 = arith.constant 0 : i32
    %c0_i32_0 = arith.constant 0 : i32
    %c0_i32_1 = arith.constant 0 : i32
    return %arg0, %c0_i32, %c0_i32_0 : i32, i32, i32
  }
  func.func @transform_1(%arg0: i32) -> (i32, i32, i32) {
    %c0_i32 = arith.constant 0 : i32
    %c0_i32_0 = arith.constant 0 : i32
    %c0_i32_1 = arith.constant 0 : i32
    %c0_i32_2 = arith.constant 0 : i32
    return %c0_i32, %c0_i32_0, %c0_i32_1 : i32, i32, i32
  }
  func.func @transform_2(%arg0: i32) -> (i32, i32) {
    %c0_i32 = arith.constant 0 : i32
    %c0_i32_0 = arith.constant 0 : i32
    %c0_i32_1 = arith.constant 0 : i32
    return %c0_i32, %c0_i32_0 : i32, i32
  }
  func.func @transform_3(%arg0: i32) -> (i32, i32) {
    %c0_i32 = arith.constant 0 : i32
    %c0_i32_0 = arith.constant 0 : i32
    %c0_i32_1 = arith.constant 0 : i32
    return %c0_i32, %c0_i32_0 : i32, i32
  }
  func.func @transform_4(%arg0: i32) -> (i32, i32) {
    %c0_i32 = arith.constant 0 : i32
    %c0_i32_0 = arith.constant 0 : i32
    %c0_i32_1 = arith.constant 0 : i32
    return %c0_i32, %c0_i32_0 : i32, i32
  }
  func.func @transform_5(%arg0: i32) -> (i32, i32, i32) {
    %c0_i32 = arith.constant 0 : i32
    %c0_i32_0 = arith.constant 0 : i32
    %c0_i32_1 = arith.constant 0 : i32
    %c0_i32_2 = arith.constant 0 : i32
    return %c0_i32, %c0_i32_0, %c0_i32_1 : i32, i32, i32
  }
  func.func @transform_6(%arg0: i32) -> (i32, i32) {
    %c0_i32 = arith.constant 0 : i32
    %c0_i32_0 = arith.constant 0 : i32
    %c0_i32_1 = arith.constant 0 : i32
    return %c0_i32, %c0_i32_0 : i32, i32
  }
  func.func @transform_7(%arg0: i32) -> (i32, i32) {
    %c0_i32 = arith.constant 0 : i32
    %c0_i32_0 = arith.constant 0 : i32
    %c0_i32_1 = arith.constant 0 : i32
    return %c0_i32, %c0_i32_0 : i32, i32
  }
  func.func @transform_8(%arg0: i32) -> (i32, i32) {
    %c0_i32 = arith.constant 0 : i32
    %c0_i32_0 = arith.constant 0 : i32
    %c0_i32_1 = arith.constant 0 : i32
    return %c0_i32, %c0_i32_0 : i32, i32
  }
  func.func @transform_9(%arg0: i32) -> (i32, i32, i32) {
    %c0_i32 = arith.constant 0 : i32
    %c0_i32_0 = arith.constant 0 : i32
    %c0_i32_1 = arith.constant 0 : i32
    %c0_i32_2 = arith.constant 0 : i32
    return %c0_i32, %c0_i32_0, %c0_i32_1 : i32, i32, i32
  }
  func.func @transform_10(%arg0: i32) -> (i32, i32) {
    %c0_i32 = arith.constant 0 : i32
    %c0_i32_0 = arith.constant 0 : i32
    %c0_i32_1 = arith.constant 0 : i32
    return %c0_i32, %c0_i32_0 : i32, i32
  }
  func.func @transform_11(%arg0: i32) -> (i32, i32) {
    %c0_i32 = arith.constant 0 : i32
    %c0_i32_0 = arith.constant 0 : i32
    %c0_i32_1 = arith.constant 0 : i32
    return %c0_i32, %c0_i32_0 : i32, i32
  }
  func.func @transform_12(%arg0: i32) -> (i32, i32) {
    %c0_i32 = arith.constant 0 : i32
    %c0_i32_0 = arith.constant 0 : i32
    %c0_i32_1 = arith.constant 0 : i32
    return %c0_i32, %c0_i32_0 : i32, i32
  }
  func.func @transform_13(%arg0: i32) -> (i32, i32, i32) {
    %c0_i32 = arith.constant 0 : i32
    %c0_i32_0 = arith.constant 0 : i32
    %c0_i32_1 = arith.constant 0 : i32
    %c0_i32_2 = arith.constant 0 : i32
    return %c0_i32, %c0_i32_0, %c0_i32_1 : i32, i32, i32
  }
  func.func @transform_14(%arg0: i32) -> (i32, i32) {
    %c0_i32 = arith.constant 0 : i32
    %c0_i32_0 = arith.constant 0 : i32
    %c0_i32_1 = arith.constant 0 : i32
    return %c0_i32, %c0_i32_0 : i32, i32
  }
  func.func @transform_15(%arg0: i32) -> (i32, i32) {
    %c0_i32 = arith.constant 0 : i32
    %c0_i32_0 = arith.constant 0 : i32
    %c0_i32_1 = arith.constant 0 : i32
    return %c0_i32, %c0_i32_0 : i32, i32
  }
  func.func @transform_16(%arg0: i32) -> (i32, i32) {
    %c0_i32 = arith.constant 0 : i32
    %c0_i32_0 = arith.constant 0 : i32
    %c0_i32_1 = arith.constant 0 : i32
    return %c0_i32, %c0_i32_0 : i32, i32
  }
  func.func @transform_17(%arg0: i32) -> (i32, i32) {
    %c0_i32 = arith.constant 0 : i32
    %c0_i32_0 = arith.constant 0 : i32
    %c0_i32_1 = arith.constant 0 : i32
    return %c0_i32, %c0_i32_0 : i32, i32
  }
  func.func @transform_18(%arg0: i32) -> (i32, i32) {
    %c0_i32 = arith.constant 0 : i32
    %c0_i32_0 = arith.constant 0 : i32
    %c0_i32_1 = arith.constant 0 : i32
    return %c0_i32, %c0_i32_0 : i32, i32
  }
  func.func @transform_19(%arg0: i32) -> (i32, i32, i32) {
    %c0_i32 = arith.constant 0 : i32
    %c0_i32_0 = arith.constant 0 : i32
    %c0_i32_1 = arith.constant 0 : i32
    return %arg0, %c0_i32, %c0_i32_0 : i32, i32, i32
  }
}

</mosaic_0001>

<bundles_post_ra>
// kernel: discriminator_forward.1
= control target key start
LH: loop header
LB: loop body
LE: loop exit
PB: predicated region body
PF: predicated region fallthrough
CT: control target
= control target key end

     0   :  { %s5632_s0 = inlined_call_operand.vmem [shape: bf16[2,28,28], index: 0, kind: input, shape index: {}]   ;;  %s5633_s1 = inlined_call_operand.hbm [shape: bf16[3,28,224], index: 1, kind: input, shape index: {}]   ;;  %s5634_s2 = inlined_call_operand.vmem [shape: f32[1,224], index: 2, kind: input, shape index: {}]   ;;  %s5635_s3 = inlined_call_operand.vmem [shape: f32[1,224], index: 3, kind: input, shape index: {}]   ;;  %s5636_s4 = inlined_call_operand.vmem [shape: f32[1,224], index: 4, kind: input, shape index: {}]   ;;  %s5637_s5 = inlined_call_operand.hbm [shape: bf16[3,224,224], index: 5, kind: input, shape index: {}]   ;;  %s5638_s6 = inlined_call_operand.vmem [shape: f32[1,224], index: 6, kind: input, shape index: {}]   ;;  %s5639_s7 = inlined_call_operand.vmem [shape: f32[1,224], index: 7, kind: input, shape index: {}]   ;;  %s5640_s8 = inlined_call_operand.vmem [shape: f32[1,224], index: 8, kind: input, shape index: {}]   ;;  %s5641_s9 = inlined_call_operand.hbm [shape: bf16[3,224,256], index: 9, kind: input, shape index: {}]   ;;  %s5642_s10 = inlined_call_operand.vmem [shape: f32[1,256], index: 10, kind: input, shape index: {}]   ;;  %s5643_s11 = inlined_call_operand.vmem [shape: f32[1,256], index: 11, kind: input, shape index: {}]   ;;  %s5644_s12 = inlined_call_operand.vmem [shape: f32[1,256], index: 12, kind: input, shape index: {}]   ;;  %s5645_s13 = inlined_call_operand.hbm [shape: bf16[3,256,256], index: 13, kind: input, shape index: {}]   ;;  %s5646_s14 = inlined_call_operand.vmem [shape: f32[1,256], index: 14, kind: input, shape index: {}]   ;;  %s5647_s15 = inlined_call_operand.vmem [shape: f32[1,256], index: 15, kind: input, shape index: {}]   ;;  %s5648_s16 = inlined_call_operand.vmem [shape: f32[1,256], index: 16, kind: input, shape index: {}]   ;;  %s5649_s17 = inlined_call_operand.vmem [shape: f32[2,256], index: 17, kind: input, shape index: {}]   ;;  %s5650_s18 = inlined_call_operand.<no memory space> [shape: f32[1,1], index: 18, kind: input, shape index: {}]   ;;  %s5651_s19 = inlined_call_operand.vmem [shape: f32[2,1,128], index: 19, kind: output, shape index: {}]  }
   0x1   :  { %5653 = sst [smem:[#allocation14_spill]] %s5632_s0  ;;  %v24_v0 = vstv %s5650_s18 }
   0x2   :  { %5654 = sst [smem:[#allocation15_spill]] %s5633_s1  ;;  %25 = vst [vmem:[#allocation2] sm:$0x1] %v24_v0 }
   0x3   :  { %5655 = sst [smem:[#allocation16_spill]] %s5634_s2 }
   0x4   :  { %5656 = sst [smem:[#allocation17_spill]] %s5635_s3 }
   0x5   :  { %5657 = sst [smem:[#allocation18_spill]] %s5637_s5 }
   0x6   :  { %5658 = sst [smem:[#allocation19_spill]] %s5651_s19 }
   0x7   :  { %26 = vsyncpa [#allocation4], 0 }
   0x8   :  { %27 = vsyncpa [#allocation6], 0 }
   0x9   :  { %28 = vsyncpa [#allocation9], 0  ;;  %s5375_s20 = smov 0  }
   0xa LB: > { %5659 = sst [smem:[#allocation13_spill]] %s5261_s20  ;;  %s5381_s21 = sadd.s32 4294967295, %s5261_s20   ;;  %s5261_s20 = sphi %s5375_s20, %s34_s20  }
   0xb   : > { %p3619_p0 = scmp.ge.s32.totalorder %s5261_s20, 1  ;;  %p469_p1 = scmp.lt.s32.totalorder %s5261_s20, 3 }
   0xc   : > { %p5093_p2 = scmp.eq.s32.totalorder %s5381_s21, 0  ;;  %s5660_s5 = sld [smem:[#allocation18_spill]] }
   0xd   : > { %p5389_p3 = pnand %p3619_p0, %p469_p1  ;;  %s5662_s25 = sld [smem:[#allocation15_spill]] }
   0xe   : > { %s5263_s26 = smov [#allocation5]   ;;  %s5264_s29 = smov [#allocation3]  }
   0xf   : > { %p5080_p4 = pneg %p5389_p3  ;;  %s505_s27 = sshll.u32 %s5263_s26, 4  ;;  %s506_s27 = int_to_ptr.vmem [resolvable:$true] %s505_s27 }
  0x10   : > { %s482_s0 = sshll.u32 %s5264_s29, 4  ;;  %s526_s1 = sshll.u32 %s5641_s9, 4  ;;  %s483_s0 = int_to_ptr.vmem [resolvable:$true] %s482_s0  ;;  %s527_s1 = int_to_ptr.hbm [resolvable:$true] %s526_s1 }
  0x11   : > { %p5400_p5 = pnand %p5093_p2, %p5080_p4  ;;  %s5265_s23 = smov 128  }
  0x12   : > { %s503_s22 = sshll.u32 %s5660_s5, 4  ;;  %s5266_s24 = smov 8   ;;  %s504_s22 = int_to_ptr.hbm [resolvable:$true] %s503_s22 }
  0x13   : > { %s480_s3 = sshll.u32 %s5662_s25, 4  ;;  %s5267_s25 = smov [#allocation7]   ;;  %s481_s3 = int_to_ptr.hbm [resolvable:$true] %s480_s3 }
  0x14   : > { %5086 = dma.hbm_to_vmem [thread:$0]  (!%p5400_p5), %s504_s22, 10752, %s506_s27, [#allocation6], %s5265_s23, %s5265_s23, %s5266_s24  }
  0x15   : > { %5083 = dma.hbm_to_vmem [thread:$0]  (!%p5400_p5), %s481_s3, 1536, %s483_s0, [#allocation4], %s5265_s23, %s5265_s23, %s5266_s24  }
  0x16   : > { %s528_s26 = sshll.u32 %s5267_s25, 4  ;;  %s549_s19 = sshll.u32 %s5645_s13, 4  ;;  %s529_s26 = int_to_ptr.vmem [resolvable:$true] %s528_s26  ;;  %s550_s19 = int_to_ptr.hbm [resolvable:$true] %s549_s19 }
  0x17   : > { %5089 = dma.hbm_to_vmem [thread:$0]  (!%p5400_p5), %s527_s1, 10752, %s529_s26, [#allocation6], %s5265_s23, %s5265_s23, %s5266_s24  }
  0x18   : > { %s5268_s29 = smov [#allocation8]   ;;  %590 = sbr.rel (%p5389_p3) target bundleno = 2130 (0x852), region = 96 }
  0x19   : > { %s551_s30 = sshll.u32 %s5268_s29, 4  ;;  %s552_s30 = int_to_ptr.vmem [resolvable:$true] %s551_s30 }
  0x1a   : > { %5092 = dma.hbm_to_vmem [thread:$0]  (!%p5400_p5), %s550_s19, 12288, %s552_s30, [#allocation9], %s5265_s23, %s5265_s23, %s5266_s24  }
  0x1d   : > { %5248 = dma.done.wait (%p5093_p2), [#allocation4], 1536  }
  0x1e   : > { %5250 = vsyncadd (%p5093_p2), [#allocation4], 4294965760 }
  0x1f   : > { %5252 = dma.done.wait (%p5093_p2), [#allocation6], 21504  }
  0x20   : > { %5254 = vsyncadd (%p5093_p2), [#allocation6], 4294945792 }
  0x21   : > { %5256 = dma.done.wait (%p5093_p2), [#allocation9], 12288  }
  0x22   : > { %5258 = vsyncadd (%p5093_p2), [#allocation9], 4294955008  ;;  %p660_p6 = scmp.lt.s32.totalorder %s5381_s21, 1  ;;  %v673_v1 = vlaneseq  ;;  %s5664_s22 = sld [smem:[#allocation14_spill]]  ;;  %vm702_vm0 = vcmask 1045504   ;;  %v5269_v14 = vmov 0.0  }
  0x23   : > { %vm698_vm5 = vcmask 228352   ;;  %v3652_v21 = vld [vmem:[#allocation3 + $0x30] sm:$0xf]  ;;  %v4795_v22 = vld [vmem:[#allocation3 + $0x34] sm:$0x30]  ;;  %s5665_s28 = sld [smem:[#allocation16_spill]] }
  0x24   : > { %s5670_s21 = smov (!%p660_p6, %s5381_s21), 1  ;;  %v674_v2 = vshrl.u32 %v673_v1, 7  ;;  %v5437_v4 = vand.u32 127, %v673_v1  ;;  %v4794_v23 = vld [vmem:[#allocation3 + $0x34] sm:$0xf]  ;;  %v3653_v24 = vor.u32 %v4795_v22, %v3652_v21  ;;  %s5666_s1 = sld [smem:[#allocation17_spill]] }
  0x25   : > { %s4785_s5 = sshll.u32 %s5670_s21, 4  ;;  %v3654_v25 = vld [vmem:[#allocation3 + $0x38] sm:$0x30]  ;;  %v3644_v29 = vld [vmem:[#allocation3 + $0x20] sm:$0xf]  ;;  %vm1001_vm12 = vcmask 1046528  }
  0x26   : > { %v675_v3 = vadd.s32 8, %v674_v2  ;;  %v5439_v5 = vmul.u32 2, %v674_v2  ;;  %v3657_v26 = vor.u32 %v4794_v23, %v3654_v25  ;;  %v775_v27 = vsel %vm702_vm0, %v3653_v24, 0  ;;  %v4793_v30 = vld [vmem:[#allocation3 + $0x24] sm:$0xf0]  ;;  %s5667_s19 = sld [smem:[#allocation19_spill]] }
  0x27   : > { %786 = vmatpush.bf16.msra.mxu2 %v775_v27  ;;  %v4792_v31 = vld [vmem:[#allocation3 + $0x24] sm:$0xf]  ;;  %v3645_v32 = vor.u32 %v4793_v30, %v3644_v29  ;;  %v3646_v33 = vld [vmem:[#allocation3 + $0x28] sm:$0xf0]  ;;  %v3670_v34 = vld [vmem:[#allocation3 + $0x10] sm:$0xf] }
  0x28   : > { %s664_s2 = scalar_lea.vmem %s5664_s22, %s4785_s5  ;;  %v5444_v6 = vmul.u32 2, %v675_v3  ;;  %v680_v7 = vadd.s32 4294967295, %v5439_v5  ;;  %vm725_vm1 = vcmp.eq.s32.totalorder %v5437_v4, %v5439_v5  ;;  %v778_v28 = vsel %vm702_vm0, %v3657_v26, 0  ;;  %v4791_v35 = vld [vmem:[#allocation3 + $0x14] sm:$0x30] }
  0x29   : > { %v3638_v8 = vld [vmem:[%s664_s2 + $0x8] sm:$0xf]  ;;  %v4787_v9 = vld [vmem:[%s664_s2 + $0x8] sm:$0x30]  ;;  %v4786_v13 = vld [vmem:[%s664_s2] sm:$0xff]  ;;  %v5456_v15 = vsel %vm725_vm1, 1.0, %v5269_v14  ;;  %800 = vmatpush.bf16.msra.mxu3 %v778_v28  ;;  %v3649_v36 = vor.u32 %v4792_v31, %v3646_v33  ;;  %v3671_v37 = vor.u32 %v4791_v35, %v3670_v34 }
  0x2a   : > { %v3639_v10 = vor.u32 %v4787_v9, %v3638_v8  ;;  %vm726_vm2 = vcmp.eq.s32.totalorder %v5437_v4, %v5444_v6  ;;  %v681_v11 = vadd.s32 4294967295, %v5444_v6  ;;  %vm682_vm3 = vcmp.eq.s32.totalorder %v5437_v4, %v680_v7  ;;  %v4790_v38 = vld [vmem:[#allocation3 + $0x14] sm:$0xf]  ;;  %v3672_v39 = vld [vmem:[#allocation3 + $0x18] sm:$0x30] }
  0x2b   : > { %v728_v16 = vsel %vm726_vm2, 1.0, %v5269_v14  ;;  %v5460_v17 = vsel %vm682_vm3, 1.0, %v5269_v14  ;;  %787 = vmatpush.bf16.msra.mxu2 %v3645_v32  ;;  %v3675_v40 = vor.u32 %v4790_v38, %v3672_v39  ;;  %v830_v41 = vsel %vm702_vm0, %v3671_v37, 0  ;;  %v3662_v43 = vld [vmem:[#allocation3] sm:$0xf] }
  0x2c   : > { %v704_v12 = vsel %vm702_vm0, %v3639_v10, 0  ;;  %vm683_vm4 = vcmp.eq.s32.totalorder %v5437_v4, %v681_v11  ;;  %v729_v19 = vpack.c.bf16 %v728_v16, %v5456_v15  ;;  %v4789_v44 = vld [vmem:[#allocation3 + $0x4] sm:$0xf0]  ;;  %v4788_v45 = vld [vmem:[#allocation3 + $0x4] sm:$0xf]  ;;  %v863_v55 = vadd.s32 1, %v5439_v5  ;;  %s667_s20 = scalar_lea.vmem %s5667_s19, %s5670_s21 }
  0x2d   : > { %739 = vmatpush.bf16.msra.mxu1 %v704_v12  ;;  %712 = vmatpush.bf16.msra.mxu0 %v704_v12  ;;  %v685_v18 = vsel %vm683_vm4, 1.0, %v5269_v14  ;;  %v833_v42 = vsel %vm702_vm0, %v3675_v40, 0  ;;  %v3663_v46 = vor.u32 %v4789_v44, %v3662_v43  ;;  %v3664_v47 = vld [vmem:[#allocation3 + $0x8] sm:$0xf0]  ;;  %v864_v56 = vadd.s32 1, %v5444_v6 }
  0x2e   : > { %v686_v20 = vpack.c.bf16 %v685_v18, %v5460_v17  ;;  %801 = vmatpush.bf16.msra.mxu3 %v3649_v36  ;;  %v3667_v48 = vor.u32 %v4788_v45, %v3664_v47  ;;  %vm865_vm6 = vcmp.eq.s32.totalorder %v5437_v4, %v863_v55  ;;  %v3689_v60 = vld [vmem:[#allocation3 + $0x50] sm:$0xf]  ;;  %v4799_v61 = vld [vmem:[#allocation3 + $0x54] sm:$0x30]  ;;  %v4798_v62 = vld [vmem:[#allocation3 + $0x54] sm:$0xf] }
  0x2f   : > { %879 = vmatpush.bf16.msrb.mxu2 %v704_v12  ;;  %vm866_vm7 = vcmp.eq.s32.totalorder %v5437_v4, %v864_v56  ;;  %v5480_v57 = vsel %vm865_vm6, 1.0, %v5269_v14  ;;  %v3690_v63 = vor.u32 %v4799_v61, %v3689_v60  ;;  %v3691_v0 = vld [vmem:[#allocation3 + $0x58] sm:$0x30]  ;;  %v3681_v4 = vld [vmem:[#allocation3 + $0x40] sm:$0xf]  ;;  %vm997_vm13 = vcmask 113664  }
  0x30   : > { %v868_v58 = vsel %vm866_vm7, 1.0, %v5269_v14  ;;  %v3694_v1 = vor.u32 %v4798_v62, %v3691_v0  ;;  %v4797_v5 = vld [vmem:[#allocation3 + $0x44] sm:$0xf0]  ;;  %v4796_v6 = vld [vmem:[#allocation3 + $0x44] sm:$0xf]  ;;  %vm1265_vm14 = vcmask 785408  }
  0x31   : > { %740 = vmatpush.bf16.msra.mxu1 %v4786_v13  ;;  %713 = vmatpush.bf16.msra.mxu0 %v4786_v13  ;;  %v869_v59 = vpack.c.bf16 %v868_v58, %v5480_v57  ;;  %v915_v2 = vsel %vm702_vm0, %v3690_v63, 0  ;;  %v3682_v7 = vor.u32 %v4797_v5, %v3681_v4  ;;  %v3683_v8 = vld [vmem:[#allocation3 + $0x48] sm:$0xf0]  ;;  %v952_v21 = vld [vmem:[%s5665_s28] sm:$0x3]  ;;  %vm1809_vm15 = vcmask 1042432  }
  0x32   : > { %926 = vmatpush.bf16.msrb.mxu3 %v915_v2  ;;  %v918_v3 = vsel %vm702_vm0, %v3694_v1, 0  ;;  %v3686_v9 = vor.u32 %v4796_v6, %v3683_v8  ;;  %v955_v24 = vperm.slane %v952_v21, 1  ;;  %v954_v30 = vperm.slane %v952_v21, 0  ;;  %v974_v34 = vld [vmem:[%s5666_s1] sm:$0x3] }
  0x33   : > { %880 = vmatpush.bf16.msrb.mxu2 %v4786_v13  ;;  %v977_v39 = vperm.slane %v974_v34, 1  ;;  %v3807_v55 = vld [vmem:[#allocation5 + $0x1b0] sm:$0xf]  ;;  %v4855_v56 = vld [vmem:[#allocation5 + $0x1b4] sm:$0xf0]  ;;  %v5500_v8 = vpack.c.bf16 %v5456_v15, %v5456_v15  ;;  %vm1810_vm2 = vcmask 1043456  }
  0x34   : > { %3641 = vmatmul.msk.bf16.vlgmr.msra.gmra.mxu1 %vm698_vm5, %v729_v19  ;;  %3640 = vmatmul.msk.bf16.vlgmr.msra.gmra.mxu0 %vm698_vm5, %v686_v20  ;;  %v4854_v61 = vld [vmem:[#allocation5 + $0x1b4] sm:$0xf]  ;;  %v3809_v63 = vld [vmem:[#allocation5 + $0x1b8] sm:$0xf0]  ;;  %v3808_v2 = vor.u32 %v4855_v56, %v3807_v55  ;;  %v4853_v4 = vld [vmem:[#allocation5 + $0x1a4] sm:$0xf0] }
  0x35   : > { %841 = vmatpush.bf16.msrb.mxu0 %v830_v41  ;;  %855 = vmatpush.bf16.msrb.mxu1 %v833_v42  ;;  %v984_v42 = vld [vmem:[%s5636_s4] sm:$0x3]  ;;  %v3812_v5 = vor.u32 %v4854_v61, %v3809_v63  ;;  %v3801_v15 = vld [vmem:[#allocation5 + $0x1a8] sm:$0xf0]  ;;  %v3777_v56 = vld [vmem:[#allocation5 + $0x178] sm:$0xf0] }
  0x36   : > { %927 = vmatpush.bf16.msrb.mxu3 %v3682_v7  ;;  %v986_v60 = vperm.slane %v984_v42, 0  ;;  %v3759_v7 = vld [vmem:[#allocation5 + $0x150] sm:$0xf]  ;;  %v4846_v55 = vld [vmem:[#allocation5 + $0x174] sm:$0xf]  ;;  %vm1806_vm3 = vcmask 56320  }
  0x37   : > { %v3780_v61 = vor.u32 %v4846_v55, %v3777_v56  ;;  %v4815_v63 = vld [vmem:[#allocation5 + $0x74] sm:$0xf0]  ;;  %v3825_v56 = vld [vmem:[#allocation5 + $0x10] sm:$0xf]  ;;  %vm2615_vm6 = vcmask 1041408   ;;  %vm2612_vm7 = vcmask 31744  }
  0x39   : > { %842 = vmatpush.bf16.msrb.mxu0 %v3663_v46  ;;  %856 = vmatpush.bf16.msrb.mxu1 %v3667_v48  ;;  %v987_v48 = vperm.slane %v984_v42, 1  ;;  %v4838_v42 = vld [vmem:[#allocation5 + $0x134] sm:$0xf] }
  0x3d   : > { %940 = vmatpush.bf16.msra.mxu0 %v918_v3  ;;  %v3799_v3 = vld [vmem:[#allocation5 + $0x1a0] sm:$0xf] }
  0x41   : > { %941 = vmatpush.bf16.msra.mxu0 %v3686_v9 }
  0xb1   : > { %v742_v49 = vpop.f32.mrf.mxu1  ;;  %v715_v50 = vpop.f32.mrf.mxu0 }
  0xb9   : > { %v744_v51 = vpop.f32.mrf.mxu1  ;;  %v717_v52 = vpop.f32.mrf.mxu0 }
  0xba   : > { %v747_v53 = vpack.c.bf16 %v744_v51, %v742_v49  ;;  %v720_v54 = vpack.c.bf16 %v717_v52, %v715_v50  ;;  %v976_v51 = vperm.slane %v974_v34, 0  ;;  %v3783_v34 = vld [vmem:[#allocation5 + $0x180] sm:$0xf] }
  0xbc   : > { %3658 = vmatmul.msk.bf16.vlgmr.msra.gmra.mxu2 %vm698_vm5, %v747_v53  ;;  %3659 = vmatmul.msk.bf16.vlgmr.msra.gmra.mxu3 %vm698_vm5, %v747_v53 }
  0xbd   : > { %3676 = vmatmul.msk.bf16.vlgmr.msrb.gmra.mxu0 %vm698_vm5, %v720_v54  ;;  %3677 = vmatmul.msk.bf16.vlgmr.msrb.gmra.mxu1 %vm698_vm5, %v720_v54 }
  0xcc   : > { %3678 = vmatmul.msk.bf16.vlgmr.msrb.gmra.mxu2 %vm698_vm5, %v869_v59 }
 0x13a   : > { %v844_v16 = vpop.f32.mrf.mxu0  ;;  %v858_v20 = vpop.f32.mrf.mxu1 }
 0x13f   : > { %v789_v10 = vpop.f32.mrf.mxu2  ;;  %v803_v18 = vpop.f32.mrf.mxu3 }
 0x140   : > { %v859_v23 = vadd.f32 %v858_v20, %v803_v18  ;;  %v845_v29 = vadd.f32 %v844_v16, %v789_v10  ;;  %v3761_v16 = vld [vmem:[#allocation5 + $0x158] sm:$0xf0]  ;;  %v4852_v18 = vld [vmem:[#allocation5 + $0x1a4] sm:$0xf] }
 0x141   : > { %v3804_v21 = vor.u32 %v4852_v18, %v3801_v15  ;;  %v4813_v18 = vld [vmem:[#allocation5 + $0x64] sm:$0xf0]  ;;  %v3719_v15 = vld [vmem:[#allocation5 + $0x100] sm:$0xf] }
 0x142   : > { %v846_v19 = vpop.f32.mrf.mxu0  ;;  %v860_v28 = vpop.f32.mrf.mxu1 }
 0x147   : > { %v791_v11 = vpop.f32.mrf.mxu2  ;;  %v805_v22 = vpop.f32.mrf.mxu3 }
 0x148   : > { %v861_v32 = vadd.f32 %v860_v28, %v805_v22  ;;  %v847_v43 = vadd.f32 %v846_v19, %v791_v11  ;;  %v4843_v11 = vld [vmem:[#allocation5 + $0x154] sm:$0xf0]  ;;  %v3791_v22 = vld [vmem:[#allocation5 + $0x190] sm:$0xf]  ;;  %v4850_v28 = vld [vmem:[#allocation5 + $0x194] sm:$0xf] }
 0x14f   : > { %v882_v12 = vpop.f32.mrf.mxu2 }
 0x157   : > { %v884_v13 = vpop.f32.mrf.mxu2 }
 0x158   : > { %v887_v14 = vpack.c.bf16 %v884_v13, %v882_v12  ;;  %v4842_v12 = vld [vmem:[#allocation5 + $0x154] sm:$0xf]  ;;  %v5507_v13 = vpack.c.bf16 %v5460_v17, %v5460_v17 }
 0x15a   : > { %3695 = vmatmul.msk.bf16.vlgmr.msrb.gmra.mxu3 %vm698_vm5, %v887_v14  ;;  %3696 = vmatmul.msk.bf16.vlgmr.msra.gmra.mxu0 %vm698_vm5, %v887_v14  ;;  %v3800_v14 = vor.u32 %v4853_v4, %v3799_v3  ;;  %v4835_v3 = vld [vmem:[#allocation5 + $0x114] sm:$0xf0]  ;;  %v4844_v4 = vld [vmem:[#allocation5 + $0x164] sm:$0xf] }
 0x1d7   : > { %v943_v25 = vpop.f32.mrf.mxu0 }
 0x1d8   : > { %v949_v26 = vadd.f32 %v943_v25, %v859_v23  ;;  %v4851_v23 = vld [vmem:[#allocation5 + $0x194] sm:$0xf0]  ;;  %v3751_v25 = vld [vmem:[#allocation5 + $0x140] sm:$0xf] }
 0x1da   : > { %v959_v27 = vadd.f32 %v955_v24, %v949_v26  ;;  %v4841_v26 = vld [vmem:[#allocation5 + $0x144] sm:$0xf0] }
 0x1dc   : > { %v967_v33 = vmul.f32 0.2, %v959_v27  ;;  %vm963_vm8 = vcmp.ge.f32.partialorder %v959_v27, 0.0 }
 0x1dd   : > { %v929_v31 = vpop.f32.mrf.mxu3 }
 0x1de   : > { %v948_v35 = vadd.f32 %v929_v31, %v845_v29  ;;  %v971_v40 = vsel %vm963_vm8, %v959_v27, %v967_v33  ;;  %v3764_v27 = vor.u32 %v4842_v12, %v3761_v16  ;;  %v4840_v29 = vld [vmem:[#allocation5 + $0x144] sm:$0xf]  ;;  %v3793_v31 = vld [vmem:[#allocation5 + $0x198] sm:$0xf0]  ;;  %v3792_v33 = vor.u32 %v4851_v23, %v3791_v22  ;;  %v3721_v22 = vld [vmem:[#allocation5 + $0x108] sm:$0xf0] }
 0x1df   : > { %v945_v36 = vpop.f32.mrf.mxu0  ;;  %v981_v46 = vmul.f32 %v977_v39, %v971_v40 }
 0x1e0   : > { %v958_v37 = vadd.f32 %v954_v30, %v948_v35  ;;  %v951_v38 = vadd.f32 %v945_v36, %v861_v32  ;;  %v4849_v35 = vld [vmem:[#allocation5 + $0x184] sm:$0xf0]  ;;  %v3796_v36 = vor.u32 %v4850_v28, %v3793_v31 }
 0x1e1   : > { %v991_v58 = vadd.f32 %v987_v48, %v981_v46  ;;  %v3775_v46 = vld [vmem:[#allocation5 + $0x170] sm:$0xf] }
 0x1e2   : > { %v961_v41 = vadd.f32 %v955_v24, %v951_v38  ;;  %v966_v44 = vmul.f32 0.2, %v958_v37  ;;  %vm962_vm10 = vcmp.ge.f32.partialorder %v958_v37, 0.0  ;;  %v3760_v24 = vor.u32 %v4843_v11, %v3759_v7  ;;  %v3743_v38 = vld [vmem:[#allocation5 + $0x130] sm:$0xf] }
 0x1e3   : > { %v3729_v7 = vld [vmem:[#allocation5 + $0x118] sm:$0xf0] }
 0x1e4   : > { %vm965_vm9 = vcmp.ge.f32.partialorder %v961_v41, 0.0  ;;  %v969_v45 = vmul.f32 0.2, %v961_v41  ;;  %v970_v53 = vsel %vm962_vm10, %v958_v37, %v966_v44  ;;  %v3752_v37 = vor.u32 %v4841_v26, %v3751_v25  ;;  %v3785_v44 = vld [vmem:[#allocation5 + $0x188] sm:$0xf0] }
 0x1e5   : > { %v931_v47 = vpop.f32.mrf.mxu3  ;;  %v980_v0 = vmul.f32 %v976_v51, %v970_v53  ;;  %v4836_v53 = vld [vmem:[#allocation5 + $0x124] sm:$0xf]  ;;  %v4811_v25 = vld [vmem:[#allocation5 + $0x54] sm:$0xf0]  ;;  %v3711_v26 = vld [vmem:[#allocation5 + $0xf0] sm:$0xf] }
 0x1e6   : > { %v973_v49 = vsel %vm965_vm9, %v961_v41, %v969_v45  ;;  %v950_v50 = vadd.f32 %v931_v47, %v847_v43  ;;  %v4848_v41 = vld [vmem:[#allocation5 + $0x184] sm:$0xf]  ;;  %v3745_v43 = vld [vmem:[#allocation5 + $0x138] sm:$0xf0]  ;;  %v3784_v45 = vor.u32 %v4849_v35, %v3783_v34  ;;  %v4847_v47 = vld [vmem:[#allocation5 + $0x174] sm:$0xf0] }
 0x1e7   : > { %v983_v52 = vmul.f32 %v977_v39, %v973_v49  ;;  %v990_v19 = vadd.f32 %v986_v60, %v980_v0  ;;  %v4839_v39 = vld [vmem:[#allocation5 + $0x134] sm:$0xf0]  ;;  %v4809_v34 = vld [vmem:[#allocation5 + $0x44] sm:$0xf0] }
 0x1e8   : > { %v960_v54 = vadd.f32 %v954_v30, %v950_v50  ;;  %v3753_v30 = vld [vmem:[#allocation5 + $0x148] sm:$0xf0]  ;;  %v3744_v49 = vor.u32 %v4839_v39, %v3743_v38  ;;  %v3735_v50 = vld [vmem:[#allocation5 + $0x120] sm:$0xf]  ;;  %v3921_v38 = vld [vmem:[#allocation5 + $0xd0] sm:$0xf] }
 0x1e9   : > { %v993_v59 = vadd.f32 %v987_v48, %v983_v52  ;;  %v3756_v40 = vor.u32 %v4840_v29, %v3753_v30  ;;  %v3788_v48 = vor.u32 %v4848_v41, %v3785_v44  ;;  %v3748_v52 = vor.u32 %v4838_v42, %v3745_v43  ;;  %v4830_v29 = vld [vmem:[#allocation5 + $0xf4] sm:$0xf]  ;;  %v3713_v30 = vld [vmem:[#allocation5 + $0xf8] sm:$0xf0]  ;;  %v4828_v41 = vld [vmem:[#allocation5 + $0xe4] sm:$0xf] }
 0x1ea   : > { %vm964_vm11 = vcmp.ge.f32.partialorder %v960_v54, 0.0  ;;  %v968_v62 = vmul.f32 0.2, %v960_v54  ;;  %v3716_v39 = vor.u32 %v4830_v29, %v3713_v30  ;;  %v3705_v42 = vld [vmem:[#allocation5 + $0xe8] sm:$0xf0] }
 0x1eb   : > { %v995_v1 = vpack.c.bf16 %v993_v59, %v991_v58  ;;  %v3776_v58 = vor.u32 %v4847_v47, %v3775_v46  ;;  %v3767_v59 = vld [vmem:[#allocation5 + $0x160] sm:$0xf]  ;;  %v4807_v46 = vld [vmem:[#allocation5 + $0x34] sm:$0xf0]  ;;  %v4808_v29 = vld [vmem:[#allocation5 + $0x44] sm:$0xf] }
 0x1ec   : > { %v972_v6 = vsel %vm964_vm11, %v960_v54, %v968_v62  ;;  %v3737_v54 = vld [vmem:[#allocation5 + $0x128] sm:$0xf0]  ;;  %v3873_v62 = vld [vmem:[#allocation5 + $0x70] sm:$0xf] }
 0x1ed   : > { %v982_v9 = vmul.f32 %v976_v51, %v972_v6  ;;  %v5503_v10 = vsel %vm1001_vm12, %v995_v1, 0  ;;  %v4837_v51 = vld [vmem:[#allocation5 + $0x124] sm:$0xf0]  ;;  %v3727_v1 = vld [vmem:[#allocation5 + $0x110] sm:$0xf]  ;;  %v3874_v12 = vor.u32 %v4815_v63, %v3873_v62 }
 0x1ee   : > { %1028 = vmatpush.bf16.msra.mxu2 %v5503_v10  ;;  %1088 = vmatpush.bf16.msrb.mxu0 %v5503_v10  ;;  %v3736_v0 = vor.u32 %v4837_v51, %v3735_v50  ;;  %v4834_v6 = vld [vmem:[#allocation5 + $0x114] sm:$0xf]  ;;  %v3728_v16 = vor.u32 %v4835_v3, %v3727_v1  ;;  %v4825_v50 = vld [vmem:[#allocation5 + $0xc4] sm:$0xf0]  ;;  %v3851_v30 = vld [vmem:[#allocation5 + $0x48] sm:$0xf0] }
 0x1ef   : > { %v992_v20 = vadd.f32 %v986_v60, %v982_v9  ;;  %v4845_v60 = vld [vmem:[#allocation5 + $0x164] sm:$0xf0]  ;;  %v4826_v62 = vld [vmem:[#allocation5 + $0xd4] sm:$0xf] }
 0x1f0   : > { %v3768_v9 = vor.u32 %v4845_v60, %v3767_v59  ;;  %v4814_v60 = vld [vmem:[#allocation5 + $0x74] sm:$0xf]  ;;  %v4801_v3 = vld [vmem:[#allocation5 + $0x4] sm:$0xf0] }
 0x1f1   : > { %3700 = vmatmul.msk.bf16.vlgmr.msrb.gmra.mxu0 %vm997_vm13, %v5500_v8  ;;  %v994_v17 = vpack.c.bf16 %v992_v20, %v990_v19  ;;  %3698 = vmatmul.msk.bf16.vlgmr.msra.gmra.mxu2 %vm997_vm13, %v5507_v13  ;;  %v4833_v19 = vld [vmem:[#allocation5 + $0x104] sm:$0xf0]  ;;  %v3732_v20 = vor.u32 %v4834_v6, %v3729_v7  ;;  %v4823_v6 = vld [vmem:[#allocation5 + $0xb4] sm:$0xf0] }
 0x1f2   : > { %1284 = vmatpush.bf16.msrb.mxu2 %v3808_v2  ;;  %1310 = vmatpush.bf16.msra.mxu0 %v3812_v5  ;;  %v3740_v2 = vor.u32 %v4836_v53, %v3737_v54  ;;  %v3769_v5 = vld [vmem:[#allocation5 + $0x168] sm:$0xf0]  ;;  %v4805_v53 = vld [vmem:[#allocation5 + $0x24] sm:$0xf0] }
 0x1f3   : > { %v5516_v32 = vsel %vm1001_vm12, %v994_v17, 0  ;;  %v3772_v11 = vor.u32 %v4844_v4, %v3769_v5  ;;  %v3857_v17 = vld [vmem:[#allocation5 + $0x50] sm:$0xf] }
 0x1f4   : > { %1015 = vmatpush.bf16.msra.mxu1 %v5516_v32  ;;  %1075 = vmatpush.bf16.msra.mxu3 %v5516_v32  ;;  %v3858_v31 = vor.u32 %v4811_v25, %v3857_v17  ;;  %v3905_v4 = vld [vmem:[#allocation5 + $0xb0] sm:$0xf] }
 0x1f5   : > { %v3906_v7 = vor.u32 %v4823_v6, %v3905_v4  ;;  %v3989_v6 = vld [vmem:[#allocation5 + $0x230] sm:$0xf] }
 0x1f6   : > { %1285 = vmatpush.bf16.msrb.mxu2 %v3800_v14  ;;  %1311 = vmatpush.bf16.msra.mxu0 %v3804_v21  ;;  %v3865_v14 = vld [vmem:[#allocation5 + $0x60] sm:$0xf]  ;;  %v4832_v21 = vld [vmem:[#allocation5 + $0x104] sm:$0xf] }
 0x1f7   : > { %3699 = vmatmul.msk.bf16.vlgmr.msra.gmra.mxu3 %vm997_vm13, %v5500_v8  ;;  %3697 = vmatmul.msk.bf16.vlgmr.msra.gmra.mxu1 %vm997_vm13, %v5507_v13  ;;  %v3866_v23 = vor.u32 %v4813_v18, %v3865_v14  ;;  %v3724_v28 = vor.u32 %v4832_v21, %v3721_v22  ;;  %v4810_v21 = vld [vmem:[#allocation5 + $0x54] sm:$0xf]  ;;  %v3859_v22 = vld [vmem:[#allocation5 + $0x58] sm:$0xf0] }
 0x1f8   : > { %1269 = vmatpush.bf16.msrb.mxu1 %v3760_v24  ;;  %1295 = vmatpush.bf16.msrb.mxu3 %v3764_v27  ;;  %v3720_v24 = vor.u32 %v4833_v19, %v3719_v15  ;;  %v4831_v27 = vld [vmem:[#allocation5 + $0xf4] sm:$0xf0]  ;;  %v3897_v15 = vld [vmem:[#allocation5 + $0xa0] sm:$0xf]  ;;  %v4821_v19 = vld [vmem:[#allocation5 + $0xa4] sm:$0xf0]  ;;  %v3862_v17 = vor.u32 %v4810_v21, %v3859_v22 }
 0x1f9   : > { %v3712_v35 = vor.u32 %v4831_v27, %v3711_v26  ;;  %v3889_v26 = vld [vmem:[#allocation5 + $0x90] sm:$0xf]  ;;  %v4819_v27 = vld [vmem:[#allocation5 + $0x94] sm:$0xf0]  ;;  %v4869_v21 = vld [vmem:[#allocation5 + $0x224] sm:$0xf0] }
 0x1fa   : > { %1286 = vmatpush.bf16.msrb.mxu2 %v3792_v33  ;;  %1312 = vmatpush.bf16.msra.mxu0 %v3796_v36  ;;  %v3849_v33 = vld [vmem:[#allocation5 + $0x40] sm:$0xf]  ;;  %v4868_v22 = vld [vmem:[#allocation5 + $0x224] sm:$0xf] }
 0x1fb   : > { %v3703_v36 = vld [vmem:[#allocation5 + $0xe0] sm:$0xf]  ;;  %v3850_v43 = vor.u32 %v4809_v34, %v3849_v33  ;;  %v3854_v33 = vor.u32 %v4808_v29, %v3851_v30  ;;  %v3899_v34 = vld [vmem:[#allocation5 + $0xa8] sm:$0xf0] }
 0x1fc   : > { %1270 = vmatpush.bf16.msrb.mxu1 %v3752_v37  ;;  %1296 = vmatpush.bf16.msrb.mxu3 %v3756_v40  ;;  %v4829_v37 = vld [vmem:[#allocation5 + $0xe4] sm:$0xf0]  ;;  %v4827_v40 = vld [vmem:[#allocation5 + $0xd4] sm:$0xf0]  ;;  %v4031_v29 = vld [vmem:[#allocation5 + $0x288] sm:$0xf0] }
 0x1fd   : > { %v3704_v44 = vor.u32 %v4829_v37, %v3703_v36  ;;  %v3922_v47 = vor.u32 %v4827_v40, %v3921_v38  ;;  %v3881_v36 = vld [vmem:[#allocation5 + $0x80] sm:$0xf]  ;;  %v4817_v37 = vld [vmem:[#allocation5 + $0x84] sm:$0xf0]  ;;  %v3843_v40 = vld [vmem:[#allocation5 + $0x38] sm:$0xf0] }
 0x1fe   : > { %1287 = vmatpush.bf16.msrb.mxu2 %v3784_v45  ;;  %1313 = vmatpush.bf16.msra.mxu0 %v3788_v48  ;;  %v3841_v45 = vld [vmem:[#allocation5 + $0x30] sm:$0xf]  ;;  %v3708_v48 = vor.u32 %v4828_v41, %v3705_v42  ;;  %v3882_v38 = vor.u32 %v4817_v37, %v3881_v36  ;;  %v4818_v41 = vld [vmem:[#allocation5 + $0x94] sm:$0xf]  ;;  %v3975_v36 = vld [vmem:[#allocation5 + $0x218] sm:$0xf0] }
 0x1ff   : > { %v3842_v51 = vor.u32 %v4807_v46, %v3841_v45  ;;  %v4804_v45 = vld [vmem:[#allocation5 + $0x24] sm:$0xf]  ;;  %v3835_v46 = vld [vmem:[#allocation5 + $0x28] sm:$0xf0] }
 0x200   : > { %1271 = vmatpush.bf16.msrb.mxu1 %v3744_v49  ;;  %1297 = vmatpush.bf16.msrb.mxu3 %v3748_v52  ;;  %v3913_v49 = vld [vmem:[#allocation5 + $0xc0] sm:$0xf] }
 0x201   : > { %v3833_v52 = vld [vmem:[#allocation5 + $0x20] sm:$0xf]  ;;  %v3914_v54 = vor.u32 %v4825_v50, %v3913_v49  ;;  %v3883_v49 = vld [vmem:[#allocation5 + $0x88] sm:$0xf0] }
 0x202   : > { %1288 = vmatpush.bf16.msrb.mxu2 %v3776_v58  ;;  %1314 = vmatpush.bf16.msra.mxu0 %v3780_v61  ;;  %v3834_v55 = vor.u32 %v4805_v53, %v3833_v52  ;;  %v4803_v58 = vld [vmem:[#allocation5 + $0x14] sm:$0xf0]  ;;  %v3875_v61 = vld [vmem:[#allocation5 + $0x78] sm:$0xf0] }
 0x203   : > { %v3826_v59 = vor.u32 %v4803_v58, %v3825_v56  ;;  %v3878_v63 = vor.u32 %v4814_v60, %v3875_v61  ;;  %v3827_v52 = vld [vmem:[#allocation5 + $0x18] sm:$0xf0] }
 0x204   : > { %1272 = vmatpush.bf16.msrb.mxu1 %v3736_v0  ;;  %1298 = vmatpush.bf16.msrb.mxu3 %v3740_v2  ;;  %v3923_v0 = vld [vmem:[#allocation5 + $0xd8] sm:$0xf0]  ;;  %v3817_v2 = vld [vmem:[#allocation5] sm:$0xf] }
 0x205   : > { %v3926_v1 = vor.u32 %v4826_v62, %v3923_v0  ;;  %v3818_v5 = vor.u32 %v4801_v3, %v3817_v2 }
 0x206   : > { %1289 = vmatpush.bf16.msrb.mxu2 %v3768_v9  ;;  %1315 = vmatpush.bf16.msra.mxu0 %v3772_v11  ;;  %v4812_v9 = vld [vmem:[#allocation5 + $0x64] sm:$0xf]  ;;  %v3867_v11 = vld [vmem:[#allocation5 + $0x68] sm:$0xf0] }
 0x207   : > { %v3870_v14 = vor.u32 %v4812_v9, %v3867_v11  ;;  %v3991_v11 = vld [vmem:[#allocation5 + $0x238] sm:$0xf0] }
 0x208   : > { %1273 = vmatpush.bf16.msrb.mxu1 %v3728_v16  ;;  %1299 = vmatpush.bf16.msrb.mxu3 %v3732_v20  ;;  %v3915_v16 = vld [vmem:[#allocation5 + $0xc8] sm:$0xf0]  ;;  %v3898_v20 = vor.u32 %v4821_v19, %v3897_v15  ;;  %v4039_v15 = vld [vmem:[#allocation5 + $0x298] sm:$0xf0] }
 0x20a   : > { %1464 = vmatpush.bf16.msra.mxu2 %v3874_v12  ;;  %1505 = vmatpush.bf16.msrb.mxu0 %v3926_v1  ;;  %v4824_v12 = vld [vmem:[#allocation5 + $0xc4] sm:$0xf] }
 0x20b   : > { %v3918_v18 = vor.u32 %v4824_v12, %v3915_v16  ;;  %v4883_v16 = vld [vmem:[#allocation5 + $0x294] sm:$0xf0] }
 0x20c   : > { %1274 = vmatpush.bf16.msrb.mxu1 %v3720_v24  ;;  %1300 = vmatpush.bf16.msrb.mxu3 %v3724_v28  ;;  %v3907_v24 = vld [vmem:[#allocation5 + $0xb8] sm:$0xf0]  ;;  %v3890_v28 = vor.u32 %v4819_v27, %v3889_v26  ;;  %v4881_v26 = vld [vmem:[#allocation5 + $0x284] sm:$0xf0]  ;;  %v4880_v27 = vld [vmem:[#allocation5 + $0x284] sm:$0xf] }
 0x20d   : > { %v4034_v30 = vor.u32 %v4880_v27, %v4031_v29  ;;  %v3933_v27 = vld [vmem:[#allocation5 + $0x1c0] sm:$0xf]  ;;  %v4856_v29 = vld [vmem:[#allocation5 + $0x1c4] sm:$0xf] }
 0x20e   : > { %1465 = vmatpush.bf16.msra.mxu2 %v3866_v23  ;;  %1506 = vmatpush.bf16.msrb.mxu0 %v3918_v18  ;;  %v4822_v23 = vld [vmem:[#allocation5 + $0xb4] sm:$0xf] }
 0x20f   : > { %v3910_v25 = vor.u32 %v4822_v23, %v3907_v24  ;;  %v4882_v18 = vld [vmem:[#allocation5 + $0x294] sm:$0xf] }
 0x210   : > { %1275 = vmatpush.bf16.msrb.mxu1 %v3712_v35  ;;  %1301 = vmatpush.bf16.msrb.mxu3 %v3716_v39  ;;  %v4806_v39 = vld [vmem:[#allocation5 + $0x34] sm:$0xf]  ;;  %v4042_v19 = vor.u32 %v4882_v18, %v4039_v15  ;;  %v4872_v18 = vld [vmem:[#allocation5 + $0x244] sm:$0xf]  ;;  %v3999_v15 = vld [vmem:[#allocation5 + $0x248] sm:$0xf0] }
 0x211   : > { %v3846_v42 = vor.u32 %v4806_v39, %v3843_v40  ;;  %v4879_v39 = vld [vmem:[#allocation5 + $0x274] sm:$0xf0]  ;;  %v4878_v40 = vld [vmem:[#allocation5 + $0x274] sm:$0xf] }
 0x212   : > { %1466 = vmatpush.bf16.msra.mxu2 %v3858_v31  ;;  %1507 = vmatpush.bf16.msrb.mxu0 %v3910_v25  ;;  %v4820_v31 = vld [vmem:[#allocation5 + $0xa4] sm:$0xf]  ;;  %v4029_v25 = vld [vmem:[#allocation5 + $0x280] sm:$0xf] }
 0x213   : > { %v3902_v35 = vor.u32 %v4820_v31, %v3899_v34  ;;  %v3973_v31 = vld [vmem:[#allocation5 + $0x210] sm:$0xf]  ;;  %v4866_v34 = vld [vmem:[#allocation5 + $0x214] sm:$0xf] }
 0x214   : > { %1276 = vmatpush.bf16.msrb.mxu1 %v3704_v44  ;;  %1302 = vmatpush.bf16.msrb.mxu3 %v3708_v48  ;;  %v3838_v48 = vor.u32 %v4804_v45, %v3835_v46  ;;  %v3978_v37 = vor.u32 %v4866_v34, %v3975_v36  ;;  %v4865_v45 = vld [vmem:[#allocation5 + $0x204] sm:$0xf0]  ;;  %v4864_v46 = vld [vmem:[#allocation5 + $0x204] sm:$0xf] }
 0x216   : > { %1467 = vmatpush.bf16.msra.mxu2 %v3850_v43  ;;  %1508 = vmatpush.bf16.msrb.mxu0 %v3902_v35  ;;  %v3891_v43 = vld [vmem:[#allocation5 + $0x98] sm:$0xf0] }
 0x217   : > { %v3894_v44 = vor.u32 %v4818_v41, %v3891_v43 }
 0x218   : > { %1479 = vmatpush.bf16.msra.mxu1 %v3922_v47  ;;  %1490 = vmatpush.bf16.msra.mxu3 %v3878_v63  ;;  %v4816_v47 = vld [vmem:[#allocation5 + $0x84] sm:$0xf] }
 0x219   : > { %v3886_v50 = vor.u32 %v4816_v47, %v3883_v49 }
 0x21a   : > { %1468 = vmatpush.bf16.msra.mxu2 %v3842_v51  ;;  %1509 = vmatpush.bf16.msrb.mxu0 %v3894_v44  ;;  %v4802_v51 = vld [vmem:[#allocation5 + $0x14] sm:$0xf]  ;;  %v3965_v44 = vld [vmem:[#allocation5 + $0x200] sm:$0xf] }
 0x21b   : > { %v3830_v53 = vor.u32 %v4802_v51, %v3827_v52  ;;  %v3966_v47 = vor.u32 %v4865_v45, %v3965_v44  ;;  %v4877_v51 = vld [vmem:[#allocation5 + $0x264] sm:$0xf0]  ;;  %v4876_v52 = vld [vmem:[#allocation5 + $0x264] sm:$0xf] }
 0x21c   : > { %1480 = vmatpush.bf16.msra.mxu1 %v3914_v54  ;;  %1491 = vmatpush.bf16.msra.mxu3 %v3870_v14  ;;  %v4800_v54 = vld [vmem:[#allocation5 + $0x4] sm:$0xf]  ;;  %v4037_v14 = vld [vmem:[#allocation5 + $0x290] sm:$0xf] }
 0x21e   : > { %1469 = vmatpush.bf16.msra.mxu2 %v3834_v55  ;;  %1510 = vmatpush.bf16.msrb.mxu0 %v3886_v50  ;;  %v3819_v55 = vld [vmem:[#allocation5 + $0x8] sm:$0xf0]  ;;  %v4013_v50 = vld [vmem:[#allocation5 + $0x260] sm:$0xf] }
 0x21f   : > { %v3822_v56 = vor.u32 %v4800_v54, %v3819_v55  ;;  %v4015_v54 = vld [vmem:[#allocation5 + $0x268] sm:$0xf0] }
 0x220   : > { %1481 = vmatpush.bf16.msra.mxu1 %v3906_v7  ;;  %1492 = vmatpush.bf16.msra.mxu3 %v3862_v17  ;;  %v4871_v7 = vld [vmem:[#allocation5 + $0x234] sm:$0xf0]  ;;  %v3983_v17 = vld [vmem:[#allocation5 + $0x228] sm:$0xf0]  ;;  %v4018_v55 = vor.u32 %v4876_v52, %v4015_v54 }
 0x221   : > { %v3990_v9 = vor.u32 %v4871_v7, %v3989_v6  ;;  %v3986_v24 = vor.u32 %v4868_v22, %v3983_v17  ;;  %v3949_v6 = vld [vmem:[#allocation5 + $0x1e0] sm:$0xf]  ;;  %v4861_v7 = vld [vmem:[#allocation5 + $0x1e4] sm:$0xf0]  ;;  %v4859_v22 = vld [vmem:[#allocation5 + $0x1d4] sm:$0xf0] }
 0x222   : > { %1470 = vmatpush.bf16.msra.mxu2 %v3826_v59 }
 0x224   : > { %1482 = vmatpush.bf16.msra.mxu1 %v3898_v20  ;;  %1493 = vmatpush.bf16.msra.mxu3 %v3854_v33  ;;  %v3981_v20 = vld [vmem:[#allocation5 + $0x220] sm:$0xf]  ;;  %v4867_v33 = vld [vmem:[#allocation5 + $0x214] sm:$0xf0] }
 0x225   : > { %v3982_v23 = vor.u32 %v4869_v21, %v3981_v20  ;;  %v3974_v35 = vor.u32 %v4867_v33, %v3973_v31  ;;  %v4002_v20 = vor.u32 %v4872_v18, %v3999_v15  ;;  %v3941_v21 = vld [vmem:[#allocation5 + $0x1d0] sm:$0xf]  ;;  %v3935_v31 = vld [vmem:[#allocation5 + $0x1c8] sm:$0xf0] }
 0x226   : > { %1471 = vmatpush.bf16.msra.mxu2 %v3818_v5  ;;  %v3942_v17 = vor.u32 %v4859_v22, %v3941_v21  ;;  %v3938_v34 = vor.u32 %v4856_v29, %v3935_v31 }
 0x228   : > { %1483 = vmatpush.bf16.msra.mxu1 %v3890_v28  ;;  %1494 = vmatpush.bf16.msra.mxu3 %v3846_v42  ;;  %v4030_v28 = vor.u32 %v4881_v26, %v4029_v25  ;;  %v4023_v42 = vld [vmem:[#allocation5 + $0x278] sm:$0xf0] }
 0x229   : > { %v4026_v43 = vor.u32 %v4878_v40, %v4023_v42 }
 0x22c   : > { %1484 = vmatpush.bf16.msra.mxu1 %v3882_v38  ;;  %1495 = vmatpush.bf16.msra.mxu3 %v3838_v48  ;;  %v4021_v38 = vld [vmem:[#allocation5 + $0x270] sm:$0xf]  ;;  %v3967_v48 = vld [vmem:[#allocation5 + $0x208] sm:$0xf0] }
 0x22d   : > { %v4022_v41 = vor.u32 %v4879_v39, %v4021_v38  ;;  %v3970_v49 = vor.u32 %v4864_v46, %v3967_v48 }
 0x230   : > { %1496 = vmatpush.bf16.msra.mxu3 %v3830_v53  ;;  %v4014_v53 = vor.u32 %v4877_v51, %v4013_v50 }
 0x234   : > { %1497 = vmatpush.bf16.msra.mxu3 %v3822_v56  ;;  %v3957_v56 = vld [vmem:[#allocation5 + $0x1f0] sm:$0xf] }
 0x26e   : > { %v1090_v58 = vpop.f32.mrf.mxu0 }
 0x26f   : > { %v1095_v59 = vpack.c.bf16 %v1090_v58, %v1090_v58  ;;  %v4863_v58 = vld [vmem:[#allocation5 + $0x1f4] sm:$0xf0] }
 0x271   : > { %3813 = vmatmul.msk.bf16.vlgmr.msrb.gmra.mxu2 %vm1265_vm14, %v1095_v59  ;;  %3814 = vmatmul.msk.bf16.vlgmr.msra.gmra.mxu0 %vm1265_vm14, %v1095_v59  ;;  %v4862_v59 = vld [vmem:[#allocation5 + $0x1f4] sm:$0xf] }
 0x272   : > { %1540 = vmatpush.bf16.msrb.mxu2 %v5503_v10  ;;  %v5531_v10 = vpack.c.bf16 %v5480_v57, %v5480_v57  ;;  %1720 = vmatpush.bf16.msra.mxu0 %v3990_v9  ;;  %v4038_v57 = vor.u32 %v4883_v16, %v4037_v14  ;;  %v3950_v9 = vor.u32 %v4861_v7, %v3949_v6  ;;  %v3997_v14 = vld [vmem:[#allocation5 + $0x240] sm:$0xf]  ;;  %v4873_v16 = vld [vmem:[#allocation5 + $0x244] sm:$0xf0]  ;;  %v1788_v6 = vld [vmem:[%s5639_s7] sm:$0x3] }
 0x274   : > { %v1017_v60 = vpop.f32.mrf.mxu1  ;;  %v1030_v61 = vpop.f32.mrf.mxu2 }
 0x275   : > { %v1034_v3 = vpack.c.bf16 %v1017_v60, %v1017_v60  ;;  %v1035_v4 = vpack.c.bf16 %v1030_v61, %v1030_v61  ;;  %v3958_v60 = vor.u32 %v4863_v58, %v3957_v56  ;;  %v3959_v61 = vld [vmem:[#allocation5 + $0x1f8] sm:$0xf0] }
 0x276   : > { %v1092_v62 = vpop.f32.mrf.mxu0  ;;  %1721 = vmatpush.bf16.msra.mxu0 %v3982_v23  ;;  %v4858_v23 = vld [vmem:[#allocation5 + $0x1d4] sm:$0xf] }
 0x27a   : > { %v1077_v63 = vpop.f32.mrf.mxu3  ;;  %1722 = vmatpush.bf16.msra.mxu0 %v3974_v35 }
 0x27b   : > { %v1094_v0 = vpack.c.bf16 %v1077_v63, %v1077_v63  ;;  %v3962_v63 = vor.u32 %v4862_v59, %v3959_v61 }
 0x27c   : > { %v1019_v1 = vpop.f32.mrf.mxu1  ;;  %v1032_v2 = vpop.f32.mrf.mxu2 }
 0x27d   : > { %1277 = vmatmul.bf16.vlgmr.msrb.gmra.mxu1 %v1094_v0  ;;  %1303 = vmatmul.bf16.vlgmr.msrb.gmra.mxu3 %v1094_v0  ;;  %v4005_v0 = vld [vmem:[#allocation5 + $0x250] sm:$0xf]  ;;  %v4875_v1 = vld [vmem:[#allocation5 + $0x254] sm:$0xf0]  ;;  %v4874_v2 = vld [vmem:[#allocation5 + $0x254] sm:$0xf] }
 0x27e   : > { %1527 = vmatpush.bf16.msrb.mxu1 %v5516_v32  ;;  %v4870_v32 = vld [vmem:[#allocation5 + $0x234] sm:$0xf]  ;;  %1735 = vmatpush.bf16.msrb.mxu3 %v4038_v57  ;;  %v3998_v57 = vor.u32 %v4873_v16, %v3997_v14  ;;  %v1791_v16 = vperm.slane %v1788_v6, 1 }
 0x27f   : > { %v3994_v12 = vor.u32 %v4870_v32, %v3991_v11  ;;  %1723 = vmatpush.bf16.msra.mxu0 %v3966_v47  ;;  %v4860_v32 = vld [vmem:[#allocation5 + $0x1e4] sm:$0xf]  ;;  %v3951_v11 = vld [vmem:[#allocation5 + $0x1e8] sm:$0xf0] }
 0x281   : > { %1472 = vmatmul.bf16.vlgmr.msra.gmra.mxu2 %v1034_v3  ;;  %3928 = vmatmul.msk.bf16.vlgmr.msrb.gmra.mxu0 %vm1265_vm14, %v1035_v4 }
 0x282   : > { %v1079_v5 = vpop.f32.mrf.mxu3  ;;  %1761 = vmatpush.bf16.msra.mxu2 %v4042_v19  ;;  %1736 = vmatpush.bf16.msrb.mxu3 %v4030_v28  ;;  %v4857_v28 = vld [vmem:[#allocation5 + $0x1c4] sm:$0xf0] }
 0x283   : > { %1724 = vmatpush.bf16.msra.mxu0 %v3958_v60  ;;  %v1774_v60 = vld [vmem:[%s5638_s6] sm:$0x3] }
 0x286   : > { %1762 = vmatpush.bf16.msra.mxu2 %v4034_v30  ;;  %1737 = vmatpush.bf16.msrb.mxu3 %v4022_v41  ;;  %v3934_v30 = vor.u32 %v4857_v28, %v3933_v27 }
 0x287   : > { %1725 = vmatpush.bf16.msra.mxu0 %v3950_v9  ;;  %v1796_v9 = vld [vmem:[%s5640_s8] sm:$0x3] }
 0x28a   : > { %1763 = vmatpush.bf16.msra.mxu2 %v4026_v43  ;;  %1738 = vmatpush.bf16.msrb.mxu3 %v4014_v53 }
 0x28b   : > { %1726 = vmatpush.bf16.msra.mxu0 %v3942_v17 }
 0x28d   : > { %3927 = vmatmul.msk.bf16.vlgmr.msra.gmra.mxu1 %vm1265_vm14, %v1035_v4  ;;  %1498 = vmatmul.bf16.vlgmr.msra.gmra.mxu3 %v1034_v3  ;;  %v4006_v3 = vor.u32 %v4875_v1, %v4005_v0  ;;  %v4007_v4 = vld [vmem:[#allocation5 + $0x258] sm:$0xf0]  ;;  %v1776_v0 = vperm.slane %v1774_v60, 0 }
 0x28e   : > { %1746 = vmatpush.bf16.msra.mxu1 %v3994_v12  ;;  %1764 = vmatpush.bf16.msra.mxu2 %v4018_v55  ;;  %v4010_v5 = vor.u32 %v4874_v2, %v4007_v4  ;;  %v3954_v12 = vor.u32 %v4860_v32, %v3951_v11  ;;  %v1777_v4 = vperm.slane %v1774_v60, 1  ;;  %v1790_v11 = vperm.slane %v1788_v6, 0  ;;  %v4935_v60 = vld [vmem:[#allocation7 + $0x194] sm:$0xf0]  ;;  %v4922_v6 = vld [vmem:[#allocation7 + $0x134] sm:$0xf] }
 0x28f   : > { %1739 = vmatpush.bf16.msrb.mxu3 %v4006_v3  ;;  %1727 = vmatpush.bf16.msra.mxu0 %v3934_v30  ;;  %v4155_v30 = vld [vmem:[#allocation7 + $0x1b0] sm:$0xf] }
 0x291   : > { %3930 = vmatmul.msk.bf16.vlgmr.msrb.gmra.mxu2 %vm997_vm13, %v5531_v10 }
 0x292   : > { %1747 = vmatpush.bf16.msra.mxu1 %v3986_v24  ;;  %1765 = vmatpush.bf16.msra.mxu2 %v4010_v5  ;;  %v3943_v24 = vld [vmem:[#allocation5 + $0x1d8] sm:$0xf0] }
 0x293   : > { %1740 = vmatpush.bf16.msrb.mxu3 %v3998_v57  ;;  %v3946_v26 = vor.u32 %v4858_v23, %v3943_v24  ;;  %v5270_v23 = vmov 65535   ;;  %v1799_v24 = vperm.slane %v1796_v9, 1 }
 0x294   : > { %v1811_v17 = vsel %vm1809_vm15, 4294967295, %v5270_v23  ;;  %v4075_v23 = vld [vmem:[#allocation7 + $0x110] sm:$0xf] }
 0x295   : > { %v1812_v29 = vsel %vm1810_vm2, %v1811_v17, 0  ;;  %v4919_v17 = vld [vmem:[#allocation7 + $0x114] sm:$0xf0] }
 0x296   : > { %1748 = vmatpush.bf16.msra.mxu1 %v3978_v37  ;;  %1766 = vmatpush.bf16.msra.mxu2 %v4002_v20 }
 0x29a   : > { %1749 = vmatpush.bf16.msra.mxu1 %v3970_v49 }
 0x29d   : > { %3929 = vmatmul.msk.bf16.vlgmr.msrb.gmra.mxu1 %vm997_vm13, %v5531_v10 }
 0x29e   : > { %1750 = vmatpush.bf16.msra.mxu1 %v3962_v63 }
 0x2a2   : > { %1751 = vmatpush.bf16.msra.mxu1 %v3954_v12 }
 0x2a6   : > { %1752 = vmatpush.bf16.msra.mxu1 %v3946_v26 }
 0x2aa   : > { %1753 = vmatpush.bf16.msra.mxu1 %v3938_v34  ;;  %v4107_v34 = vld [vmem:[#allocation7 + $0x150] sm:$0xf] }
 0x2ee   : > { %v1317_v62 = vpop.f32.mrf.mxu0 }
 0x2f4   : > { %v1291_v19 = vpop.f32.mrf.mxu2 }
 0x2f6   : > { %v1319_v25 = vpop.f32.mrf.mxu0 }
 0x2fa   : > { %v1278_v33 = vpop.f32.mrf.mxu1 }
 0x2fb   : > { %v1292_v35 = vadd.f32 %v1291_v19, %v1278_v33  ;;  %v1798_v19 = vperm.slane %v1796_v9, 0  ;;  %v4939_v33 = vld [vmem:[#allocation7 + $0x1b4] sm:$0xf0]  ;;  %v4083_v9 = vld [vmem:[#allocation7 + $0x120] sm:$0xf] }
 0x2fc   : > { %v1293_v36 = vpop.f32.mrf.mxu2 }
 0x2fe   : > { %v1512_v37 = vpop.f32.mrf.mxu0 }
 0x300   : > { %v1304_v38 = vpop.f32.mrf.mxu3 }
 0x301   : > { %v1318_v39 = vadd.f32 %v1317_v62, %v1304_v38  ;;  %v4147_v38 = vld [vmem:[#allocation7 + $0x1a0] sm:$0xf] }
 0x302   : > { %v1280_v40 = vpop.f32.mrf.mxu1 }
 0x304   : > { %v1473_v41 = vpop.f32.mrf.mxu2 }
 0x305   : > { %v1474_v42 = vadd.f32 %v1473_v41, %v1292_v35  ;;  %v4927_v35 = vld [vmem:[#allocation7 + $0x154] sm:$0xf0]  ;;  %v4156_v41 = vor.u32 %v4939_v33, %v4155_v30  ;;  %v4125_v30 = vld [vmem:[#allocation7 + $0x178] sm:$0xf0] }
 0x306   : > { %v1514_v43 = vpop.f32.mrf.mxu0  ;;  %v4077_v33 = vld [vmem:[#allocation7 + $0x118] sm:$0xf0] }
 0x307   : > { %v4157_v43 = vld [vmem:[#allocation7 + $0x1b8] sm:$0xf0] }
 0x308   : > { %v1306_v44 = vpop.f32.mrf.mxu3 }
 0x309   : > { %v4926_v44 = vld [vmem:[#allocation7 + $0x154] sm:$0xf] }
 0x30a   : > { %v1486_v45 = vpop.f32.mrf.mxu1 }
 0x30b   : > { %v1487_v46 = vadd.f32 %v1486_v45, %v1474_v42  ;;  %v4108_v42 = vor.u32 %v4927_v35, %v4107_v34  ;;  %v4109_v45 = vld [vmem:[#allocation7 + $0x158] sm:$0xf0]  ;;  %v4929_v34 = vld [vmem:[#allocation7 + $0x164] sm:$0xf0]  ;;  %v4067_v35 = vld [vmem:[#allocation7 + $0x100] sm:$0xf] }
 0x30c   : > { %v1475_v47 = vpop.f32.mrf.mxu2 }
 0x30d   : > { %v4937_v47 = vld [vmem:[#allocation7 + $0x1a4] sm:$0xf0] }
 0x310   : > { %v1499_v48 = vpop.f32.mrf.mxu3 }
 0x311   : > { %v1500_v49 = vadd.f32 %v1499_v48, %v1318_v39  ;;  %v4938_v39 = vld [vmem:[#allocation7 + $0x1b4] sm:$0xf]  ;;  %v4099_v48 = vld [vmem:[#allocation7 + $0x140] sm:$0xf] }
 0x312   : > { %v1488_v50 = vpop.f32.mrf.mxu1 }
 0x313   : > { %v1513_v51 = vadd.f32 %v1512_v37, %v1500_v49  ;;  %v4925_v49 = vld [vmem:[#allocation7 + $0x144] sm:$0xf0]  ;;  %v4139_v50 = vld [vmem:[#allocation7 + $0x190] sm:$0xf] }
 0x314   : > { %v1542_v52 = vpop.f32.mrf.mxu2 }
 0x315   : > { %v1547_v53 = vpack.c.bf16 %v1542_v52, %v1542_v52  ;;  %v4936_v52 = vld [vmem:[#allocation7 + $0x1a4] sm:$0xf] }
 0x317   : > { %4043 = vmatmul.msk.bf16.vlgmr.msrb.gmra.mxu3 %vm1265_vm14, %v1547_v53  ;;  %4044 = vmatmul.msk.bf16.vlgmr.msra.gmra.mxu2 %vm1265_vm14, %v1547_v53  ;;  %v4112_v53 = vor.u32 %v4926_v44, %v4109_v45 }
 0x318   : > { %v1501_v54 = vpop.f32.mrf.mxu3 }
 0x319   : > { %v4148_v54 = vor.u32 %v4937_v47, %v4147_v38  ;;  %v4899_v38 = vld [vmem:[#allocation7 + $0x74] sm:$0xf0]  ;;  %v4117_v47 = vld [vmem:[#allocation7 + $0x168] sm:$0xf0] }
 0x31a   : > { %v1529_v55 = vpop.f32.mrf.mxu1 }
 0x31b   : > { %v1546_v56 = vpack.c.bf16 %v1529_v55, %v1529_v55  ;;  %v4100_v55 = vor.u32 %v4925_v49, %v4099_v48  ;;  %v4916_v48 = vld [vmem:[#allocation7 + $0x104] sm:$0xf]  ;;  %v4069_v49 = vld [vmem:[#allocation7 + $0x108] sm:$0xf0] }
 0x31c   : > { %v1544_v58 = vpop.f32.mrf.mxu2 }
 0x31d   : > { %1728 = vmatmul.bf16.vlgmr.msra.gmra.mxu0 %v1546_v56  ;;  %1754 = vmatmul.bf16.vlgmr.msra.gmra.mxu1 %v1546_v56  ;;  %v4149_v56 = vld [vmem:[#allocation7 + $0x1a8] sm:$0xf0]  ;;  %v4924_v58 = vld [vmem:[#allocation7 + $0x144] sm:$0xf] }
 0x322   : > { %v1531_v59 = vpop.f32.mrf.mxu1 }
 0x323   : > { %v4101_v59 = vld [vmem:[#allocation7 + $0x148] sm:$0xf0] }
 0x39a   : > { %v1729_v61 = vpop.f32.mrf.mxu0  ;;  %v1742_v62 = vpop.f32.mrf.mxu3 }
 0x39b   : > { %v1743_v63 = vadd.f32 %v1742_v62, %v1729_v61  ;;  %v1755_v1 = vpop.f32.mrf.mxu1  ;;  %v1768_v2 = vpop.f32.mrf.mxu2  ;;  %v4091_v61 = vld [vmem:[#allocation7 + $0x130] sm:$0xf]  ;;  %v4923_v62 = vld [vmem:[#allocation7 + $0x134] sm:$0xf0] }
 0x39c   : > { %v1769_v3 = vadd.f32 %v1768_v2, %v1755_v1  ;;  %v4934_v1 = vld [vmem:[#allocation7 + $0x194] sm:$0xf]  ;;  %v4104_v2 = vor.u32 %v4924_v58, %v4101_v59  ;;  %v4072_v58 = vor.u32 %v4916_v48, %v4069_v49  ;;  %v4205_v59 = vld [vmem:[#allocation7 + $0x50] sm:$0xf]  ;;  %v4885_v48 = vld [vmem:[#allocation7 + $0x4] sm:$0xf0] }
 0x39d   : > { %v1772_v5 = vadd.f32 %v1743_v63, %v1487_v46  ;;  %v4131_v63 = vld [vmem:[#allocation7 + $0x180] sm:$0xf]  ;;  %v4910_v49 = vld [vmem:[#allocation7 + $0xd4] sm:$0xf] }
 0x39e   : > { %v1773_v7 = vadd.f32 %v1769_v3, %v1513_v51  ;;  %v4160_v51 = vor.u32 %v4938_v39, %v4157_v43  ;;  %v4140_v3 = vor.u32 %v4935_v60, %v4139_v50  ;;  %v4059_v39 = vld [vmem:[#allocation7 + $0xf0] sm:$0xf] }
 0x39f   : > { %v1780_v32 = vadd.f32 %v1776_v0, %v1772_v5  ;;  %v4152_v0 = vor.u32 %v4936_v52, %v4149_v56  ;;  %v4141_v5 = vld [vmem:[#allocation7 + $0x198] sm:$0xf0]  ;;  %v4898_v52 = vld [vmem:[#allocation7 + $0x74] sm:$0xf] }
 0x3a0   : > { %v1781_v12 = vadd.f32 %v1777_v4, %v1773_v7  ;;  %v4092_v4 = vor.u32 %v4923_v62, %v4091_v61  ;;  %v4093_v7 = vld [vmem:[#allocation7 + $0x138] sm:$0xf0]  ;;  %v4051_v61 = vld [vmem:[#allocation7 + $0xe0] sm:$0xf] }
 0x3a1   : > { %vm1782_vm0 = vcmp.ge.f32.partialorder %v1780_v32, 0.0  ;;  %v1784_v14 = vmul.f32 0.2, %v1780_v32 }
 0x3a2   : > { %vm1783_vm1 = vcmp.ge.f32.partialorder %v1781_v12, 0.0  ;;  %v1785_v18 = vmul.f32 0.2, %v1781_v12  ;;  %v1731_v57 = vpop.f32.mrf.mxu0  ;;  %v1744_v15 = vpop.f32.mrf.mxu3 }
 0x3a3   : > { %v1786_v20 = vsel %vm1782_vm0, %v1780_v32, %v1784_v14  ;;  %v1757_v21 = vpop.f32.mrf.mxu1  ;;  %v1770_v22 = vpop.f32.mrf.mxu2  ;;  %v4933_v32 = vld [vmem:[#allocation7 + $0x184] sm:$0xf0]  ;;  %v4144_v14 = vor.u32 %v4934_v1, %v4141_v5  ;;  %v4895_v5 = vld [vmem:[#allocation7 + $0x54] sm:$0xf0] }
 0x3a4   : > { %v1794_v25 = vmul.f32 %v1790_v11, %v1786_v20  ;;  %v1787_v26 = vsel %vm1783_vm1, %v1781_v12, %v1785_v18  ;;  %v4921_v11 = vld [vmem:[#allocation7 + $0x124] sm:$0xf0]  ;;  %v4123_v12 = vld [vmem:[#allocation7 + $0x170] sm:$0xf]  ;;  %v4096_v18 = vor.u32 %v4922_v6, %v4093_v7  ;;  %v4132_v57 = vor.u32 %v4933_v32, %v4131_v63  ;;  %v4920_v20 = vld [vmem:[#allocation7 + $0x124] sm:$0xf] }
 0x3a5   : > { %v1795_v27 = vmul.f32 %v1791_v16, %v1787_v26  ;;  %v4932_v16 = vld [vmem:[#allocation7 + $0x184] sm:$0xf]  ;;  %v4084_v15 = vor.u32 %v4921_v11, %v4083_v9  ;;  %v4085_v21 = vld [vmem:[#allocation7 + $0x128] sm:$0xf0]  ;;  %v4931_v22 = vld [vmem:[#allocation7 + $0x174] sm:$0xf0] }
 0x3a6   : > { %v1802_v28 = vadd.f32 %v1798_v19, %v1794_v25  ;;  %v4133_v19 = vld [vmem:[#allocation7 + $0x188] sm:$0xf0]  ;;  %v4930_v26 = vld [vmem:[#allocation7 + $0x174] sm:$0xf]  ;;  %v4269_v6 = vld [vmem:[#allocation7 + $0xd0] sm:$0xf] }
 0x3a7   : > { %v1803_v31 = vadd.f32 %v1799_v24, %v1795_v27  ;;  %v4115_v24 = vld [vmem:[#allocation7 + $0x160] sm:$0xf]  ;;  %v4136_v25 = vor.u32 %v4932_v16, %v4133_v19  ;;  %v4088_v27 = vor.u32 %v4920_v20, %v4085_v21  ;;  %v4914_v63 = vld [vmem:[#allocation7 + $0xf4] sm:$0xf]  ;;  %v4911_v7 = vld [vmem:[#allocation7 + $0xd4] sm:$0xf0] }
 0x3a8   : > { %v1804_v36 = vpack.c.bf16 %v1802_v28, %v1802_v28  ;;  %v4124_v28 = vor.u32 %v4931_v22, %v4123_v12  ;;  %v4116_v44 = vor.u32 %v4929_v34, %v4115_v24  ;;  %v4206_v12 = vor.u32 %v4895_v5, %v4205_v59  ;;  %v4261_v19 = vld [vmem:[#allocation7 + $0xc0] sm:$0xf]  ;;  %v4909_v20 = vld [vmem:[#allocation7 + $0xc4] sm:$0xf0]  ;;  %v4891_v24 = vld [vmem:[#allocation7 + $0x34] sm:$0xf0] }
 0x3a9   : > { %v1805_v37 = vpack.c.bf16 %v1803_v31, %v1803_v31  ;;  %v4918_v31 = vld [vmem:[#allocation7 + $0x114] sm:$0xf]  ;;  %v4270_v16 = vor.u32 %v4911_v7, %v4269_v6  ;;  %v4887_v34 = vld [vmem:[#allocation7 + $0x14] sm:$0xf0]  ;;  %v4255_v6 = vld [vmem:[#allocation7 + $0xb8] sm:$0xf0] }
 0x3aa   : > { %v5549_v40 = vand.u32 %v1812_v29, %v1804_v36  ;;  %v4917_v36 = vld [vmem:[#allocation7 + $0x104] sm:$0xf0]  ;;  %v4080_v43 = vor.u32 %v4918_v31, %v4077_v33  ;;  %v4173_v33 = vld [vmem:[#allocation7 + $0x10] sm:$0xf]  ;;  %v4906_v5 = vld [vmem:[#allocation7 + $0xb4] sm:$0xf] }
 0x3ab   : > { %v5551_v46 = vand.u32 %v1812_v29, %v1805_v37  ;;  %v4076_v29 = vor.u32 %v4919_v17, %v4075_v23  ;;  %v4221_v37 = vld [vmem:[#allocation7 + $0x70] sm:$0xf]  ;;  %v4068_v45 = vor.u32 %v4917_v36, %v4067_v35  ;;  %v4262_v17 = vor.u32 %v4909_v20, %v4261_v19  ;;  %v4245_v36 = vld [vmem:[#allocation7 + $0xa0] sm:$0xf]  ;;  %v4239_v20 = vld [vmem:[#allocation7 + $0x98] sm:$0xf0] }
 0x3ac   : > { %1826 = vmatpush.bf16.msra.mxu3 %v5549_v40  ;;  %1884 = vmatpush.bf16.msrb.mxu2 %v5549_v40  ;;  %v4222_v50 = vor.u32 %v4899_v38, %v4221_v37  ;;  %v4189_v23 = vld [vmem:[#allocation7 + $0x30] sm:$0xf]  ;;  %v4174_v35 = vor.u32 %v4887_v34, %v4173_v33  ;;  %v4905_v37 = vld [vmem:[#allocation7 + $0xa4] sm:$0xf0]  ;;  %v4892_v38 = vld [vmem:[#allocation7 + $0x44] sm:$0xf]  ;;  %v4258_v7 = vor.u32 %v4906_v5, %v4255_v6 }
 0x3ad   : > { %1839 = vmatpush.bf16.msrb.mxu0 %v5551_v46  ;;  %1897 = vmatpush.bf16.msrb.mxu1 %v5551_v46  ;;  %v4949_v5 = vld [vmem:[#allocation7 + $0x204] sm:$0xf0]  ;;  %v4948_v6 = vld [vmem:[#allocation7 + $0x204] sm:$0xf] }
 0x3af   : > { %4047 = vmatmul.msk.bf16.vlgmr.msrb.gmra.mxu2 %vm1806_vm3, %v5500_v8  ;;  %4045 = vmatmul.msk.bf16.vlgmr.msra.gmra.mxu3 %vm1806_vm3, %v5507_v13 }
 0x3b0   : > { %2077 = vmatpush.bf16.msrb.mxu3 %v4108_v42  ;;  %4048 = vmatmul.msk.bf16.vlgmr.msrb.gmra.mxu1 %vm1806_vm3, %v5500_v8  ;;  %v4928_v42 = vld [vmem:[#allocation7 + $0x164] sm:$0xf] }
 0x3b1   : > { %2092 = vmatpush.bf16.msra.mxu0 %v4156_v41  ;;  %2118 = vmatpush.bf16.msra.mxu1 %v4160_v51  ;;  %v4128_v41 = vor.u32 %v4930_v26, %v4125_v30  ;;  %v4915_v51 = vld [vmem:[#allocation7 + $0xf4] sm:$0xf0]  ;;  %v4120_v56 = vor.u32 %v4928_v42, %v4117_v47  ;;  %v4889_v30 = vld [vmem:[#allocation7 + $0x24] sm:$0xf0]  ;;  %v4912_v42 = vld [vmem:[#allocation7 + $0xe4] sm:$0xf] }
 0x3b2   : > { %4046 = vmatmul.msk.bf16.vlgmr.msrb.gmra.mxu0 %vm1806_vm3, %v5507_v13  ;;  %2103 = vmatpush.bf16.msra.mxu2 %v4112_v53  ;;  %v4223_v53 = vld [vmem:[#allocation7 + $0x78] sm:$0xf0]  ;;  %v4060_v60 = vor.u32 %v4915_v51, %v4059_v39  ;;  %v4907_v26 = vld [vmem:[#allocation7 + $0xb4] sm:$0xf0]  ;;  %v4246_v39 = vor.u32 %v4905_v37, %v4245_v36  ;;  %v4165_v47 = vld [vmem:[#allocation7] sm:$0xf] }
 0x3b3   : > { %v4226_v62 = vor.u32 %v4898_v52, %v4223_v53  ;;  %v4271_v51 = vld [vmem:[#allocation7 + $0xd8] sm:$0xf0]  ;;  %v4237_v53 = vld [vmem:[#allocation7 + $0x90] sm:$0xf]  ;;  %v4955_v37 = vld [vmem:[#allocation7 + $0x234] sm:$0xf0] }
 0x3b4   : > { %2078 = vmatpush.bf16.msrb.mxu3 %v4100_v55  ;;  %v4897_v55 = vld [vmem:[#allocation7 + $0x64] sm:$0xf0]  ;;  %v4274_v52 = vor.u32 %v4910_v49, %v4271_v51  ;;  %v4967_v49 = vld [vmem:[#allocation7 + $0x294] sm:$0xf0] }
 0x3b5   : > { %2093 = vmatpush.bf16.msra.mxu0 %v4148_v54  ;;  %2119 = vmatpush.bf16.msra.mxu1 %v4152_v0  ;;  %v4213_v54 = vld [vmem:[#allocation7 + $0x60] sm:$0xf]  ;;  %v4061_v0 = vld [vmem:[#allocation7 + $0xf8] sm:$0xf0] }
 0x3b6   : > { %2104 = vmatpush.bf16.msra.mxu2 %v4104_v2  ;;  %v4214_v1 = vor.u32 %v4897_v55, %v4213_v54  ;;  %v4913_v2 = vld [vmem:[#allocation7 + $0xe4] sm:$0xf0]  ;;  %v4064_v32 = vor.u32 %v4914_v63, %v4061_v0  ;;  %v4903_v54 = vld [vmem:[#allocation7 + $0x94] sm:$0xf0]  ;;  %v4890_v55 = vld [vmem:[#allocation7 + $0x34] sm:$0xf] }
 0x3b7   : > { %v4052_v9 = vor.u32 %v4913_v2, %v4051_v61  ;;  %v4263_v61 = vld [vmem:[#allocation7 + $0xc8] sm:$0xf0]  ;;  %v4229_v63 = vld [vmem:[#allocation7 + $0x80] sm:$0xf]  ;;  %v4901_v0 = vld [vmem:[#allocation7 + $0x84] sm:$0xf0] }
 0x3b8   : > { %2079 = vmatpush.bf16.msrb.mxu3 %v4092_v4  ;;  %v4215_v4 = vld [vmem:[#allocation7 + $0x68] sm:$0xf0]  ;;  %v4230_v2 = vor.u32 %v4901_v0, %v4229_v63  ;;  %v4965_v63 = vld [vmem:[#allocation7 + $0x284] sm:$0xf0]  ;;  %v4964_v0 = vld [vmem:[#allocation7 + $0x284] sm:$0xf] }
 0x3b9   : > { %2094 = vmatpush.bf16.msra.mxu0 %v4140_v3  ;;  %2120 = vmatpush.bf16.msra.mxu1 %v4144_v14  ;;  %v4896_v3 = vld [vmem:[#allocation7 + $0x64] sm:$0xf]  ;;  %v4197_v14 = vld [vmem:[#allocation7 + $0x40] sm:$0xf] }
 0x3ba   : > { %2105 = vmatpush.bf16.msra.mxu2 %v4096_v18  ;;  %v4218_v11 = vor.u32 %v4896_v3, %v4215_v4  ;;  %v4894_v18 = vld [vmem:[#allocation7 + $0x54] sm:$0xf]  ;;  %v4183_v3 = vld [vmem:[#allocation7 + $0x28] sm:$0xf0] }
 0x3bc   : > { %2080 = vmatpush.bf16.msrb.mxu3 %v4084_v15  ;;  %v4893_v15 = vld [vmem:[#allocation7 + $0x44] sm:$0xf0] }
 0x3bd   : > { %2095 = vmatpush.bf16.msra.mxu0 %v4132_v57  ;;  %2121 = vmatpush.bf16.msra.mxu1 %v4136_v25  ;;  %v4207_v57 = vld [vmem:[#allocation7 + $0x58] sm:$0xf0]  ;;  %v4198_v22 = vor.u32 %v4893_v15, %v4197_v14  ;;  %v4253_v25 = vld [vmem:[#allocation7 + $0xb0] sm:$0xf]  ;;  %v4247_v14 = vld [vmem:[#allocation7 + $0xa8] sm:$0xf0] }
 0x3be   : > { %2106 = vmatpush.bf16.msra.mxu2 %v4088_v27  ;;  %v4210_v21 = vor.u32 %v4894_v18, %v4207_v57  ;;  %v4190_v27 = vor.u32 %v4891_v24, %v4189_v23  ;;  %v4884_v18 = vld [vmem:[#allocation7 + $0x4] sm:$0xf]  ;;  %v4167_v57 = vld [vmem:[#allocation7 + $0x8] sm:$0xf0]  ;;  %v4902_v15 = vld [vmem:[#allocation7 + $0x94] sm:$0xf] }
 0x3bf   : > { %v4170_v19 = vor.u32 %v4884_v18, %v4167_v57  ;;  %v4231_v23 = vld [vmem:[#allocation7 + $0x88] sm:$0xf0]  ;;  %v4371_v18 = vld [vmem:[#allocation7 + $0x278] sm:$0xf0]  ;;  %v4305_v57 = vld [vmem:[#allocation7 + $0x1f0] sm:$0xf] }
 0x3c0   : > { %2081 = vmatpush.bf16.msrb.mxu3 %v4076_v29  ;;  %v4181_v29 = vld [vmem:[#allocation7 + $0x20] sm:$0xf] }
 0x3c1   : > { %2096 = vmatpush.bf16.msra.mxu0 %v4124_v28  ;;  %2122 = vmatpush.bf16.msra.mxu1 %v4128_v41  ;;  %v4254_v28 = vor.u32 %v4907_v26, %v4253_v25  ;;  %v4182_v31 = vor.u32 %v4889_v30, %v4181_v29  ;;  %v4199_v41 = vld [vmem:[#allocation7 + $0x48] sm:$0xf0] }
 0x3c2   : > { %2107 = vmatpush.bf16.msra.mxu2 %v4080_v43  ;;  %v4053_v43 = vld [vmem:[#allocation7 + $0xe8] sm:$0xf0] }
 0x3c4   : > { %2082 = vmatpush.bf16.msrb.mxu3 %v4068_v45  ;;  %v4056_v45 = vor.u32 %v4912_v42, %v4053_v43  ;;  %v4329_v42 = vld [vmem:[#allocation7 + $0x220] sm:$0xf]  ;;  %v4953_v43 = vld [vmem:[#allocation7 + $0x224] sm:$0xf0] }
 0x3c5   : > { %2097 = vmatpush.bf16.msra.mxu0 %v4116_v44  ;;  %2123 = vmatpush.bf16.msra.mxu1 %v4120_v56  ;;  %v4202_v44 = vor.u32 %v4892_v38, %v4199_v41  ;;  %v4238_v56 = vor.u32 %v4903_v54, %v4237_v53  ;;  %v4954_v38 = vld [vmem:[#allocation7 + $0x234] sm:$0xf]  ;;  %v4387_v53 = vld [vmem:[#allocation7 + $0x298] sm:$0xf0]  ;;  %v4321_v54 = vld [vmem:[#allocation7 + $0x210] sm:$0xf] }
 0x3c6   : > { %2108 = vmatpush.bf16.msra.mxu2 %v4072_v58  ;;  %v4191_v58 = vld [vmem:[#allocation7 + $0x38] sm:$0xf0] }
 0x3c7   : > { %v4194_v59 = vor.u32 %v4890_v55, %v4191_v58  ;;  %v4950_v58 = vld [vmem:[#allocation7 + $0x214] sm:$0xf] }
 0x3c8   : > { %2083 = vmatpush.bf16.msrb.mxu3 %v4060_v60  ;;  %v4908_v60 = vld [vmem:[#allocation7 + $0xc4] sm:$0xf] }
 0x3c9   : > { %2272 = vmatpush.bf16.msrb.mxu0 %v4222_v50  ;;  %2298 = vmatpush.bf16.msrb.mxu1 %v4226_v62  ;;  %v4166_v50 = vor.u32 %v4885_v48, %v4165_v47  ;;  %v4266_v62 = vor.u32 %v4908_v60, %v4263_v61  ;;  %v4331_v47 = vld [vmem:[#allocation7 + $0x228] sm:$0xf0]  ;;  %v4385_v48 = vld [vmem:[#allocation7 + $0x290] sm:$0xf] }
 0x3ca   : > { %2109 = vmatpush.bf16.msra.mxu2 %v4064_v32  ;;  %v4886_v32 = vld [vmem:[#allocation7 + $0x14] sm:$0xf]  ;;  %v4386_v51 = vor.u32 %v4967_v49, %v4385_v48 }
 0x3cc   : > { %2084 = vmatpush.bf16.msrb.mxu3 %v4052_v9  ;;  %v4175_v9 = vld [vmem:[#allocation7 + $0x18] sm:$0xf0] }
 0x3cd   : > { %2273 = vmatpush.bf16.msrb.mxu0 %v4214_v1  ;;  %2299 = vmatpush.bf16.msrb.mxu1 %v4218_v11  ;;  %v4888_v1 = vld [vmem:[#allocation7 + $0x24] sm:$0xf]  ;;  %v4178_v11 = vor.u32 %v4886_v32, %v4175_v9  ;;  %v4315_v32 = vld [vmem:[#allocation7 + $0x208] sm:$0xf0] }
 0x3ce   : > { %2110 = vmatpush.bf16.msra.mxu2 %v4056_v45  ;;  %v4186_v4 = vor.u32 %v4888_v1, %v4183_v3  ;;  %v4330_v45 = vor.u32 %v4953_v43, %v4329_v42  ;;  %v4318_v9 = vor.u32 %v4948_v6, %v4315_v32  ;;  %v4289_v42 = vld [vmem:[#allocation7 + $0x1d0] sm:$0xf] }
 0x3d0   : > { %2287 = vmatpush.bf16.msra.mxu3 %v4270_v16 }
 0x3d1   : > { %2274 = vmatpush.bf16.msrb.mxu0 %v4206_v12  ;;  %2300 = vmatpush.bf16.msrb.mxu1 %v4210_v21  ;;  %v4904_v12 = vld [vmem:[#allocation7 + $0xa4] sm:$0xf]  ;;  %v4242_v21 = vor.u32 %v4902_v15, %v4239_v20  ;;  %v4947_v15 = vld [vmem:[#allocation7 + $0x1f4] sm:$0xf0] }
 0x3d2   : > { %2313 = vmatpush.bf16.msrb.mxu2 %v4274_v52  ;;  %v4250_v16 = vor.u32 %v4904_v12, %v4247_v14  ;;  %v4966_v52 = vld [vmem:[#allocation7 + $0x294] sm:$0xf]  ;;  %v4963_v12 = vld [vmem:[#allocation7 + $0x274] sm:$0xf0]  ;;  %v4306_v20 = vor.u32 %v4947_v15, %v4305_v57 }
 0x3d3   : > { %v4390_v55 = vor.u32 %v4966_v52, %v4387_v53  ;;  %v4962_v14 = vld [vmem:[#allocation7 + $0x274] sm:$0xf]  ;;  %v4956_v52 = vld [vmem:[#allocation7 + $0x244] sm:$0xf] }
 0x3d4   : > { %2288 = vmatpush.bf16.msra.mxu3 %v4262_v17 }
 0x3d5   : > { %2275 = vmatpush.bf16.msrb.mxu0 %v4198_v22  ;;  %2301 = vmatpush.bf16.msrb.mxu1 %v4202_v44  ;;  %v4900_v22 = vld [vmem:[#allocation7 + $0x84] sm:$0xf] }
 0x3d6   : > { %2314 = vmatpush.bf16.msrb.mxu2 %v4266_v62  ;;  %v4234_v17 = vor.u32 %v4900_v22, %v4231_v23  ;;  %v4952_v44 = vld [vmem:[#allocation7 + $0x224] sm:$0xf]  ;;  %v4377_v62 = vld [vmem:[#allocation7 + $0x280] sm:$0xf]  ;;  %v4307_v22 = vld [vmem:[#allocation7 + $0x1f8] sm:$0xf0] }
 0x3d7   : > { %v4378_v1 = vor.u32 %v4965_v63, %v4377_v62  ;;  %v4361_v23 = vld [vmem:[#allocation7 + $0x260] sm:$0xf] }
 0x3d8   : > { %2289 = vmatpush.bf16.msra.mxu3 %v4254_v28 }
 0x3d9   : > { %2276 = vmatpush.bf16.msrb.mxu0 %v4190_v27  ;;  %2302 = vmatpush.bf16.msrb.mxu1 %v4194_v59  ;;  %v4323_v59 = vld [vmem:[#allocation7 + $0x218] sm:$0xf0] }
 0x3da   : > { %2315 = vmatpush.bf16.msrb.mxu2 %v4258_v7  ;;  %v4326_v61 = vor.u32 %v4950_v58, %v4323_v59  ;;  %v4281_v59 = vld [vmem:[#allocation7 + $0x1c0] sm:$0xf] }
 0x3dc   : > { %2290 = vmatpush.bf16.msra.mxu3 %v4246_v39  ;;  %v4339_v39 = vld [vmem:[#allocation7 + $0x238] sm:$0xf0] }
 0x3dd   : > { %2277 = vmatpush.bf16.msrb.mxu0 %v4182_v31  ;;  %2303 = vmatpush.bf16.msrb.mxu1 %v4186_v4  ;;  %v4342_v41 = vor.u32 %v4954_v38, %v4339_v39  ;;  %v4313_v4 = vld [vmem:[#allocation7 + $0x200] sm:$0xf]  ;;  %v4958_v39 = vld [vmem:[#allocation7 + $0x254] sm:$0xf] }
 0x3de   : > { %2316 = vmatpush.bf16.msrb.mxu2 %v4250_v16  ;;  %v4314_v7 = vor.u32 %v4949_v5, %v4313_v4 }
 0x3e0   : > { %2291 = vmatpush.bf16.msra.mxu3 %v4238_v56  ;;  %v4951_v56 = vld [vmem:[#allocation7 + $0x214] sm:$0xf0] }
 0x3e1   : > { %2278 = vmatpush.bf16.msrb.mxu0 %v4174_v35  ;;  %2304 = vmatpush.bf16.msrb.mxu1 %v4178_v11  ;;  %v4322_v60 = vor.u32 %v4951_v56, %v4321_v54  ;;  %v4369_v11 = vld [vmem:[#allocation7 + $0x270] sm:$0xf]  ;;  %v4347_v54 = vld [vmem:[#allocation7 + $0x248] sm:$0xf0] }
 0x3e2   : > { %2317 = vmatpush.bf16.msrb.mxu2 %v4242_v21  ;;  %v4370_v16 = vor.u32 %v4963_v12, %v4369_v11  ;;  %v4946_v21 = vld [vmem:[#allocation7 + $0x1f4] sm:$0xf]  ;;  %v4350_v58 = vor.u32 %v4956_v52, %v4347_v54 }
 0x3e4   : > { %2292 = vmatpush.bf16.msra.mxu3 %v4230_v2  ;;  %v4379_v2 = vld [vmem:[#allocation7 + $0x288] sm:$0xf0] }
 0x3e5   : > { %2279 = vmatpush.bf16.msrb.mxu0 %v4166_v50  ;;  %2305 = vmatpush.bf16.msrb.mxu1 %v4170_v19  ;;  %v4334_v50 = vor.u32 %v4952_v44, %v4331_v47  ;;  %v4382_v3 = vor.u32 %v4964_v0, %v4379_v2  ;;  %v4374_v19 = vor.u32 %v4962_v14, %v4371_v18  ;;  %v4943_v44 = vld [vmem:[#allocation7 + $0x1d4] sm:$0xf0]  ;;  %v4291_v47 = vld [vmem:[#allocation7 + $0x1d8] sm:$0xf0] }
 0x3e6   : > { %2318 = vmatpush.bf16.msrb.mxu2 %v4234_v17  ;;  %v4310_v17 = vor.u32 %v4946_v21, %v4307_v22  ;;  %v4290_v48 = vor.u32 %v4943_v44, %v4289_v42  ;;  %v2602_v42 = vld [vmem:[%s5644_s12] sm:$0x3] }
 0x42d   : > { %v1899_v24 = vpop.f32.mrf.mxu1 }
 0x42e   : > { %v1904_v26 = vpack.c.bf16 %v1899_v24, %v1899_v24  ;;  %v4961_v24 = vld [vmem:[#allocation7 + $0x264] sm:$0xf0] }
 0x42f   : > { %v1841_v25 = vpop.f32.mrf.mxu0 }
 0x430   : > { %4161 = vmatmul.msk.bf16.vlgmr.msra.gmra.mxu0 %vm1265_vm14, %v1904_v26  ;;  %4162 = vmatmul.msk.bf16.vlgmr.msra.gmra.mxu1 %vm1265_vm14, %v1904_v26  ;;  %v1846_v36 = vpack.c.bf16 %v1841_v25, %v1841_v25  ;;  %v4960_v25 = vld [vmem:[#allocation7 + $0x264] sm:$0xf]  ;;  %v4363_v26 = vld [vmem:[#allocation7 + $0x268] sm:$0xf0] }
 0x431   : > { %2346 = vmatpush.bf16.msra.mxu0 %v5551_v46  ;;  %v4337_v46 = vld [vmem:[#allocation7 + $0x230] sm:$0xf]  ;;  %2541 = vmatpush.bf16.msra.mxu1 %v4386_v51  ;;  %v4957_v51 = vld [vmem:[#allocation7 + $0x244] sm:$0xf0] }
 0x432   : > { %v1886_v27 = vpop.f32.mrf.mxu2  ;;  %v1828_v28 = vpop.f32.mrf.mxu3 }
 0x433   : > { %v1903_v29 = vpack.c.bf16 %v1886_v27, %v1886_v27  ;;  %v1845_v35 = vpack.c.bf16 %v1828_v28, %v1828_v28 }
 0x435   : > { %2085 = vmatmul.bf16.vlgmr.msrb.gmra.mxu3 %v1903_v29  ;;  %2111 = vmatmul.bf16.vlgmr.msra.gmra.mxu2 %v1903_v29  ;;  %v1901_v30 = vpop.f32.mrf.mxu1  ;;  %v4362_v29 = vor.u32 %v4961_v24, %v4361_v23 }
 0x436   : > { %2333 = vmatpush.bf16.msrb.mxu3 %v5549_v40  ;;  %v4338_v40 = vor.u32 %v4955_v37, %v4337_v46  ;;  %2542 = vmatpush.bf16.msra.mxu1 %v4378_v1  ;;  %v4366_v30 = vor.u32 %v4960_v25, %v4363_v26  ;;  %v4353_v46 = vld [vmem:[#allocation7 + $0x250] sm:$0xf]  ;;  %v4959_v37 = vld [vmem:[#allocation7 + $0x254] sm:$0xf0]  ;;  %v4283_v1 = vld [vmem:[#allocation7 + $0x1c8] sm:$0xf0] }
 0x437   : > { %v1843_v31 = vpop.f32.mrf.mxu0 }
 0x438   : > { %2526 = vmatpush.bf16.msra.mxu2 %v4338_v40  ;;  %v4297_v31 = vld [vmem:[#allocation7 + $0x1e0] sm:$0xf]  ;;  %v4354_v40 = vor.u32 %v4959_v37, %v4353_v46 }
 0x43a   : > { %v1888_v33 = vpop.f32.mrf.mxu2  ;;  %v1830_v34 = vpop.f32.mrf.mxu3  ;;  %2543 = vmatpush.bf16.msra.mxu1 %v4370_v16 }
 0x43b   : > { %v4945_v33 = vld [vmem:[#allocation7 + $0x1e4] sm:$0xf0]  ;;  %v4944_v34 = vld [vmem:[#allocation7 + $0x1e4] sm:$0xf] }
 0x43c   : > { %2527 = vmatpush.bf16.msra.mxu2 %v4330_v45  ;;  %v4942_v45 = vld [vmem:[#allocation7 + $0x1d4] sm:$0xf] }
 0x43d   : > { %v4294_v49 = vor.u32 %v4942_v45, %v4291_v47 }
 0x43e   : > { %2544 = vmatpush.bf16.msra.mxu1 %v4362_v29 }
 0x440   : > { %2280 = vmatmul.bf16.vlgmr.msrb.gmra.mxu0 %v1845_v35  ;;  %2306 = vmatmul.bf16.vlgmr.msrb.gmra.mxu1 %v1845_v35  ;;  %v4298_v35 = vor.u32 %v4945_v33, %v4297_v31 }
 0x441   : > { %2567 = vmatpush.bf16.msrb.mxu0 %v4390_v55  ;;  %2528 = vmatpush.bf16.msra.mxu2 %v4322_v60  ;;  %v4941_v60 = vld [vmem:[#allocation7 + $0x1c4] sm:$0xf0] }
 0x442   : > { %2545 = vmatpush.bf16.msra.mxu1 %v4354_v40  ;;  %v4282_v0 = vor.u32 %v4941_v60, %v4281_v59  ;;  %v2594_v40 = vld [vmem:[%s5643_s11] sm:$0x3] }
 0x443   : > { %v2597_v44 = vperm.slane %v2594_v40, 1  ;;  %v5015_v60 = vld [vmem:[#allocation8 + $0x174] sm:$0xf0] }
 0x445   : > { %4275 = vmatmul.msk.bf16.vlgmr.msra.gmra.mxu3 %vm1265_vm14, %v1846_v36  ;;  %4276 = vmatmul.msk.bf16.vlgmr.msrb.gmra.mxu2 %vm1265_vm14, %v1846_v36  ;;  %v4299_v36 = vld [vmem:[#allocation7 + $0x1e8] sm:$0xf0] }
 0x446   : > { %2552 = vmatpush.bf16.msra.mxu3 %v4342_v41  ;;  %2568 = vmatpush.bf16.msrb.mxu0 %v4382_v3  ;;  %v4302_v38 = vor.u32 %v4944_v34, %v4299_v36  ;;  %v4355_v41 = vld [vmem:[#allocation7 + $0x258] sm:$0xf0] }
 0x447   : > { %2529 = vmatpush.bf16.msra.mxu2 %v4314_v7  ;;  %v4358_v43 = vor.u32 %v4958_v39, %v4355_v41 }
 0x44a   : > { %2553 = vmatpush.bf16.msra.mxu3 %v4334_v50  ;;  %2569 = vmatpush.bf16.msrb.mxu0 %v4374_v19  ;;  %v4345_v50 = vld [vmem:[#allocation7 + $0x240] sm:$0xf] }
 0x44b   : > { %2530 = vmatpush.bf16.msra.mxu2 %v4306_v20  ;;  %v4346_v53 = vor.u32 %v4957_v51, %v4345_v50  ;;  %v2604_v50 = vperm.slane %v2602_v42, 0  ;;  %v2605_v51 = vperm.slane %v2602_v42, 1  ;;  %v4497_v42 = vld [vmem:[#allocation8 + $0x1c8] sm:$0xf0] }
 0x44d   : > { %2546 = vmatpush.bf16.msra.mxu1 %v4346_v53 }
 0x44e   : > { %2554 = vmatpush.bf16.msra.mxu3 %v4326_v61  ;;  %2570 = vmatpush.bf16.msrb.mxu0 %v4366_v30  ;;  %v4940_v61 = vld [vmem:[#allocation7 + $0x1c4] sm:$0xf]  ;;  %v2580_v30 = vld [vmem:[%s5642_s10] sm:$0x3] }
 0x44f   : > { %2531 = vmatpush.bf16.msra.mxu2 %v4298_v35  ;;  %v4286_v4 = vor.u32 %v4940_v61, %v4283_v1  ;;  %v2582_v35 = vperm.slane %v2580_v30, 0  ;;  %v2583_v46 = vperm.slane %v2580_v30, 1  ;;  %v4519_v61 = vld [vmem:[#allocation8 + $0x1f0] sm:$0xf]  ;;  %v4447_v1 = vld [vmem:[#allocation8 + $0x160] sm:$0xf] }
 0x450   : > { %4278 = vmatmul.msk.bf16.vlgmr.msra.gmra.mxu0 %vm1806_vm3, %v5531_v10 }
 0x452   : > { %2555 = vmatpush.bf16.msra.mxu3 %v4318_v9  ;;  %2571 = vmatpush.bf16.msrb.mxu0 %v4358_v43  ;;  %v2596_v43 = vperm.slane %v2594_v40, 0  ;;  %v5024_v40 = vld [vmem:[#allocation8 + $0x1c4] sm:$0xf] }
 0x453   : > { %2532 = vmatpush.bf16.msra.mxu2 %v4290_v48 }
 0x455   : > { %4277 = vmatmul.msk.bf16.vlgmr.msrb.gmra.mxu3 %vm1806_vm3, %v5531_v10 }
 0x456   : > { %2556 = vmatpush.bf16.msra.mxu3 %v4310_v17  ;;  %2572 = vmatpush.bf16.msrb.mxu0 %v4350_v58 }
 0x457   : > { %2533 = vmatpush.bf16.msra.mxu2 %v4282_v0 }
 0x45a   : > { %2557 = vmatpush.bf16.msra.mxu3 %v4302_v38 }
 0x45e   : > { %2558 = vmatpush.bf16.msra.mxu3 %v4294_v49 }
 0x462   : > { %2559 = vmatpush.bf16.msra.mxu3 %v4286_v4 }
 0x4ad   : > { %v2099_v27 = vpop.f32.mrf.mxu0  ;;  %v2125_v28 = vpop.f32.mrf.mxu1 }
 0x4b5   : > { %v2101_v55 = vpop.f32.mrf.mxu0  ;;  %v2127_v56 = vpop.f32.mrf.mxu1 }
 0x4b6   : > { %v4455_v56 = vld [vmem:[#allocation8 + $0x170] sm:$0xf] }
 0x4b7   : > { %v4456_v4 = vor.u32 %v5015_v60, %v4455_v56  ;;  %v5006_v56 = vld [vmem:[#allocation8 + $0x134] sm:$0xf]  ;;  %v4479_v60 = vld [vmem:[#allocation8 + $0x1a0] sm:$0xf] }
 0x4b8   : > { %v2086_v62 = vpop.f32.mrf.mxu3  ;;  %v2112_v63 = vpop.f32.mrf.mxu2 }
 0x4b9   : > { %v2100_v2 = vadd.f32 %v2099_v27, %v2086_v62  ;;  %v2126_v3 = vadd.f32 %v2125_v28, %v2112_v63  ;;  %v5031_v62 = vld [vmem:[#allocation8 + $0x1f4] sm:$0xf0] }
 0x4bd   : > { %v2281_v5 = vpop.f32.mrf.mxu0  ;;  %v2307_v6 = vpop.f32.mrf.mxu1 }
 0x4be   : > { %v2282_v7 = vadd.f32 %v2281_v5, %v2100_v2  ;;  %v2308_v32 = vadd.f32 %v2307_v6, %v2126_v3  ;;  %v5013_v2 = vld [vmem:[#allocation8 + $0x164] sm:$0xf0]  ;;  %v5030_v3 = vld [vmem:[#allocation8 + $0x1f4] sm:$0xf]  ;;  %v4520_v5 = vor.u32 %v5031_v62, %v4519_v61  ;;  %v4521_v6 = vld [vmem:[#allocation8 + $0x1f8] sm:$0xf0] }
 0x4bf   : > { %v5021_v61 = vld [vmem:[#allocation8 + $0x1a4] sm:$0xf0]  ;;  %v4407_v62 = vld [vmem:[#allocation8 + $0x110] sm:$0xf] }
 0x4c0   : > { %v2088_v9 = vpop.f32.mrf.mxu3  ;;  %v2114_v11 = vpop.f32.mrf.mxu2 }
 0x4c5   : > { %v2283_v12 = vpop.f32.mrf.mxu0  ;;  %v2309_v14 = vpop.f32.mrf.mxu1 }
 0x4c6   : > { %v4511_v12 = vld [vmem:[#allocation8 + $0x1e0] sm:$0xf]  ;;  %v5029_v14 = vld [vmem:[#allocation8 + $0x1e4] sm:$0xf0] }
 0x4c8   : > { %v2294_v16 = vpop.f32.mrf.mxu3  ;;  %v2320_v18 = vpop.f32.mrf.mxu2 }
 0x4c9   : > { %v2295_v57 = vadd.f32 %v2294_v16, %v2282_v7  ;;  %v2321_v15 = vadd.f32 %v2320_v18, %v2308_v32  ;;  %v5014_v7 = vld [vmem:[#allocation8 + $0x174] sm:$0xf]  ;;  %v4457_v32 = vld [vmem:[#allocation8 + $0x178] sm:$0xf0]  ;;  %v4439_v16 = vld [vmem:[#allocation8 + $0x150] sm:$0xf]  ;;  %v4524_v18 = vor.u32 %v5030_v3, %v4521_v6  ;;  %v4480_v3 = vor.u32 %v5021_v61, %v4479_v60 }
 0x4ca   : > { %v4417_v6 = vld [vmem:[#allocation8 + $0x128] sm:$0xf0]  ;;  %v4559_v61 = vld [vmem:[#allocation8 + $0x40] sm:$0xf] }
 0x4cd   : > { %v2348_v19 = vpop.f32.mrf.mxu0 }
 0x4ce   : > { %v2353_v20 = vpack.c.bf16 %v2348_v19, %v2348_v19  ;;  %v4448_v19 = vor.u32 %v5013_v2, %v4447_v1  ;;  %v5020_v1 = vld [vmem:[#allocation8 + $0x1a4] sm:$0xf] }
 0x4d0   : > { %v2296_v21 = vpop.f32.mrf.mxu3  ;;  %v2322_v22 = vpop.f32.mrf.mxu2  ;;  %4391 = vmatmul.msk.bf16.vlgmr.msra.gmra.mxu1 %vm1265_vm14, %v2353_v20  ;;  %4392 = vmatmul.msk.bf16.vlgmr.msrb.gmra.mxu0 %vm1265_vm14, %v2353_v20  ;;  %v4512_v20 = vor.u32 %v5029_v14, %v4511_v12  ;;  %v5019_v12 = vld [vmem:[#allocation8 + $0x194] sm:$0xf0]  ;;  %v4399_v14 = vld [vmem:[#allocation8 + $0x100] sm:$0xf] }
 0x4d1   : > { %v4513_v21 = vld [vmem:[#allocation8 + $0x1e8] sm:$0xf0]  ;;  %v5012_v22 = vld [vmem:[#allocation8 + $0x164] sm:$0xf] }
 0x4d5   : > { %v2350_v23 = vpop.f32.mrf.mxu0 }
 0x4d6   : > { %v4449_v23 = vld [vmem:[#allocation8 + $0x168] sm:$0xf0] }
 0x4d8   : > { %v2335_v17 = vpop.f32.mrf.mxu3 }
 0x4d9   : > { %v2352_v24 = vpack.c.bf16 %v2335_v17, %v2335_v17  ;;  %v5011_v17 = vld [vmem:[#allocation8 + $0x154] sm:$0xf0] }
 0x4da   : > { %v4440_v30 = vor.u32 %v5011_v17, %v4439_v16  ;;  %v5001_v16 = vld [vmem:[#allocation8 + $0x104] sm:$0xf0]  ;;  %v4583_v17 = vld [vmem:[#allocation8 + $0x70] sm:$0xf] }
 0x4db   : > { %2534 = vmatmul.bf16.vlgmr.msra.gmra.mxu2 %v2352_v24  ;;  %2560 = vmatmul.bf16.vlgmr.msra.gmra.mxu3 %v2352_v24  ;;  %v4503_v24 = vld [vmem:[#allocation8 + $0x1d0] sm:$0xf] }
 0x4e0   : > { %v2337_v25 = vpop.f32.mrf.mxu3 }
 0x4e1   : > { %v5027_v25 = vld [vmem:[#allocation8 + $0x1d4] sm:$0xf0] }
 0x54d   : > { %v2548_v26 = vpop.f32.mrf.mxu1  ;;  %v2574_v27 = vpop.f32.mrf.mxu0 }
 0x555   : > { %v2550_v28 = vpop.f32.mrf.mxu1  ;;  %v2576_v29 = vpop.f32.mrf.mxu0 }
 0x556   : > { %v4452_v28 = vor.u32 %v5012_v22, %v4449_v23  ;;  %v5026_v29 = vld [vmem:[#allocation8 + $0x1d4] sm:$0xf]  ;;  %v4409_v23 = vld [vmem:[#allocation8 + $0x118] sm:$0xf0] }
 0x557   : > { %v5002_v22 = vld [vmem:[#allocation8 + $0x114] sm:$0xf] }
 0x55e   : > { %v2535_v31 = vpop.f32.mrf.mxu2  ;;  %v2561_v33 = vpop.f32.mrf.mxu3 }
 0x55f   : > { %v2549_v34 = vadd.f32 %v2548_v26, %v2535_v31  ;;  %v2575_v36 = vadd.f32 %v2574_v27, %v2561_v33  ;;  %v4431_v26 = vld [vmem:[#allocation8 + $0x140] sm:$0xf]  ;;  %v4504_v31 = vor.u32 %v5027_v25, %v4503_v24  ;;  %v5010_v33 = vld [vmem:[#allocation8 + $0x154] sm:$0xf]  ;;  %v5017_v25 = vld [vmem:[#allocation8 + $0x184] sm:$0xf0] }
 0x560   : > { %v4463_v24 = vld [vmem:[#allocation8 + $0x180] sm:$0xf] }
 0x561   : > { %v2578_v37 = vadd.f32 %v2549_v34, %v2295_v57  ;;  %v2579_v38 = vadd.f32 %v2575_v36, %v2321_v15  ;;  %v4460_v57 = vor.u32 %v5014_v7, %v4457_v32  ;;  %v5028_v15 = vld [vmem:[#allocation8 + $0x1e4] sm:$0xf]  ;;  %v4441_v34 = vld [vmem:[#allocation8 + $0x158] sm:$0xf0]  ;;  %v4495_v36 = vld [vmem:[#allocation8 + $0x1c0] sm:$0xf] }
 0x562   : > { %v4516_v27 = vor.u32 %v5028_v15, %v4513_v21  ;;  %v5003_v7 = vld [vmem:[#allocation8 + $0x114] sm:$0xf0]  ;;  %v4471_v32 = vld [vmem:[#allocation8 + $0x190] sm:$0xf]  ;;  %v5018_v15 = vld [vmem:[#allocation8 + $0x194] sm:$0xf] }
 0x563   : > { %v2586_v39 = vadd.f32 %v2582_v35, %v2578_v37  ;;  %v2587_v41 = vadd.f32 %v2583_v46, %v2579_v38  ;;  %v5009_v35 = vld [vmem:[#allocation8 + $0x144] sm:$0xf0]  ;;  %v4423_v37 = vld [vmem:[#allocation8 + $0x130] sm:$0xf]  ;;  %v4444_v38 = vor.u32 %v5010_v33, %v4441_v34  ;;  %v4473_v21 = vld [vmem:[#allocation8 + $0x198] sm:$0xf0]  ;;  %v4400_v33 = vor.u32 %v5001_v16, %v4399_v14 }
 0x564   : > { %v5025_v46 = vld [vmem:[#allocation8 + $0x1c4] sm:$0xf0]  ;;  %v4575_v34 = vld [vmem:[#allocation8 + $0x60] sm:$0xf] }
 0x565   : > { %vm2588_vm4 = vcmp.ge.f32.partialorder %v2586_v39, 0.0  ;;  %v2590_v45 = vmul.f32 0.2, %v2586_v39  ;;  %vm2589_vm5 = vcmp.ge.f32.partialorder %v2587_v41, 0.0  ;;  %v2591_v47 = vmul.f32 0.2, %v2587_v41 }
 0x566   : > { %v2537_v48 = vpop.f32.mrf.mxu2  ;;  %v2563_v49 = vpop.f32.mrf.mxu3  ;;  %v4543_v14 = vld [vmem:[#allocation8 + $0x20] sm:$0xf]  ;;  %v4973_v16 = vld [vmem:[#allocation8 + $0x24] sm:$0xf0] }
 0x567   : > { %v2592_v52 = vsel %vm2588_vm4, %v2586_v39, %v2590_v45  ;;  %v2593_v53 = vsel %vm2589_vm5, %v2587_v41, %v2591_v47  ;;  %v4432_v39 = vor.u32 %v5009_v35, %v4431_v26  ;;  %v4496_v41 = vor.u32 %v5025_v46, %v4495_v36  ;;  %v5007_v45 = vld [vmem:[#allocation8 + $0x134] sm:$0xf0]  ;;  %v4487_v47 = vld [vmem:[#allocation8 + $0x1b0] sm:$0xf]  ;;  %v4415_v49 = vld [vmem:[#allocation8 + $0x120] sm:$0xf] }
 0x568   : > { %v2600_v54 = vmul.f32 %v2596_v43, %v2592_v52  ;;  %v2601_v55 = vmul.f32 %v2597_v44, %v2593_v53  ;;  %v5008_v43 = vld [vmem:[#allocation8 + $0x144] sm:$0xf]  ;;  %v4433_v44 = vld [vmem:[#allocation8 + $0x148] sm:$0xf0]  ;;  %v5023_v48 = vld [vmem:[#allocation8 + $0x1b4] sm:$0xf0]  ;;  %v4424_v53 = vor.u32 %v5007_v45, %v4423_v37  ;;  %v4464_v35 = vor.u32 %v5017_v25, %v4463_v24 }
 0x569   : > { %v5022_v52 = vld [vmem:[#allocation8 + $0x1b4] sm:$0xf]  ;;  %v4983_v26 = vld [vmem:[#allocation8 + $0x74] sm:$0xf0]  ;;  %v5000_v46 = vld [vmem:[#allocation8 + $0x104] sm:$0xf] }
 0x56a   : > { %v2608_v58 = vadd.f32 %v2604_v50, %v2600_v54  ;;  %v2609_v59 = vadd.f32 %v2605_v51, %v2601_v55  ;;  %v4500_v50 = vor.u32 %v5024_v40, %v4497_v42  ;;  %v4436_v51 = vor.u32 %v5008_v43, %v4433_v44  ;;  %v4489_v55 = vld [vmem:[#allocation8 + $0x1b8] sm:$0xf0]  ;;  %v4998_v36 = vld [vmem:[#allocation8 + $0xf4] sm:$0xf]  ;;  %v4401_v37 = vld [vmem:[#allocation8 + $0x108] sm:$0xf0] }
 0x56b   : > { %v4488_v54 = vor.u32 %v5023_v48, %v4487_v47  ;;  %v4649_v40 = vld [vmem:[#allocation8 + $0xf8] sm:$0xf0]  ;;  %v4981_v42 = vld [vmem:[#allocation8 + $0x64] sm:$0xf0]  ;;  %v4639_v43 = vld [vmem:[#allocation8 + $0xe0] sm:$0xf]  ;;  %v4404_v47 = vor.u32 %v5000_v46, %v4401_v37 }
 0x56c   : > { %v2610_v63 = vpack.c.bf16 %v2608_v58, %v2608_v58  ;;  %v2611_v0 = vpack.c.bf16 %v2609_v59, %v2609_v59  ;;  %v4425_v58 = vld [vmem:[#allocation8 + $0x138] sm:$0xf0]  ;;  %v5005_v59 = vld [vmem:[#allocation8 + $0x124] sm:$0xf0]  ;;  %v4652_v48 = vor.u32 %v4998_v36, %v4649_v40  ;;  %v4607_v25 = vld [vmem:[#allocation8 + $0xa0] sm:$0xf] }
 0x56d   : > { %v4416_v2 = vor.u32 %v5005_v59, %v4415_v49  ;;  %v4997_v44 = vld [vmem:[#allocation8 + $0xe4] sm:$0xf0]  ;;  %v4599_v46 = vld [vmem:[#allocation8 + $0x90] sm:$0xf]  ;;  %v4987_v37 = vld [vmem:[#allocation8 + $0x94] sm:$0xf0] }
 0x56e   : > { %v5587_v9 = vsel %vm2615_vm6, %v2610_v63, 0  ;;  %v5590_v11 = vsel %vm2615_vm6, %v2611_v0, 0  ;;  %v4492_v63 = vor.u32 %v5022_v52, %v4489_v55  ;;  %v4428_v0 = vor.u32 %v5006_v56, %v4425_v58  ;;  %v4979_v55 = vld [vmem:[#allocation8 + $0x54] sm:$0xf0]  ;;  %v4631_v56 = vld [vmem:[#allocation8 + $0xd0] sm:$0xf] }
 0x56f   : > { %2629 = vmatpush.bf16.msrb.mxu1 %v5587_v9  ;;  %2642 = vmatpush.bf16.msrb.mxu2 %v5590_v11  ;;  %v4640_v52 = vor.u32 %v4997_v44, %v4639_v43  ;;  %v4995_v58 = vld [vmem:[#allocation8 + $0xd4] sm:$0xf0]  ;;  %v4553_v40 = vld [vmem:[#allocation8 + $0x38] sm:$0xf0]  ;;  %v4591_v44 = vld [vmem:[#allocation8 + $0x80] sm:$0xf] }
 0x570   : > { %2691 = vmatpush.bf16.msra.mxu0 %v5587_v9  ;;  %2704 = vmatpush.bf16.msrb.mxu3 %v5590_v11 }
 0x572   : > { %4394 = vmatmul.msk.bf16.vlgmr.msrb.gmra.mxu2 %vm2612_vm7, %v5507_v13  ;;  %4393 = vmatmul.msk.bf16.vlgmr.msrb.gmra.mxu1 %vm2612_vm7, %v5507_v13  ;;  %v4505_v13 = vld [vmem:[#allocation8 + $0x1d8] sm:$0xf0] }
 0x573   : > { %2905 = vmatpush.bf16.msra.mxu1 %v4456_v4  ;;  %2918 = vmatpush.bf16.msra.mxu2 %v4520_v5  ;;  %v4481_v4 = vld [vmem:[#allocation8 + $0x1a8] sm:$0xf0]  ;;  %v5004_v5 = vld [vmem:[#allocation8 + $0x124] sm:$0xf] }
 0x574   : > { %4395 = vmatmul.msk.bf16.vlgmr.msra.gmra.mxu0 %vm2612_vm7, %v5500_v8  ;;  %4396 = vmatmul.msk.bf16.vlgmr.msrb.gmra.mxu3 %vm2612_vm7, %v5500_v8  ;;  %v4508_v8 = vor.u32 %v5026_v29, %v4505_v13  ;;  %v4476_v29 = vor.u32 %v5018_v15, %v4473_v21  ;;  %v4465_v13 = vld [vmem:[#allocation8 + $0x188] sm:$0xf0]  ;;  %v4971_v15 = vld [vmem:[#allocation8 + $0x14] sm:$0xf0] }
 0x575   : > { %2944 = vmatpush.bf16.msra.mxu3 %v4524_v18  ;;  %2931 = vmatpush.bf16.msrb.mxu0 %v4460_v57  ;;  %v4484_v18 = vor.u32 %v5020_v1, %v4481_v4  ;;  %v4420_v57 = vor.u32 %v5004_v5, %v4417_v6  ;;  %v4993_v1 = vld [vmem:[#allocation8 + $0xc4] sm:$0xf0]  ;;  %v4975_v5 = vld [vmem:[#allocation8 + $0x34] sm:$0xf0]  ;;  %v4615_v6 = vld [vmem:[#allocation8 + $0xb0] sm:$0xf] }
 0x576   : > { %v4577_v21 = vld [vmem:[#allocation8 + $0x68] sm:$0xf0] }
 0x577   : > { %2906 = vmatpush.bf16.msra.mxu1 %v4448_v19  ;;  %2919 = vmatpush.bf16.msra.mxu2 %v4512_v20  ;;  %v4408_v19 = vor.u32 %v5003_v7, %v4407_v62  ;;  %v4472_v20 = vor.u32 %v5019_v12, %v4471_v32  ;;  %v4632_v62 = vor.u32 %v4995_v58, %v4631_v56  ;;  %v4991_v7 = vld [vmem:[#allocation8 + $0xb4] sm:$0xf0]  ;;  %v4970_v56 = vld [vmem:[#allocation8 + $0x14] sm:$0xf]  ;;  %v4537_v58 = vld [vmem:[#allocation8 + $0x18] sm:$0xf0] }
 0x578   : > { %v4616_v12 = vor.u32 %v4991_v7, %v4615_v6 }
 0x579   : > { %2945 = vmatpush.bf16.msra.mxu3 %v4516_v27  ;;  %2932 = vmatpush.bf16.msrb.mxu0 %v4452_v28  ;;  %v4647_v27 = vld [vmem:[#allocation8 + $0xf0] sm:$0xf]  ;;  %v4999_v28 = vld [vmem:[#allocation8 + $0xf4] sm:$0xf0] }
 0x57b   : > { %2907 = vmatpush.bf16.msra.mxu1 %v4440_v30  ;;  %2920 = vmatpush.bf16.msra.mxu2 %v4504_v31  ;;  %v4412_v30 = vor.u32 %v5002_v22, %v4409_v23  ;;  %v5016_v31 = vld [vmem:[#allocation8 + $0x184] sm:$0xf]  ;;  %v4978_v23 = vld [vmem:[#allocation8 + $0x54] sm:$0xf] }
 0x57c   : > { %v4468_v45 = vor.u32 %v5016_v31, %v4465_v13  ;;  %v4969_v31 = vld [vmem:[#allocation8 + $0x4] sm:$0xf0]  ;;  %v4994_v13 = vld [vmem:[#allocation8 + $0xd4] sm:$0xf] }
 0x57d   : > { %2946 = vmatpush.bf16.msra.mxu3 %v4508_v8  ;;  %2933 = vmatpush.bf16.msrb.mxu0 %v4444_v38  ;;  %v4584_v8 = vor.u32 %v4983_v26, %v4583_v17  ;;  %v4648_v38 = vor.u32 %v4999_v28, %v4647_v27  ;;  %v4569_v17 = vld [vmem:[#allocation8 + $0x58] sm:$0xf0]  ;;  %v4989_v26 = vld [vmem:[#allocation8 + $0xa4] sm:$0xf0]  ;;  %v4976_v27 = vld [vmem:[#allocation8 + $0x44] sm:$0xf] }
 0x57e   : > { %v4572_v24 = vor.u32 %v4978_v23, %v4569_v17  ;;  %v4608_v28 = vor.u32 %v4989_v26, %v4607_v25  ;;  %v5046_v23 = vld [vmem:[#allocation8 + $0x274] sm:$0xf]  ;;  %v4777_v17 = vld [vmem:[#allocation8 + $0x2f0] sm:$0xf] }
 0x57f   : > { %2908 = vmatpush.bf16.msra.mxu1 %v4432_v39  ;;  %2921 = vmatpush.bf16.msra.mxu2 %v4496_v41  ;;  %v4982_v39 = vld [vmem:[#allocation8 + $0x74] sm:$0xf]  ;;  %v4585_v41 = vld [vmem:[#allocation8 + $0x78] sm:$0xf0] }
 0x580   : > { %v4588_v49 = vor.u32 %v4982_v39, %v4585_v41  ;;  %v4992_v39 = vld [vmem:[#allocation8 + $0xc4] sm:$0xf]  ;;  %v4625_v41 = vld [vmem:[#allocation8 + $0xc8] sm:$0xf0] }
 0x581   : > { %2947 = vmatpush.bf16.msra.mxu3 %v4500_v50  ;;  %2934 = vmatpush.bf16.msrb.mxu0 %v4436_v51  ;;  %v4576_v50 = vor.u32 %v4981_v42, %v4575_v34  ;;  %v4567_v51 = vld [vmem:[#allocation8 + $0x50] sm:$0xf]  ;;  %v4628_v43 = vor.u32 %v4992_v39, %v4625_v41  ;;  %v5059_v41 = vld [vmem:[#allocation8 + $0x2d4] sm:$0xf0] }
 0x582   : > { %v4568_v60 = vor.u32 %v4979_v55, %v4567_v51  ;;  %v4617_v51 = vld [vmem:[#allocation8 + $0xb8] sm:$0xf0]  ;;  %v4609_v55 = vld [vmem:[#allocation8 + $0xa8] sm:$0xf0]  ;;  %v4761_v39 = vld [vmem:[#allocation8 + $0x2d0] sm:$0xf] }
 0x583   : > { %2909 = vmatpush.bf16.msra.mxu1 %v4424_v53  ;;  %2922 = vmatpush.bf16.msra.mxu2 %v4488_v54  ;;  %v4996_v53 = vld [vmem:[#allocation8 + $0xe4] sm:$0xf]  ;;  %v4641_v54 = vld [vmem:[#allocation8 + $0xe8] sm:$0xf0] }
 0x584   : > { %v4644_v59 = vor.u32 %v4996_v53, %v4641_v54  ;;  %v4988_v54 = vld [vmem:[#allocation8 + $0xa4] sm:$0xf] }
 0x585   : > { %2948 = vmatpush.bf16.msra.mxu3 %v4492_v63  ;;  %2935 = vmatpush.bf16.msrb.mxu0 %v4428_v0  ;;  %v4977_v63 = vld [vmem:[#allocation8 + $0x44] sm:$0xf0]  ;;  %v4623_v0 = vld [vmem:[#allocation8 + $0xc0] sm:$0xf] }
 0x586   : > { %v4624_v4 = vor.u32 %v4993_v1, %v4623_v0  ;;  %v4529_v0 = vld [vmem:[#allocation8 + $0x8] sm:$0xf0] }
 0x587   : > { %2910 = vmatpush.bf16.msra.mxu1 %v4416_v2  ;;  %2923 = vmatpush.bf16.msra.mxu2 %v4480_v3  ;;  %v4560_v2 = vor.u32 %v4977_v63, %v4559_v61  ;;  %v4551_v3 = vld [vmem:[#allocation8 + $0x30] sm:$0xf]  ;;  %v4986_v61 = vld [vmem:[#allocation8 + $0x94] sm:$0xf]  ;;  %v4968_v63 = vld [vmem:[#allocation8 + $0x4] sm:$0xf] }
 0x588   : > { %v4552_v32 = vor.u32 %v4975_v5, %v4551_v3  ;;  %v4984_v3 = vld [vmem:[#allocation8 + $0x84] sm:$0xf] }
 0x589   : > { %2949 = vmatpush.bf16.msra.mxu3 %v4484_v18  ;;  %2936 = vmatpush.bf16.msrb.mxu0 %v4420_v57  ;;  %v4544_v18 = vor.u32 %v4973_v16, %v4543_v14  ;;  %v4535_v57 = vld [vmem:[#allocation8 + $0x10] sm:$0xf] }
 0x58b   : > { %2911 = vmatpush.bf16.msra.mxu1 %v4408_v19  ;;  %2924 = vmatpush.bf16.msra.mxu2 %v4472_v20  ;;  %v4536_v19 = vor.u32 %v4971_v15, %v4535_v57  ;;  %v4980_v20 = vld [vmem:[#allocation8 + $0x64] sm:$0xf] }
 0x58c   : > { %v4580_v22 = vor.u32 %v4980_v20, %v4577_v21 }
 0x58d   : > { %2950 = vmatpush.bf16.msra.mxu3 %v4476_v29  ;;  %2937 = vmatpush.bf16.msrb.mxu0 %v4412_v30  ;;  %v4561_v29 = vld [vmem:[#allocation8 + $0x48] sm:$0xf0]  ;;  %v4527_v30 = vld [vmem:[#allocation8] sm:$0xf] }
 0x58e   : > { %v4528_v34 = vor.u32 %v4969_v31, %v4527_v30  ;;  %v4705_v31 = vld [vmem:[#allocation8 + $0x260] sm:$0xf] }
 0x58f   : > { %2912 = vmatpush.bf16.msra.mxu1 %v4400_v33  ;;  %2925 = vmatpush.bf16.msra.mxu2 %v4464_v35  ;;  %v4564_v33 = vor.u32 %v4976_v27, %v4561_v29  ;;  %v4633_v35 = vld [vmem:[#allocation8 + $0xd8] sm:$0xf0] }
 0x590   : > { %v4636_v36 = vor.u32 %v4994_v13, %v4633_v35  ;;  %v4779_v27 = vld [vmem:[#allocation8 + $0x2f8] sm:$0xf0]  ;;  %v5045_v13 = vld [vmem:[#allocation8 + $0x264] sm:$0xf0]  ;;  %v4769_v35 = vld [vmem:[#allocation8 + $0x2e0] sm:$0xf] }
 0x591   : > { %2951 = vmatpush.bf16.msra.mxu3 %v4468_v45  ;;  %2938 = vmatpush.bf16.msrb.mxu0 %v4404_v47  ;;  %v4985_v45 = vld [vmem:[#allocation8 + $0x84] sm:$0xf0]  ;;  %v4972_v47 = vld [vmem:[#allocation8 + $0x24] sm:$0xf] }
 0x593   : > { %3117 = vmatpush.bf16.msrb.mxu1 %v4584_v8  ;;  %3130 = vmatpush.bf16.msrb.mxu2 %v4648_v38  ;;  %v4974_v8 = vld [vmem:[#allocation8 + $0x34] sm:$0xf]  ;;  %v4600_v38 = vor.u32 %v4987_v37, %v4599_v46  ;;  %v5060_v46 = vld [vmem:[#allocation8 + $0x2e4] sm:$0xf] }
 0x594   : > { %v4556_v42 = vor.u32 %v4974_v8, %v4553_v40 }
 0x595   : > { %3156 = vmatpush.bf16.msrb.mxu3 %v4652_v48  ;;  %3143 = vmatpush.bf16.msra.mxu0 %v4588_v49  ;;  %v4592_v48 = vor.u32 %v4985_v45, %v4591_v44  ;;  %v4545_v49 = vld [vmem:[#allocation8 + $0x28] sm:$0xf0]  ;;  %v4763_v44 = vld [vmem:[#allocation8 + $0x2d8] sm:$0xf0]  ;;  %v4697_v45 = vld [vmem:[#allocation8 + $0x250] sm:$0xf] }
 0x597   : > { %3118 = vmatpush.bf16.msrb.mxu1 %v4576_v50  ;;  %3131 = vmatpush.bf16.msrb.mxu2 %v4640_v52  ;;  %v4990_v50 = vld [vmem:[#allocation8 + $0xb4] sm:$0xf]  ;;  %v4548_v52 = vor.u32 %v4972_v47, %v4545_v49  ;;  %v5043_v47 = vld [vmem:[#allocation8 + $0x254] sm:$0xf0] }
 0x598   : > { %v4620_v53 = vor.u32 %v4990_v50, %v4617_v51  ;;  %v4698_v49 = vor.u32 %v5043_v47, %v4697_v45  ;;  %v5042_v50 = vld [vmem:[#allocation8 + $0x254] sm:$0xf]  ;;  %v4699_v51 = vld [vmem:[#allocation8 + $0x258] sm:$0xf0]  ;;  %v4721_v45 = vld [vmem:[#allocation8 + $0x280] sm:$0xf] }
 0x599   : > { %3157 = vmatpush.bf16.msrb.mxu3 %v4644_v59  ;;  %3144 = vmatpush.bf16.msra.mxu0 %v4580_v22  ;;  %v4612_v59 = vor.u32 %v4988_v54, %v4609_v55  ;;  %v5047_v22 = vld [vmem:[#allocation8 + $0x274] sm:$0xf0]  ;;  %v5041_v54 = vld [vmem:[#allocation8 + $0x244] sm:$0xf0]  ;;  %v5040_v55 = vld [vmem:[#allocation8 + $0x244] sm:$0xf] }
 0x59a   : > { %v5049_v47 = vld [vmem:[#allocation8 + $0x284] sm:$0xf0] }
 0x59b   : > { %3119 = vmatpush.bf16.msrb.mxu1 %v4568_v60  ;;  %3132 = vmatpush.bf16.msrb.mxu2 %v4632_v62  ;;  %v4540_v60 = vor.u32 %v4970_v56, %v4537_v58  ;;  %v4601_v62 = vld [vmem:[#allocation8 + $0x98] sm:$0xf0]  ;;  %v4691_v58 = vld [vmem:[#allocation8 + $0x248] sm:$0xf0] }
 0x59c   : > { %v4604_v1 = vor.u32 %v4986_v61, %v4601_v62  ;;  %v5056_v61 = vld [vmem:[#allocation8 + $0x2c4] sm:$0xf]  ;;  %v4694_v62 = vor.u32 %v5040_v55, %v4691_v58 }
 0x59d   : > { %3145 = vmatpush.bf16.msra.mxu0 %v4572_v24  ;;  %3158 = vmatpush.bf16.msrb.mxu3 %v4636_v36  ;;  %v5063_v24 = vld [vmem:[#allocation8 + $0x2f4] sm:$0xf0]  ;;  %v5061_v36 = vld [vmem:[#allocation8 + $0x2e4] sm:$0xf0] }
 0x59e   : > { %v4778_v26 = vor.u32 %v5063_v24, %v4777_v17  ;;  %v4770_v8 = vor.u32 %v5061_v36, %v4769_v35  ;;  %v4737_v17 = vld [vmem:[#allocation8 + $0x2a0] sm:$0xf]  ;;  %v5053_v24 = vld [vmem:[#allocation8 + $0x2a4] sm:$0xf0] }
 0x59f   : > { %3120 = vmatpush.bf16.msrb.mxu1 %v4560_v2  ;;  %3133 = vmatpush.bf16.msrb.mxu2 %v4624_v4  ;;  %v4532_v2 = vor.u32 %v4968_v63, %v4529_v0  ;;  %v4593_v4 = vld [vmem:[#allocation8 + $0x88] sm:$0xf0] }
 0x5a0   : > { %v4596_v5 = vor.u32 %v4984_v3, %v4593_v4  ;;  %v4755_v0 = vld [vmem:[#allocation8 + $0x2c8] sm:$0xf0]  ;;  %v5039_v3 = vld [vmem:[#allocation8 + $0x234] sm:$0xf0]  ;;  %v5038_v4 = vld [vmem:[#allocation8 + $0x234] sm:$0xf] }
 0x5a1   : > { %3146 = vmatpush.bf16.msra.mxu0 %v4564_v33  ;;  %3159 = vmatpush.bf16.msrb.mxu3 %v4628_v43  ;;  %v5044_v33 = vld [vmem:[#allocation8 + $0x264] sm:$0xf]  ;;  %v4762_v43 = vor.u32 %v5059_v41, %v4761_v39  ;;  %v4657_v39 = vld [vmem:[#allocation8 + $0x200] sm:$0xf]  ;;  %v5033_v41 = vld [vmem:[#allocation8 + $0x204] sm:$0xf0] }
 0x5a3   : > { %3121 = vmatpush.bf16.msrb.mxu1 %v4552_v32  ;;  %3134 = vmatpush.bf16.msrb.mxu2 %v4616_v12 }
 0x5a5   : > { %3147 = vmatpush.bf16.msra.mxu0 %v4556_v42  ;;  %3160 = vmatpush.bf16.msrb.mxu3 %v4620_v53  ;;  %v5058_v42 = vld [vmem:[#allocation8 + $0x2d4] sm:$0xf]  ;;  %v4689_v53 = vld [vmem:[#allocation8 + $0x240] sm:$0xf] }
 0x5a6   : > { %v4690_v56 = vor.u32 %v5041_v54, %v4689_v53 }
 0x5a7   : > { %3122 = vmatpush.bf16.msrb.mxu1 %v4544_v18  ;;  %3135 = vmatpush.bf16.msrb.mxu2 %v4608_v28  ;;  %v4715_v28 = vld [vmem:[#allocation8 + $0x278] sm:$0xf0] }
 0x5a8   : > { %v4718_v30 = vor.u32 %v5046_v23, %v4715_v28  ;;  %v4675_v23 = vld [vmem:[#allocation8 + $0x228] sm:$0xf0] }
 0x5a9   : > { %3148 = vmatpush.bf16.msra.mxu0 %v4548_v52  ;;  %3161 = vmatpush.bf16.msrb.mxu3 %v4612_v59  ;;  %v4702_v52 = vor.u32 %v5042_v50, %v4699_v51  ;;  %v4753_v59 = vld [vmem:[#allocation8 + $0x2c0] sm:$0xf]  ;;  %v4722_v50 = vor.u32 %v5049_v47, %v4721_v45  ;;  %v4723_v51 = vld [vmem:[#allocation8 + $0x288] sm:$0xf0] }
 0x5ab   : > { %3123 = vmatpush.bf16.msrb.mxu1 %v4536_v19  ;;  %3136 = vmatpush.bf16.msrb.mxu2 %v4600_v38  ;;  %v4771_v38 = vld [vmem:[#allocation8 + $0x2e8] sm:$0xf0] }
 0x5ac   : > { %v4774_v40 = vor.u32 %v5060_v46, %v4771_v38  ;;  %v5034_v46 = vld [vmem:[#allocation8 + $0x214] sm:$0xf] }
 0x5ad   : > { %3149 = vmatpush.bf16.msra.mxu0 %v4540_v60  ;;  %3162 = vmatpush.bf16.msrb.mxu3 %v4604_v1  ;;  %v5057_v60 = vld [vmem:[#allocation8 + $0x2c4] sm:$0xf0]  ;;  %v4758_v1 = vor.u32 %v5056_v61, %v4755_v0 }
 0x5ae   : > { %v4754_v63 = vor.u32 %v5057_v60, %v4753_v59 }
 0x5af   : > { %3124 = vmatpush.bf16.msrb.mxu1 %v4528_v34  ;;  %3137 = vmatpush.bf16.msrb.mxu2 %v4592_v48  ;;  %v4707_v34 = vld [vmem:[#allocation8 + $0x268] sm:$0xf0]  ;;  %v4766_v48 = vor.u32 %v5058_v42, %v4763_v44  ;;  %v5032_v42 = vld [vmem:[#allocation8 + $0x204] sm:$0xf] }
 0x5b0   : > { %v4710_v37 = vor.u32 %v5044_v33, %v4707_v34  ;;  %v4731_v33 = vld [vmem:[#allocation8 + $0x298] sm:$0xf0]  ;;  %v5035_v34 = vld [vmem:[#allocation8 + $0x214] sm:$0xf0]  ;;  %v4659_v44 = vld [vmem:[#allocation8 + $0x208] sm:$0xf0] }
 0x5b1   : > { %3150 = vmatpush.bf16.msra.mxu0 %v4532_v2  ;;  %3163 = vmatpush.bf16.msrb.mxu3 %v4596_v5  ;;  %v4681_v2 = vld [vmem:[#allocation8 + $0x230] sm:$0xf] }
 0x5b2   : > { %v4745_v5 = vld [vmem:[#allocation8 + $0x2b0] sm:$0xf] }
 0x5ef   : > { %v2631_v6 = vpop.f32.mrf.mxu1 }
 0x5f0   : > { %v2648_v20 = vpack.c.bf16 %v2631_v6, %v2631_v6  ;;  %v5055_v6 = vld [vmem:[#allocation8 + $0x2b4] sm:$0xf0] }
 0x5f1   : > { %v2693_v7 = vpop.f32.mrf.mxu0 }
 0x5f2   : > { %v2710_v32 = vpack.c.bf16 %v2693_v7, %v2693_v7  ;;  %v5054_v7 = vld [vmem:[#allocation8 + $0x2b4] sm:$0xf] }
 0x5f4   : > { %2913 = vmatmul.bf16.vlgmr.msra.gmra.mxu1 %v2710_v32  ;;  %2939 = vmatmul.bf16.vlgmr.msrb.gmra.mxu0 %v2710_v32  ;;  %v4682_v32 = vor.u32 %v5039_v3, %v4681_v2 }
 0x5f5   : > { %3178 = vmatpush.bf16.msra.mxu1 %v5587_v9  ;;  %v2644_v12 = vpop.f32.mrf.mxu2  ;;  %v4713_v9 = vld [vmem:[#allocation8 + $0x270] sm:$0xf] }
 0x5f6   : > { %v2649_v21 = vpack.c.bf16 %v2644_v12, %v2644_v12  ;;  %v4714_v25 = vor.u32 %v5047_v22, %v4713_v9  ;;  %v4746_v12 = vor.u32 %v5055_v6, %v4745_v5  ;;  %v5036_v9 = vld [vmem:[#allocation8 + $0x224] sm:$0xf] }
 0x5f7   : > { %v2706_v14 = vpop.f32.mrf.mxu3  ;;  %v2633_v18 = vpop.f32.mrf.mxu1 }
 0x5f8   : > { %v2711_v16 = vpack.c.bf16 %v2706_v14, %v2706_v14  ;;  %3392 = vmatpush.bf16.msrb.mxu0 %v4714_v25  ;;  %v4747_v14 = vld [vmem:[#allocation8 + $0x2b8] sm:$0xf0]  ;;  %v4678_v25 = vor.u32 %v5036_v9, %v4675_v23 }
 0x5f9   : > { %v2695_v57 = vpop.f32.mrf.mxu0  ;;  %v4750_v18 = vor.u32 %v5054_v7, %v4747_v14 }
 0x5fa   : > { %2926 = vmatmul.bf16.vlgmr.msra.gmra.mxu2 %v2711_v16  ;;  %2952 = vmatmul.bf16.vlgmr.msra.gmra.mxu3 %v2711_v16  ;;  %v4683_v16 = vld [vmem:[#allocation8 + $0x238] sm:$0xf0] }
 0x5fb   : > { %3191 = vmatpush.bf16.msra.mxu2 %v5590_v11  ;;  %v5062_v11 = vld [vmem:[#allocation8 + $0x2f4] sm:$0xf]  ;;  %3405 = vmatpush.bf16.msra.mxu3 %v4778_v26  ;;  %v4686_v57 = vor.u32 %v5038_v4, %v4683_v16  ;;  %v4738_v26 = vor.u32 %v5053_v24, %v4737_v17 }
 0x5fc   : > { %v4782_v29 = vor.u32 %v5062_v11, %v4779_v27  ;;  %v5052_v11 = vld [vmem:[#allocation8 + $0x2a4] sm:$0xf]  ;;  %v4739_v27 = vld [vmem:[#allocation8 + $0x2a8] sm:$0xf0] }
 0x5fd   : > { %v2646_v15 = vpop.f32.mrf.mxu2  ;;  %v4742_v28 = vor.u32 %v5052_v11, %v4739_v27 }
 0x5ff   : > { %v2708_v19 = vpop.f32.mrf.mxu3  ;;  %3406 = vmatpush.bf16.msra.mxu3 %v4770_v8 }
 0x603   : > { %3407 = vmatpush.bf16.msra.mxu3 %v4762_v43  ;;  %v4658_v43 = vor.u32 %v5033_v41, %v4657_v39 }
 0x604   : > { %3125 = vmatmul.bf16.vlgmr.msrb.gmra.mxu1 %v2648_v20  ;;  %3151 = vmatmul.bf16.vlgmr.msra.gmra.mxu0 %v2648_v20  ;;  %v4673_v20 = vld [vmem:[#allocation8 + $0x220] sm:$0xf] }
 0x605   : > { %3418 = vmatpush.bf16.msrb.mxu1 %v4718_v30  ;;  %v5051_v30 = vld [vmem:[#allocation8 + $0x294] sm:$0xf0] }
 0x607   : > { %3408 = vmatpush.bf16.msra.mxu3 %v4754_v63 }
 0x609   : > { %3419 = vmatpush.bf16.msrb.mxu1 %v4710_v37  ;;  %v4667_v37 = vld [vmem:[#allocation8 + $0x218] sm:$0xf0] }
 0x60a   : > { %3138 = vmatmul.bf16.vlgmr.msrb.gmra.mxu2 %v2649_v21  ;;  %3164 = vmatmul.bf16.vlgmr.msrb.gmra.mxu3 %v2649_v21  ;;  %v5037_v21 = vld [vmem:[#allocation8 + $0x224] sm:$0xf0]  ;;  %v4670_v8 = vor.u32 %v5034_v46, %v4667_v37 }
 0x60b   : > { %3431 = vmatpush.bf16.msrb.mxu2 %v4782_v29  ;;  %3409 = vmatpush.bf16.msra.mxu3 %v4746_v12  ;;  %v4674_v22 = vor.u32 %v5037_v21, %v4673_v20  ;;  %v4729_v29 = vld [vmem:[#allocation8 + $0x290] sm:$0xf] }
 0x60d   : > { %3420 = vmatpush.bf16.msrb.mxu1 %v4702_v52 }
 0x60f   : > { %3432 = vmatpush.bf16.msrb.mxu2 %v4774_v40  ;;  %3410 = vmatpush.bf16.msra.mxu3 %v4738_v26 }
 0x611   : > { %3421 = vmatpush.bf16.msrb.mxu1 %v4694_v62 }
 0x613   : > { %3433 = vmatpush.bf16.msrb.mxu2 %v4766_v48  ;;  %v5048_v48 = vld [vmem:[#allocation8 + $0x284] sm:$0xf] }
 0x614   : > { %4653 = vmatmul.msk.bf16.vlgmr.msra.gmra.mxu1 %vm2612_vm7, %v5531_v10  ;;  %v4726_v54 = vor.u32 %v5048_v48, %v4723_v51 }
 0x615   : > { %3422 = vmatpush.bf16.msrb.mxu1 %v4686_v57 }
 0x617   : > { %3434 = vmatpush.bf16.msrb.mxu2 %v4758_v1 }
 0x619   : > { %3423 = vmatpush.bf16.msrb.mxu1 %v4678_v25 }
 0x61a   : > { %4654 = vmatmul.msk.bf16.vlgmr.msra.gmra.mxu2 %vm2612_vm7, %v5531_v10  ;;  %v4706_v10 = vor.u32 %v5045_v13, %v4705_v31  ;;  %v5050_v31 = vld [vmem:[#allocation8 + $0x294] sm:$0xf]  ;;  %v4730_v13 = vor.u32 %v5051_v30, %v4729_v29 }
 0x61b   : > { %3435 = vmatpush.bf16.msrb.mxu2 %v4750_v18  ;;  %v4734_v35 = vor.u32 %v5050_v31, %v4731_v33  ;;  %v3460_v29 = vld [vmem:[%s5647_s15] sm:$0x3] }
 0x61c   : > { %3393 = vmatpush.bf16.msrb.mxu0 %v4706_v10  ;;  %v4665_v10 = vld [vmem:[#allocation8 + $0x210] sm:$0xf]  ;;  %3411 = vmatpush.bf16.msra.mxu3 %v4730_v13  ;;  %v3468_v13 = vld [vmem:[%s5648_s16] sm:$0x3]  ;;  %v3462_v33 = vperm.slane %v3460_v29, 0 }
 0x61d   : > { %v4666_v36 = vor.u32 %v5035_v34, %v4665_v10  ;;  %3424 = vmatpush.bf16.msrb.mxu1 %v4670_v8  ;;  %v3463_v10 = vperm.slane %v3460_v29, 1  ;;  %v3470_v37 = vperm.slane %v3468_v13, 0  ;;  %v3471_v8 = vperm.slane %v3468_v13, 1 }
 0x61f   : > { %3436 = vmatpush.bf16.msrb.mxu2 %v4742_v28 }
 0x620   : > { %3394 = vmatpush.bf16.msrb.mxu0 %v4698_v49  ;;  %v4662_v49 = vor.u32 %v5032_v42, %v4659_v44  ;;  %3412 = vmatpush.bf16.msra.mxu3 %v4722_v50 }
 0x622   : > { %3425 = vmatpush.bf16.msrb.mxu1 %v4662_v49 }
 0x623   : > { %3437 = vmatpush.bf16.msrb.mxu2 %v4734_v35 }
 0x624   : > { %3395 = vmatpush.bf16.msrb.mxu0 %v4690_v56 }
 0x627   : > { %3438 = vmatpush.bf16.msrb.mxu2 %v4726_v54 }
 0x628   : > { %3396 = vmatpush.bf16.msrb.mxu0 %v4682_v32 }
 0x62c   : > { %3397 = vmatpush.bf16.msrb.mxu0 %v4674_v22  ;;  %v3446_v22 = vld [vmem:[%s5646_s14] sm:$0x3] }
 0x62d   : > { %v3448_v11 = vperm.slane %v3446_v22, 0  ;;  %v3449_v26 = vperm.slane %v3446_v22, 1 }
 0x630   : > { %3398 = vmatpush.bf16.msrb.mxu0 %v4666_v36 }
 0x634   : > { %3399 = vmatpush.bf16.msrb.mxu0 %v4658_v43 }
 0x671   : > { %v2914_v15 = vpop.f32.mrf.mxu1  ;;  %v2940_v19 = vpop.f32.mrf.mxu0 }
 0x679   : > { %v2916_v38 = vpop.f32.mrf.mxu1  ;;  %v2942_v40 = vpop.f32.mrf.mxu0 }
 0x67d   : > { %v2927_v52 = vpop.f32.mrf.mxu2  ;;  %v2953_v53 = vpop.f32.mrf.mxu3 }
 0x67e   : > { %v2928_v55 = vadd.f32 %v2927_v52, %v2914_v15  ;;  %v2954_v56 = vadd.f32 %v2953_v53, %v2940_v19  ;;  %v3476_v15 = vld [vmem:[%s5649_s17] sm:$0xf]  ;;  %v5271_v52 = vmov 0  }
 0x67f   : > { %3478 = vst [vmem:[#allocation1] ss:$4 sm:$0xff] %v3476_v15  ;;  %5118 = vset.pattern.permute.xlu0 %v5271_v52 }
 0x681   : > { %v3126_v58 = vpop.f32.mrf.mxu1  ;;  %v3152_v59 = vpop.f32.mrf.mxu0 }
 0x682   : > { %v3127_v60 = vadd.f32 %v3126_v58, %v2928_v55  ;;  %v3153_v61 = vadd.f32 %v3152_v59, %v2954_v56 }
 0x685   : > { %v2929_v62 = vpop.f32.mrf.mxu2  ;;  %v2955_v63 = vpop.f32.mrf.mxu3 }
 0x686   : > { %v3479_v42 = vld.sshfl [vmem:[#allocation1] sm:$0xff pattern:$0x73625140]  ;;  %v3480_v43 = vld.sshfl [vmem:[#allocation1 + $0x8] sm:$0xff pattern:$0x73625140] }
 0x689   : > { %v3128_v0 = vpop.f32.mrf.mxu1  ;;  %v3154_v1 = vpop.f32.mrf.mxu0 }
 0x68d   : > { %v3139_v2 = vpop.f32.mrf.mxu2  ;;  %v3165_v3 = vpop.f32.mrf.mxu3 }
 0x68e   : > { %v3140_v4 = vadd.f32 %v3139_v2, %v3127_v60  ;;  %v3166_v5 = vadd.f32 %v3165_v3, %v3153_v61  ;;  %v3497_v61 = vld [vmem:[#allocation2] sm:$0x1] }
 0x691   : > { %v3180_v6 = vpop.f32.mrf.mxu1 }
 0x692   : > { %v3197_v7 = vpack.c.bf16 %v3180_v6, %v3180_v6 }
 0x694   : > { %3400 = vmatmul.bf16.vlgmr.msrb.gmra.mxu0 %v3197_v7  ;;  %3426 = vmatmul.bf16.vlgmr.msrb.gmra.mxu1 %v3197_v7 }
 0x695   : > { %v3141_v32 = vpop.f32.mrf.mxu2  ;;  %v3167_v12 = vpop.f32.mrf.mxu3 }
 0x699   : > { %v3182_v14 = vpop.f32.mrf.mxu1 }
 0x69d   : > { %v3193_v16 = vpop.f32.mrf.mxu2 }
 0x69e   : > { %v3198_v18 = vpack.c.bf16 %v3193_v16, %v3193_v16 }
 0x6a0   : > { %3413 = vmatmul.bf16.vlgmr.msra.gmra.mxu3 %v3198_v18  ;;  %3439 = vmatmul.bf16.vlgmr.msrb.gmra.mxu2 %v3198_v18 }
 0x6a5   : > { %v3195_v57 = vpop.f32.mrf.mxu2 }
 0x711   : > { %v3401_v19 = vpop.f32.mrf.mxu0  ;;  %v3427_v20 = vpop.f32.mrf.mxu1 }
 0x719   : > { %v3403_v21 = vpop.f32.mrf.mxu0  ;;  %v3429_v9 = vpop.f32.mrf.mxu1 }
 0x723   : > { %v3414_v23 = vpop.f32.mrf.mxu3  ;;  %v3440_v17 = vpop.f32.mrf.mxu2 }
 0x724   : > { %v3415_v24 = vadd.f32 %v3414_v23, %v3401_v19  ;;  %v3441_v25 = vadd.f32 %v3440_v17, %v3427_v20 }
 0x726   : > { %v3444_v27 = vadd.f32 %v3415_v24, %v3140_v4  ;;  %v3445_v28 = vadd.f32 %v3441_v25, %v3166_v5 }
 0x728   : > { %v3452_v30 = vadd.f32 %v3448_v11, %v3444_v27  ;;  %v3453_v31 = vadd.f32 %v3449_v26, %v3445_v28 }
 0x72a   : > { %vm3454_vm8 = vcmp.ge.f32.partialorder %v3452_v30, 0.0  ;;  %v3456_v34 = vmul.f32 0.2, %v3452_v30  ;;  %vm3455_vm9 = vcmp.ge.f32.partialorder %v3453_v31, 0.0  ;;  %v3457_v35 = vmul.f32 0.2, %v3453_v31 }
 0x72b   : > { %v3416_v36 = vpop.f32.mrf.mxu3  ;;  %v3442_v46 = vpop.f32.mrf.mxu2 }
 0x72c   : > { %v3458_v38 = vsel %vm3454_vm8, %v3452_v30, %v3456_v34  ;;  %v3459_v40 = vsel %vm3455_vm9, %v3453_v31, %v3457_v35 }
 0x72d   : > { %v3466_v39 = vmul.f32 %v3462_v33, %v3458_v38  ;;  %v3467_v41 = vmul.f32 %v3463_v10, %v3459_v40 }
 0x72f   : > { %v3474_v44 = vadd.f32 %v3470_v37, %v3466_v39  ;;  %v3475_v45 = vadd.f32 %v3471_v8, %v3467_v41 }
 0x731   : > { %v3483_v47 = vmul.f32 %v3479_v42, %v3474_v44  ;;  %v3484_v48 = vmul.f32 %v3480_v43, %v3475_v45 }
 0x733   : > { %v3485_v49 = vsel %vm2615_vm6, %v3483_v47, 0.0  ;;  %v3486_v50 = vsel %vm2615_vm6, %v3484_v48, 0.0 }
 0x734   : > { %v3487_v51 = vadd.f32 %v3486_v50, %v3485_v49 }
 0x736   : > { %3488 = vadd.xlane.f32.xlu0 %v3487_v51 }
 0x7a9   : > { %v3489_v53 = vpop.xlane.xlu0 %3488 }
 0x7aa   : > { %v3490_v54 = vsel %vm2615_vm6, %v3489_v53, 0.0 }
 0x7ab   : > { %v3491_v55 = vrot.slane %v3490_v54, 4 }
 0x7ad   : > { %v3492_v56 = vadd.f32 %v3491_v55, %v3490_v54 }
 0x7af   : > { %v3493_v58 = vrot.slane %v3492_v56, 2 }
 0x7b1   : > { %v3494_v59 = vadd.f32 %v3493_v58, %v3492_v56 }
 0x7b3   : > { %v3495_v60 = vrot.slane %v3494_v59, 1 }
 0x7b5   : > { %v3496_v62 = vadd.f32 %v3495_v60, %v3494_v59 }
 0x7b7   : > { %v3498_v63 = vadd.f32 %v3497_v61, %v3496_v62 }
 0x7b9   : > { %v3499_v0 = vand.u32 2147483647, %v3498_v63  ;;  %vm3503_vm14 = vcmp.ge.f32.partialorder %v3498_v63, 0.0 }
 0x7bb   : > { %v3500_v1 = vsub.f32 0.0, %v3499_v0 }
 0x7bd   : > { %v3501_v2 = vmul.f32 1.442695, %v3500_v1 }
 0x7bf   : > { %5119 = vpow2.f32 %v3501_v2 }
 0x7c5   : > { %v5120_v3 = vpop.eup %5119 }
 0x7c6   : > { %v3504_v4 = vadd.f32 1.0, %v5120_v3 }
 0x7c8   : > { %5121 = vrcp.f32 %v3504_v4  ;;  %v3516_v32 = vand.u32 2147483648, %v3504_v4  ;;  %v3514_v14 = vand.u32 2147483647, %v3504_v4  ;;  %vm3510_vm11 = vweird.f32 %v3504_v4 }
 0x7ca   : > { %v3517_v18 = vor.u32 1.1754944e-38, %v3516_v32  ;;  %vm3515_vm13 = vcmp.eq.f32.partialorder %v3514_v14, 8.507059e+37 }
 0x7ce   : > { %v5122_v5 = vpop.eup %5121 }
 0x7cf   : > { %v3506_v6 = vmul.f32 %v5122_v5, %v3504_v4  ;;  %vm3511_vm10 = vweird.f32 %v5122_v5 }
 0x7d0   : > { %vm3512_vm12 = vmor %vm3510_vm11, %vm3511_vm10 }
 0x7d1   : > { %v3507_v7 = vsub.f32 1.0, %v3506_v6 }
 0x7d3   : > { %v3508_v12 = vmul.f32 %v5122_v5, %v3507_v7 }
 0x7d5   : > { %v3509_v16 = vadd.f32 %v5122_v5, %v3508_v12 }
 0x7d7   : > { %v3513_v57 = vsel %vm3512_vm12, %v5122_v5, %v3509_v16 }
 0x7d8   : > { %v3518_v15 = vsel %vm3515_vm13, %v3517_v18, %v3513_v57 }
 0x7d9   : > { %v3520_v19 = vmul.f32 %v5120_v3, %v3518_v15 }
 0x7db   : > { %v3521_v20 = vsel %vm3503_vm14, %v3518_v15, %v3520_v19 }
 0x7dc   : > { %3524 = vperm.xlu0 %5118, %v3521_v20  }
 0x84e   : > { %v3525_v21 = vpop.permute.xlu0 %3524 }
 0x84f   : > { %v3527_v9 = vperm.slane %v3525_v21, 0 }
 0x851   : > { %3528 = vst [vmem:[%s667_s20] sm:$0x1] %v3527_v9 }
 0x852 PF: > { %s5668_s22 = sld [smem:[#allocation13_spill]] }
 0x858   : > { %s34_s20 = sadd.s32 1, %s5668_s22  }
 0x859   : > { %p31_p7 = scmp.ge.s32.totalorder %s34_s20, 4  }
 0x85b   :  { %33 = sbr.rel (!%p31_p7) target bundleno = 10 (0xa), region = 151 }
 0x860   :  { %3546 = vsyncpa [#allocation4], 1 }
 0x861   :  { %3548 = vsyncpa [#allocation4 + $0x1], 1 }
 0x862   :  { %3549 = vsyncpa [#allocation6], 1 }
 0x863   :  { %3550 = vsyncpa [#allocation9], 1 }

</bundles_post_ra>
